<compile_context>
chip_gen: v6e
topology: v6e:2x2x1
jax: 0.10.0
libtpu: 0.0.40
codegen_flags: <defaults>
</compile_context>

<pallas_src>
import functools

import numpy as np

import jax
import jax.numpy as jnp
from jax.experimental import pallas as pl
from jax.experimental.pallas import tpu as pltpu


# ----------------------------------------------------------------------------
# In-kernel helpers (pure jnp on values, traced inside the fused kernel)
# ----------------------------------------------------------------------------
def _gn_relu_cm(y, gamma, beta, *, groups, eps):
    """GroupNorm + ReLU on a channel-major (C, M) f32 tile.

    Groups are contiguous channel (row) ranges whose size (cpg) is a multiple
    of 8, so per-group stats come from one lane reduction (per-row sum/sumsq)
    followed by sublane-aligned row-slice reductions; then a single fused
    normalize/affine/ReLU pass over the tile.  All stats math is f32.
    """
    C, M = y.shape
    cpg = C // groups
    cnt = float(cpg * M)
    rsum = jnp.sum(y, axis=1, keepdims=True)          # (C, 1) f32
    rsumsq = jnp.sum(y * y, axis=1, keepdims=True)    # (C, 1) f32

    means, invs = [], []
    for g in range(groups):                            # groups is small & static
        s = jnp.sum(rsum[g * cpg:(g + 1) * cpg, :])
        ss = jnp.sum(rsumsq[g * cpg:(g + 1) * cpg, :])
        mean = s / cnt
        var = jnp.maximum(ss / cnt - mean * mean, 0.0)  # guard cancellation -> no NaN
        means.append(mean)
        invs.append(jax.lax.rsqrt(var + eps))

    row = jax.lax.broadcasted_iota(jnp.int32, (C, 1), 0)
    mean_r = means[groups - 1]
    inv_r = invs[groups - 1]
    for g in range(groups - 2, -1, -1):                # where-chain over groups
        in_g = row < (g + 1) * cpg
        mean_r = jnp.where(in_g, means[g], mean_r)
        inv_r = jnp.where(in_g, invs[g], inv_r)

    return jnp.maximum((y - mean_r) * (inv_r * gamma) + beta, 0.0)


def _conv3x3_fused(x_f32, w_ref, s_ref):
    """3x3 conv on a channel-major activation via one wide gather matmul.

    x_f32: (Cin, Min)        channel-major activation in f32 (Min = Hin*Win)
    w_ref: (9, Cout, Cin)    per-tap weights (bf16), tap k = kh*3 + kw
    s_ref: (Min, 9*Mout)     fused 0/1 selector (bf16); lane segment k holds
                             the transposed gather for tap k (all-zero columns
                             where the source pixel is padding).
    Returns (Cout, Mout) f32.
    """
    mout = s_ref.shape[1] // 9
    # One wide gather matmul on the MXU (dominant FLOPs of the kernel).
    g = jnp.dot(x_f32.astype(jnp.bfloat16), s_ref[...],
                preferred_element_type=jnp.float32)            # (Cin, 9*Mout)
    g = g.astype(jnp.bfloat16)
    # Nine tiny K=Cin matmuls on static lane slices, accumulated in f32.
    acc = jnp.dot(w_ref[0], g[:, 0:mout], preferred_element_type=jnp.float32)
    for k in range(1, 9):
        acc = acc + jnp.dot(w_ref[k], g[:, k * mout:(k + 1) * mout],
                            preferred_element_type=jnp.float32)
    return acc                                                  # (Cout, Mout)


# ----------------------------------------------------------------------------
# Fused whole-network kernel (one sample per grid step)
# ----------------------------------------------------------------------------
def _fused_kernel(
    x_ref,
    w0a_ref, g0_ref, b0_ref, w0c_ref, s0_ref,
    w1a_ref, g1a_ref, b1a_ref, w1b_ref, g1b_ref, b1b_ref, w1c_ref, s1_ref,
    w2a_ref, g2_ref, b2_ref, w2c_ref, s2_ref,
    w3_ref, b3_ref,
    o1_ref, o2_ref, o3_ref,
    *, eps,
):
    x = x_ref[0].astype(jnp.bfloat16)                                  # (3, H*W)

    # ---- layer0: 1x1(3->32) GN(2) ReLU ; 3x3 s2 p1 (32->32) ----
    h = jnp.dot(w0a_ref[...], x, preferred_element_type=jnp.float32)   # (32, H*W) f32
    h = _gn_relu_cm(h, g0_ref[...], b0_ref[...], groups=2, eps=eps)
    x1 = _conv3x3_fused(h, w0c_ref, s0_ref)                            # (32, M0) f32
    o1_ref[0] = x1

    # ---- layer1: 1x1(32->64) GN ReLU ; 1x1(64->32) GN ReLU ; 3x3 s2 p1 ----
    h = jnp.dot(w1a_ref[...], x1.astype(jnp.bfloat16),
                preferred_element_type=jnp.float32)                    # (64, M0)
    h = _gn_relu_cm(h, g1a_ref[...], b1a_ref[...], groups=2, eps=eps)
    h = jnp.dot(w1b_ref[...], h.astype(jnp.bfloat16),
                preferred_element_type=jnp.float32)                    # (32, M0)
    h = _gn_relu_cm(h, g1b_ref[...], b1b_ref[...], groups=2, eps=eps)
    x2 = _conv3x3_fused(h, w1c_ref, s1_ref)                            # (32, M1)
    o2_ref[0] = x2

    # ---- layer2: 1x1(32->32) GN ReLU ; 3x3 s1 p0 (32->32) ----
    h = jnp.dot(w2a_ref[...], x2.astype(jnp.bfloat16),
                preferred_element_type=jnp.float32)                    # (32, M1)
    h = _gn_relu_cm(h, g2_ref[...], b2_ref[...], groups=2, eps=eps)
    x3 = _conv3x3_fused(h, w2c_ref, s2_ref)                            # (32, M2)

    # ---- layer3: 1x1(32->1) + bias ----
    y1 = jnp.dot(w3_ref[...], x3.astype(jnp.bfloat16),
                 preferred_element_type=jnp.float32) + b3_ref[...]     # (1, M2)
    o3_ref[0] = y1


# ----------------------------------------------------------------------------
# Host-side setup: fused selector matrices, params, forward wrapper
# ----------------------------------------------------------------------------
def _conv_selector_fused(hin, win, ksize, stride, pad):
    """Fused transposed gather matrix of shape (Hin*Win, k*k*Hout*Wout), bf16.

    Lane segment k (= kh*ksize + kw) holds the 0/1 gather for tap k: column
    p of segment k is one-hot at the source pixel of output pixel p (all-zero
    where the source lies in the zero padding).
    """
    hout = (hin + 2 * pad - ksize) // stride + 1
    wout = (win + 2 * pad - ksize) // stride + 1
    mout = hout * wout
    s = np.zeros((hin * win, ksize * ksize * mout), np.float32)
    for kh in range(ksize):
        for kw in range(ksize):
            k = kh * ksize + kw
            for ho in range(hout):
                hi = ho * stride + kh - pad
                if hi < 0 or hi >= hin:
                    continue
                for wo in range(wout):
                    wi = wo * stride + kw - pad
                    if 0 <= wi < win:
                        s[hi * win + wi, k * mout + ho * wout + wo] = 1.0
    return jnp.asarray(s, jnp.bfloat16)


def make_selectors(H, W):
    s0 = _conv_selector_fused(H, W, 3, 2, 1)            # 16x16 -> 8x8
    h0 = (H + 2 - 3) // 2 + 1
    w0 = (W + 2 - 3) // 2 + 1
    s1 = _conv_selector_fused(h0, w0, 3, 2, 1)          # 8x8   -> 4x4
    h1 = (h0 + 2 - 3) // 2 + 1
    s2 = _conv_selector_fused(h1, h1, 3, 1, 0)          # 4x4   -> 2x2
    return {"s0": s0, "s1": s1, "s2": s2}


def make_params(key):
    """Deterministic params (f32, torch-equivalent layout).

    1x1 weights: (Cout, Cin)    == torch weight[:, :, 0, 0]
    3x3 weights: (9, Cout, Cin) with tap k = kh*3+kw == torch weight[:, :, kh, kw]
    gamma/beta : (C, 1)
    """
    ks = iter(jax.random.split(key, 10))

    def w1x1(k, cout, cin):
        return jax.random.normal(k, (cout, cin), jnp.float32) / np.sqrt(cin)

    def w3x3(k, cout, cin):
        return jax.random.normal(k, (9, cout, cin), jnp.float32) / np.sqrt(9 * cin)

    return {
        # layer0
        "w0a": w1x1(next(ks), 32, 3),
        "g0": jnp.ones((32, 1), jnp.float32), "b0": jnp.zeros((32, 1), jnp.float32),
        "w0c": w3x3(next(ks), 32, 32),
        # layer1
        "w1a": w1x1(next(ks), 64, 32),
        "g1a": jnp.ones((64, 1), jnp.float32), "b1a": jnp.zeros((64, 1), jnp.float32),
        "w1b": w1x1(next(ks), 32, 64),
        "g1b": jnp.ones((32, 1), jnp.float32), "b1b": jnp.zeros((32, 1), jnp.float32),
        "w1c": w3x3(next(ks), 32, 32),
        # layer2
        "w2a": w1x1(next(ks), 32, 32),
        "g2": jnp.ones((32, 1), jnp.float32), "b2": jnp.zeros((32, 1), jnp.float32),
        "w2c": w3x3(next(ks), 32, 32),
        # layer3
        "w3": w1x1(next(ks), 1, 32),
        "b3": 0.1 * jax.random.normal(next(ks), (1, 1), jnp.float32),
    }


def model_forward(x_nchw, p, sels):
    N, Cin, H, W = x_nchw.shape
    M_in = H * W
    x_cm = x_nchw.reshape(N, Cin, M_in)             # free reshape: NCHW is channel-major

    s0, s1, s2 = sels["s0"], sels["s1"], sels["s2"]
    M0, M1, M2 = s0.shape[1] // 9, s1.shape[1] // 9, s2.shape[1] // 9

    bf = lambda a: a.astype(jnp.bfloat16)           # MXU operands in bf16
    const_args = [
        bf(p["w0a"]), p["g0"], p["b0"], bf(p["w0c"]), s0,
        bf(p["w1a"]), p["g1a"], p["b1a"], bf(p["w1b"]), p["g1b"], p["b1b"],
        bf(p["w1c"]), s1,
        bf(p["w2a"]), p["g2"], p["b2"], bf(p["w2c"]), s2,
        bf(p["w3"]), p["b3"],
    ]

    def const_spec(a):
        return pl.BlockSpec(a.shape, lambda n, _nd=a.ndim: (0,) * _nd)

    in_specs = [pl.BlockSpec((1, Cin, M_in), lambda n: (n, 0, 0))]
    in_specs += [const_spec(a) for a in const_args]

    out_specs = [
        pl.BlockSpec((1, 32, M0), lambda n: (n, 0, 0)),
        pl.BlockSpec((1, 32, M1), lambda n: (n, 0, 0)),
        pl.BlockSpec((1, 1, M2), lambda n: (n, 0, 0)),
    ]
    out_shape = (
        jax.ShapeDtypeStruct((N, 32, M0), jnp.float32),
        jax.ShapeDtypeStruct((N, 32, M1), jnp.float32),
        jax.ShapeDtypeStruct((N, 1, M2), jnp.float32),
    )

    o1, o2, o3 = pl.pallas_call(
        functools.partial(_fused_kernel, eps=1e-5),
        out_shape=out_shape,
        grid=(N,),
        in_specs=in_specs,
        out_specs=out_specs,
        compiler_params=pltpu.CompilerParams(dimension_semantics=("parallel",)),
    )(x_cm, *const_args)

    # Outputs are already channel-major (C, H*W) == NCHW-flatten order per sample.
    return jnp.concatenate(
        [o1.reshape(N, -1), o2.reshape(N, -1), o3.reshape(N, -1)], axis=1
    )


# ----------------------------------------------------------------------------
# Plain-XLA f32 reference of the original PyTorch module (for self-check)
# ----------------------------------------------------------------------------
def reference_forward(x_nchw, p, eps=1e-5):
    dn = ("NCHW", "OIHW", "NCHW")
    hi_prec = jax.lax.Precision.HIGHEST

    def conv1x1(x, w):                              # w: (Cout, Cin)
        return jax.lax.conv_general_dilated(
            x, w[:, :, None, None], (1, 1), "VALID",
            dimension_numbers=dn, precision=hi_prec)

    def conv3x3(x, w9, stride, pad):                # w9: (9, Cout, Cin)
        cout, cin = w9.shape[1], w9.shape[2]
        w = jnp.transpose(w9.reshape(3, 3, cout, cin), (2, 3, 0, 1))
        return jax.lax.conv_general_dilated(
            x, w, (stride, stride), [(pad, pad), (pad, pad)],
            dimension_numbers=dn, precision=hi_prec)

    def gn(x, gamma, beta, groups):
        n, c, h, w = x.shape
        xg = x.reshape(n, groups, c // groups, h, w)
        m = xg.mean(axis=(2, 3, 4), keepdims=True)
        v = xg.var(axis=(2, 3, 4), keepdims=True)
        xn = ((xg - m) / jnp.sqrt(v + eps)).reshape(n, c, h, w)
        return xn * gamma.reshape(1, c, 1, 1) + beta.reshape(1, c, 1, 1)

    relu = jax.nn.relu
    h = relu(gn(conv1x1(x_nchw, p["w0a"]), p["g0"], p["b0"], 2))
    x1 = conv3x3(h, p["w0c"], 2, 1)
    h = relu(gn(conv1x1(x1, p["w1a"]), p["g1a"], p["b1a"], 2))
    h = relu(gn(conv1x1(h, p["w1b"]), p["g1b"], p["b1b"], 2))
    x2 = conv3x3(h, p["w1c"], 2, 1)
    h = relu(gn(conv1x1(x2, p["w2a"]), p["g2"], p["b2"], 2))
    x3 = conv3x3(h, p["w2c"], 1, 0)
    y1 = conv1x1(x3, p["w3"]) + p["b3"].reshape(1, 1, 1, 1)
    n = x_nchw.shape[0]
    return jnp.concatenate(
        [x1.reshape(n, -1), x2.reshape(n, -1), y1.reshape(n, -1)], axis=1)


if __name__ == "__main__":
    key = jax.random.PRNGKey(0)
    k_x, k_p = jax.random.split(key)

    N, H, W = 2, 16, 16
    x = jax.random.normal(k_x, (N, 3, H, W), dtype=jnp.float32)   # NCHW, like PyTorch

    params = make_params(k_p)
    sels = make_selectors(H, W)

    out = jax.jit(model_forward)(x, params, sels)
    out = jax.block_until_ready(out)

    # x1: (N,32,8,8)->2048, x2: (N,32,4,4)->512, y1: (N,1,2,2)->4  => 2564
    assert out.shape == (N, 32 * 8 * 8 + 32 * 4 * 4 + 1 * 2 * 2), out.shape
    assert bool(jnp.all(jnp.isfinite(out)))

    # Cross-check against the plain-XLA f32 reference of the original module.
    # (Kernel matmuls run in bf16, so allow a few-percent relative envelope.)
    ref = reference_forward(x, params)
    err = float(jnp.max(jnp.abs(out - ref)))
    scale = float(jnp.max(jnp.abs(ref)))
    assert err <= 5e-2 * max(scale, 1.0), (err, scale)

    print("KERNEL_OK")
</pallas_src>

<mosaic_0001>
module attributes {stable_mosaic.version = 11 : i64} {
  func.func @_fused_kernel(%arg0: i32, %arg1: memref<1x3x256xf32, #tpu.memory_space<vmem>>, %arg2: memref<32x3xbf16, #tpu.memory_space<vmem>>, %arg3: memref<32x1xf32, #tpu.memory_space<vmem>>, %arg4: memref<32x1xf32, #tpu.memory_space<vmem>>, %arg5: memref<9x32x32xbf16, #tpu.memory_space<vmem>>, %arg6: memref<256x576xbf16, #tpu.memory_space<vmem>>, %arg7: memref<64x32xbf16, #tpu.memory_space<vmem>>, %arg8: memref<64x1xf32, #tpu.memory_space<vmem>>, %arg9: memref<64x1xf32, #tpu.memory_space<vmem>>, %arg10: memref<32x64xbf16, #tpu.memory_space<vmem>>, %arg11: memref<32x1xf32, #tpu.memory_space<vmem>>, %arg12: memref<32x1xf32, #tpu.memory_space<vmem>>, %arg13: memref<9x32x32xbf16, #tpu.memory_space<vmem>>, %arg14: memref<64x144xbf16, #tpu.memory_space<vmem>>, %arg15: memref<32x32xbf16, #tpu.memory_space<vmem>>, %arg16: memref<32x1xf32, #tpu.memory_space<vmem>>, %arg17: memref<32x1xf32, #tpu.memory_space<vmem>>, %arg18: memref<9x32x32xbf16, #tpu.memory_space<vmem>>, %arg19: memref<16x36xbf16, #tpu.memory_space<vmem>>, %arg20: memref<1x32xbf16, #tpu.memory_space<vmem>>, %arg21: memref<1x1xf32, #tpu.memory_space<vmem>>, %arg22: memref<1x32x64xf32, #tpu.memory_space<vmem>>, %arg23: memref<1x32x16xf32, #tpu.memory_space<vmem>>, %arg24: memref<1x1x4xf32, #tpu.memory_space<vmem>>) attributes {dimension_semantics = [#tpu.dimension_semantics<parallel>], iteration_bounds = array<i64: 2>, scalar_prefetch = 0 : i64, scratch_operands = 0 : i64, tpu.core_type = #tpu.core_type<tc>, window_params = [{transform_indices = @transform_0, window_bounds = array<i64: 1, 3, 256>}, {pipeline_mode = #tpu.pipeline_mode<synchronous>, transform_indices = @transform_1, window_bounds = array<i64: 32, 3>}, {pipeline_mode = #tpu.pipeline_mode<synchronous>, transform_indices = @transform_2, window_bounds = array<i64: 32, 1>}, {pipeline_mode = #tpu.pipeline_mode<synchronous>, transform_indices = @transform_3, window_bounds = array<i64: 32, 1>}, {pipeline_mode = #tpu.pipeline_mode<synchronous>, transform_indices = @transform_4, window_bounds = array<i64: 9, 32, 32>}, {pipeline_mode = #tpu.pipeline_mode<synchronous>, transform_indices = @transform_5, window_bounds = array<i64: 256, 576>}, {pipeline_mode = #tpu.pipeline_mode<synchronous>, transform_indices = @transform_6, window_bounds = array<i64: 64, 32>}, {pipeline_mode = #tpu.pipeline_mode<synchronous>, transform_indices = @transform_7, window_bounds = array<i64: 64, 1>}, {pipeline_mode = #tpu.pipeline_mode<synchronous>, transform_indices = @transform_8, window_bounds = array<i64: 64, 1>}, {pipeline_mode = #tpu.pipeline_mode<synchronous>, transform_indices = @transform_9, window_bounds = array<i64: 32, 64>}, {pipeline_mode = #tpu.pipeline_mode<synchronous>, transform_indices = @transform_10, window_bounds = array<i64: 32, 1>}, {pipeline_mode = #tpu.pipeline_mode<synchronous>, transform_indices = @transform_11, window_bounds = array<i64: 32, 1>}, {pipeline_mode = #tpu.pipeline_mode<synchronous>, transform_indices = @transform_12, window_bounds = array<i64: 9, 32, 32>}, {pipeline_mode = #tpu.pipeline_mode<synchronous>, transform_indices = @transform_13, window_bounds = array<i64: 64, 144>}, {pipeline_mode = #tpu.pipeline_mode<synchronous>, transform_indices = @transform_14, window_bounds = array<i64: 32, 32>}, {pipeline_mode = #tpu.pipeline_mode<synchronous>, transform_indices = @transform_15, window_bounds = array<i64: 32, 1>}, {pipeline_mode = #tpu.pipeline_mode<synchronous>, transform_indices = @transform_16, window_bounds = array<i64: 32, 1>}, {pipeline_mode = #tpu.pipeline_mode<synchronous>, transform_indices = @transform_17, window_bounds = array<i64: 9, 32, 32>}, {pipeline_mode = #tpu.pipeline_mode<synchronous>, transform_indices = @transform_18, window_bounds = array<i64: 16, 36>}, {pipeline_mode = #tpu.pipeline_mode<synchronous>, transform_indices = @transform_19, window_bounds = array<i64: 1, 32>}, {pipeline_mode = #tpu.pipeline_mode<synchronous>, transform_indices = @transform_20, window_bounds = array<i64: 1, 1>}, {transform_indices = @transform_21, window_bounds = array<i64: 1, 32, 64>}, {transform_indices = @transform_22, window_bounds = array<i64: 1, 32, 16>}, {transform_indices = @transform_23, window_bounds = array<i64: 1, 1, 4>}]} {
    %c0 = arith.constant 0 : index
    %c0_0 = arith.constant 0 : index
    %c0_1 = arith.constant 0 : index
    %0 = vector.load %arg1[%c0, %c0_0, %c0_1] : memref<1x3x256xf32, #tpu.memory_space<vmem>>, vector<1x3x256xf32>
    %1 = vector.shape_cast %0 : vector<1x3x256xf32> to vector<3x256xf32>
    %2 = arith.truncf %1 : vector<3x256xf32> to vector<3x256xbf16>
    %c0_2 = arith.constant 0 : index
    %c0_3 = arith.constant 0 : index
    %3 = vector.load %arg2[%c0_2, %c0_3] : memref<32x3xbf16, #tpu.memory_space<vmem>>, vector<32x3xbf16>
    %cst = arith.constant dense<0.000000e+00> : vector<32x256xf32>
    %4 = tpu.matmul %3, %2, %cst {dimension_numbers = #tpu.dot_dimension_numbers<[1], [0], [0], [1], [0, 0, 1, 1], [], []>} : vector<32x3xbf16>, vector<3x256xbf16>, vector<32x256xf32> -> vector<32x256xf32>
    %c0_4 = arith.constant 0 : index
    %c0_5 = arith.constant 0 : index
    %5 = vector.load %arg3[%c0_4, %c0_5] : memref<32x1xf32, #tpu.memory_space<vmem>>, vector<32x1xf32>
    %c0_6 = arith.constant 0 : index
    %c0_7 = arith.constant 0 : index
    %6 = vector.load %arg4[%c0_6, %c0_7] : memref<32x1xf32, #tpu.memory_space<vmem>>, vector<32x1xf32>
    %cst_8 = arith.constant dense<0.000000e+00> : vector<32xf32>
    %7 = vector.multi_reduction <add>, %4, %cst_8 [1] : vector<32x256xf32> to vector<32xf32>
    %8 = vector.shape_cast %7 : vector<32xf32> to vector<32x1xf32>
    %9 = arith.mulf %4, %4 : vector<32x256xf32>
    %cst_9 = arith.constant dense<0.000000e+00> : vector<32xf32>
    %10 = vector.multi_reduction <add>, %9, %cst_9 [1] : vector<32x256xf32> to vector<32xf32>
    %11 = vector.shape_cast %10 : vector<32xf32> to vector<32x1xf32>
    %12 = vector.extract_strided_slice %8 {offsets = [0, 0], sizes = [16, 1], strides = [1, 1]} : vector<32x1xf32> to vector<16x1xf32>
    %13 = vector.shape_cast %12 : vector<16x1xf32> to vector<1x16x1xf32>
    %cst_10 = arith.constant dense<0.000000e+00> : vector<1xf32>
    %14 = vector.multi_reduction <add>, %13, %cst_10 [1, 2] : vector<1x16x1xf32> to vector<1xf32>
    %15 = vector.shape_cast %14 : vector<1xf32> to vector<1x1x1xf32>
    %16 = vector.extract %15[0, 0, 0] : f32 from vector<1x1x1xf32>
    %17 = vector.extract_strided_slice %11 {offsets = [0, 0], sizes = [16, 1], strides = [1, 1]} : vector<32x1xf32> to vector<16x1xf32>
    %18 = vector.shape_cast %17 : vector<16x1xf32> to vector<1x16x1xf32>
    %cst_11 = arith.constant dense<0.000000e+00> : vector<1xf32>
    %19 = vector.multi_reduction <add>, %18, %cst_11 [1, 2] : vector<1x16x1xf32> to vector<1xf32>
    %20 = vector.shape_cast %19 : vector<1xf32> to vector<1x1x1xf32>
    %21 = vector.extract %20[0, 0, 0] : f32 from vector<1x1x1xf32>
    %cst_12 = arith.constant 4.096000e+03 : f32
    %22 = arith.divf %16, %cst_12 : f32
    %cst_13 = arith.constant 4.096000e+03 : f32
    %23 = arith.divf %21, %cst_13 : f32
    %24 = arith.mulf %22, %22 : f32
    %25 = arith.subf %23, %24 : f32
    %cst_14 = arith.constant 0.000000e+00 : f32
    %26 = arith.maximumf %25, %cst_14 : f32
    %cst_15 = arith.constant 9.99999974E-6 : f32
    %27 = arith.addf %26, %cst_15 : f32
    %28 = math.rsqrt %27 : f32
    %29 = vector.extract_strided_slice %8 {offsets = [16, 0], sizes = [16, 1], strides = [1, 1]} : vector<32x1xf32> to vector<16x1xf32>
    %30 = vector.shape_cast %29 : vector<16x1xf32> to vector<1x16x1xf32>
    %cst_16 = arith.constant dense<0.000000e+00> : vector<1xf32>
    %31 = vector.multi_reduction <add>, %30, %cst_16 [1, 2] : vector<1x16x1xf32> to vector<1xf32>
    %32 = vector.shape_cast %31 : vector<1xf32> to vector<1x1x1xf32>
    %33 = vector.extract %32[0, 0, 0] : f32 from vector<1x1x1xf32>
    %34 = vector.extract_strided_slice %11 {offsets = [16, 0], sizes = [16, 1], strides = [1, 1]} : vector<32x1xf32> to vector<16x1xf32>
    %35 = vector.shape_cast %34 : vector<16x1xf32> to vector<1x16x1xf32>
    %cst_17 = arith.constant dense<0.000000e+00> : vector<1xf32>
    %36 = vector.multi_reduction <add>, %35, %cst_17 [1, 2] : vector<1x16x1xf32> to vector<1xf32>
    %37 = vector.shape_cast %36 : vector<1xf32> to vector<1x1x1xf32>
    %38 = vector.extract %37[0, 0, 0] : f32 from vector<1x1x1xf32>
    %cst_18 = arith.constant 4.096000e+03 : f32
    %39 = arith.divf %33, %cst_18 : f32
    %cst_19 = arith.constant 4.096000e+03 : f32
    %40 = arith.divf %38, %cst_19 : f32
    %41 = arith.mulf %39, %39 : f32
    %42 = arith.subf %40, %41 : f32
    %cst_20 = arith.constant 0.000000e+00 : f32
    %43 = arith.maximumf %42, %cst_20 : f32
    %cst_21 = arith.constant 9.99999974E-6 : f32
    %44 = arith.addf %43, %cst_21 : f32
    %45 = math.rsqrt %44 : f32
    %46 = tpu.iota {dimensions = array<i32: 0>} : vector<32x1xi32>
    %c16_i32 = arith.constant 16 : i32
    %47 = vector.broadcast %c16_i32 : i32 to vector<32x1xi32>
    %48 = arith.cmpi slt, %46, %47 : vector<32x1xi32>
    %49 = vector.broadcast %22 : f32 to vector<32x1xf32>
    %50 = vector.broadcast %39 : f32 to vector<32x1xf32>
    %51 = arith.select %48, %49, %50 : vector<32x1xi1>, vector<32x1xf32>
    %52 = vector.broadcast %28 : f32 to vector<32x1xf32>
    %53 = vector.broadcast %45 : f32 to vector<32x1xf32>
    %54 = arith.select %48, %52, %53 : vector<32x1xi1>, vector<32x1xf32>
    %55 = vector.broadcast %51 : vector<32x1xf32> to vector<32x256xf32>
    %56 = arith.subf %4, %55 : vector<32x256xf32>
    %57 = arith.mulf %54, %5 : vector<32x1xf32>
    %58 = vector.broadcast %57 : vector<32x1xf32> to vector<32x256xf32>
    %59 = arith.mulf %56, %58 : vector<32x256xf32>
    %60 = vector.broadcast %6 : vector<32x1xf32> to vector<32x256xf32>
    %61 = arith.addf %59, %60 : vector<32x256xf32>
    %cst_22 = arith.constant 0.000000e+00 : f32
    %62 = vector.broadcast %cst_22 : f32 to vector<32x256xf32>
    %63 = arith.maximumf %61, %62 : vector<32x256xf32>
    %64 = arith.truncf %63 : vector<32x256xf32> to vector<32x256xbf16>
    %c0_23 = arith.constant 0 : index
    %c0_24 = arith.constant 0 : index
    %65 = vector.load %arg6[%c0_23, %c0_24] : memref<256x576xbf16, #tpu.memory_space<vmem>>, vector<256x576xbf16>
    %cst_25 = arith.constant dense<0.000000e+00> : vector<32x576xf32>
    %66 = tpu.matmul %64, %65, %cst_25 {dimension_numbers = #tpu.dot_dimension_numbers<[1], [0], [0], [1], [0, 0, 1, 1], [], []>} : vector<32x256xbf16>, vector<256x576xbf16>, vector<32x576xf32> -> vector<32x576xf32>
    %67 = arith.truncf %66 : vector<32x576xf32> to vector<32x576xbf16>
    %c0_26 = arith.constant 0 : index
    %c0_27 = arith.constant 0 : index
    %c0_28 = arith.constant 0 : index
    %68 = vector.load %arg5[%c0_26, %c0_27, %c0_28] : memref<9x32x32xbf16, #tpu.memory_space<vmem>>, vector<1x32x32xbf16>
    %69 = vector.shape_cast %68 : vector<1x32x32xbf16> to vector<32x32xbf16>
    %70 = vector.extract_strided_slice %67 {offsets = [0, 0], sizes = [32, 64], strides = [1, 1]} : vector<32x576xbf16> to vector<32x64xbf16>
    %cst_29 = arith.constant dense<0.000000e+00> : vector<32x64xf32>
    %71 = tpu.matmul %69, %70, %cst_29 {dimension_numbers = #tpu.dot_dimension_numbers<[1], [0], [0], [1], [0, 0, 1, 1], [], []>} : vector<32x32xbf16>, vector<32x64xbf16>, vector<32x64xf32> -> vector<32x64xf32>
    %c1 = arith.constant 1 : index
    %c0_30 = arith.constant 0 : index
    %c0_31 = arith.constant 0 : index
    %72 = vector.load %arg5[%c1, %c0_30, %c0_31] : memref<9x32x32xbf16, #tpu.memory_space<vmem>>, vector<1x32x32xbf16>
    %73 = vector.shape_cast %72 : vector<1x32x32xbf16> to vector<32x32xbf16>
    %74 = vector.extract_strided_slice %67 {offsets = [0, 64], sizes = [32, 64], strides = [1, 1]} : vector<32x576xbf16> to vector<32x64xbf16>
    %cst_32 = arith.constant dense<0.000000e+00> : vector<32x64xf32>
    %75 = tpu.matmul %73, %74, %cst_32 {dimension_numbers = #tpu.dot_dimension_numbers<[1], [0], [0], [1], [0, 0, 1, 1], [], []>} : vector<32x32xbf16>, vector<32x64xbf16>, vector<32x64xf32> -> vector<32x64xf32>
    %76 = arith.addf %71, %75 : vector<32x64xf32>
    %c2 = arith.constant 2 : index
    %c0_33 = arith.constant 0 : index
    %c0_34 = arith.constant 0 : index
    %77 = vector.load %arg5[%c2, %c0_33, %c0_34] : memref<9x32x32xbf16, #tpu.memory_space<vmem>>, vector<1x32x32xbf16>
    %78 = vector.shape_cast %77 : vector<1x32x32xbf16> to vector<32x32xbf16>
    %79 = vector.extract_strided_slice %67 {offsets = [0, 128], sizes = [32, 64], strides = [1, 1]} : vector<32x576xbf16> to vector<32x64xbf16>
    %cst_35 = arith.constant dense<0.000000e+00> : vector<32x64xf32>
    %80 = tpu.matmul %78, %79, %cst_35 {dimension_numbers = #tpu.dot_dimension_numbers<[1], [0], [0], [1], [0, 0, 1, 1], [], []>} : vector<32x32xbf16>, vector<32x64xbf16>, vector<32x64xf32> -> vector<32x64xf32>
    %81 = arith.addf %76, %80 : vector<32x64xf32>
    %c3 = arith.constant 3 : index
    %c0_36 = arith.constant 0 : index
    %c0_37 = arith.constant 0 : index
    %82 = vector.load %arg5[%c3, %c0_36, %c0_37] : memref<9x32x32xbf16, #tpu.memory_space<vmem>>, vector<1x32x32xbf16>
    %83 = vector.shape_cast %82 : vector<1x32x32xbf16> to vector<32x32xbf16>
    %84 = vector.extract_strided_slice %67 {offsets = [0, 192], sizes = [32, 64], strides = [1, 1]} : vector<32x576xbf16> to vector<32x64xbf16>
    %cst_38 = arith.constant dense<0.000000e+00> : vector<32x64xf32>
    %85 = tpu.matmul %83, %84, %cst_38 {dimension_numbers = #tpu.dot_dimension_numbers<[1], [0], [0], [1], [0, 0, 1, 1], [], []>} : vector<32x32xbf16>, vector<32x64xbf16>, vector<32x64xf32> -> vector<32x64xf32>
    %86 = arith.addf %81, %85 : vector<32x64xf32>
    %c4 = arith.constant 4 : index
    %c0_39 = arith.constant 0 : index
    %c0_40 = arith.constant 0 : index
    %87 = vector.load %arg5[%c4, %c0_39, %c0_40] : memref<9x32x32xbf16, #tpu.memory_space<vmem>>, vector<1x32x32xbf16>
    %88 = vector.shape_cast %87 : vector<1x32x32xbf16> to vector<32x32xbf16>
    %89 = vector.extract_strided_slice %67 {offsets = [0, 256], sizes = [32, 64], strides = [1, 1]} : vector<32x576xbf16> to vector<32x64xbf16>
    %cst_41 = arith.constant dense<0.000000e+00> : vector<32x64xf32>
    %90 = tpu.matmul %88, %89, %cst_41 {dimension_numbers = #tpu.dot_dimension_numbers<[1], [0], [0], [1], [0, 0, 1, 1], [], []>} : vector<32x32xbf16>, vector<32x64xbf16>, vector<32x64xf32> -> vector<32x64xf32>
    %91 = arith.addf %86, %90 : vector<32x64xf32>
    %c5 = arith.constant 5 : index
    %c0_42 = arith.constant 0 : index
    %c0_43 = arith.constant 0 : index
    %92 = vector.load %arg5[%c5, %c0_42, %c0_43] : memref<9x32x32xbf16, #tpu.memory_space<vmem>>, vector<1x32x32xbf16>
    %93 = vector.shape_cast %92 : vector<1x32x32xbf16> to vector<32x32xbf16>
    %94 = vector.extract_strided_slice %67 {offsets = [0, 320], sizes = [32, 64], strides = [1, 1]} : vector<32x576xbf16> to vector<32x64xbf16>
    %cst_44 = arith.constant dense<0.000000e+00> : vector<32x64xf32>
    %95 = tpu.matmul %93, %94, %cst_44 {dimension_numbers = #tpu.dot_dimension_numbers<[1], [0], [0], [1], [0, 0, 1, 1], [], []>} : vector<32x32xbf16>, vector<32x64xbf16>, vector<32x64xf32> -> vector<32x64xf32>
    %96 = arith.addf %91, %95 : vector<32x64xf32>
    %c6 = arith.constant 6 : index
    %c0_45 = arith.constant 0 : index
    %c0_46 = arith.constant 0 : index
    %97 = vector.load %arg5[%c6, %c0_45, %c0_46] : memref<9x32x32xbf16, #tpu.memory_space<vmem>>, vector<1x32x32xbf16>
    %98 = vector.shape_cast %97 : vector<1x32x32xbf16> to vector<32x32xbf16>
    %99 = vector.extract_strided_slice %67 {offsets = [0, 384], sizes = [32, 64], strides = [1, 1]} : vector<32x576xbf16> to vector<32x64xbf16>
    %cst_47 = arith.constant dense<0.000000e+00> : vector<32x64xf32>
    %100 = tpu.matmul %98, %99, %cst_47 {dimension_numbers = #tpu.dot_dimension_numbers<[1], [0], [0], [1], [0, 0, 1, 1], [], []>} : vector<32x32xbf16>, vector<32x64xbf16>, vector<32x64xf32> -> vector<32x64xf32>
    %101 = arith.addf %96, %100 : vector<32x64xf32>
    %c7 = arith.constant 7 : index
    %c0_48 = arith.constant 0 : index
    %c0_49 = arith.constant 0 : index
    %102 = vector.load %arg5[%c7, %c0_48, %c0_49] : memref<9x32x32xbf16, #tpu.memory_space<vmem>>, vector<1x32x32xbf16>
    %103 = vector.shape_cast %102 : vector<1x32x32xbf16> to vector<32x32xbf16>
    %104 = vector.extract_strided_slice %67 {offsets = [0, 448], sizes = [32, 64], strides = [1, 1]} : vector<32x576xbf16> to vector<32x64xbf16>
    %cst_50 = arith.constant dense<0.000000e+00> : vector<32x64xf32>
    %105 = tpu.matmul %103, %104, %cst_50 {dimension_numbers = #tpu.dot_dimension_numbers<[1], [0], [0], [1], [0, 0, 1, 1], [], []>} : vector<32x32xbf16>, vector<32x64xbf16>, vector<32x64xf32> -> vector<32x64xf32>
    %106 = arith.addf %101, %105 : vector<32x64xf32>
    %c8 = arith.constant 8 : index
    %c0_51 = arith.constant 0 : index
    %c0_52 = arith.constant 0 : index
    %107 = vector.load %arg5[%c8, %c0_51, %c0_52] : memref<9x32x32xbf16, #tpu.memory_space<vmem>>, vector<1x32x32xbf16>
    %108 = vector.shape_cast %107 : vector<1x32x32xbf16> to vector<32x32xbf16>
    %109 = vector.extract_strided_slice %67 {offsets = [0, 512], sizes = [32, 64], strides = [1, 1]} : vector<32x576xbf16> to vector<32x64xbf16>
    %cst_53 = arith.constant dense<0.000000e+00> : vector<32x64xf32>
    %110 = tpu.matmul %108, %109, %cst_53 {dimension_numbers = #tpu.dot_dimension_numbers<[1], [0], [0], [1], [0, 0, 1, 1], [], []>} : vector<32x32xbf16>, vector<32x64xbf16>, vector<32x64xf32> -> vector<32x64xf32>
    %111 = arith.addf %106, %110 : vector<32x64xf32>
    %c0_54 = arith.constant 0 : index
    %c0_55 = arith.constant 0 : index
    %c0_56 = arith.constant 0 : index
    %112 = vector.load %arg22[%c0_54, %c0_55, %c0_56] : memref<1x32x64xf32, #tpu.memory_space<vmem>>, vector<1x32x64xf32>
    %113 = vector.shape_cast %112 : vector<1x32x64xf32> to vector<32x64xf32>
    %114 = vector.shape_cast %111 : vector<32x64xf32> to vector<1x32x64xf32>
    tpu.vector_store %arg22[%c0_54, %c0_55, %c0_56], %114 {strides = array<i32>} : memref<1x32x64xf32, #tpu.memory_space<vmem>>, vector<1x32x64xf32>,
    %c0_57 = arith.constant 0 : index
    %c0_58 = arith.constant 0 : index
    %115 = vector.load %arg7[%c0_57, %c0_58] : memref<64x32xbf16, #tpu.memory_space<vmem>>, vector<64x32xbf16>
    %116 = arith.truncf %111 : vector<32x64xf32> to vector<32x64xbf16>
    %cst_59 = arith.constant dense<0.000000e+00> : vector<64x64xf32>
    %117 = tpu.matmul %115, %116, %cst_59 {dimension_numbers = #tpu.dot_dimension_numbers<[1], [0], [0], [1], [0, 0, 1, 1], [], []>} : vector<64x32xbf16>, vector<32x64xbf16>, vector<64x64xf32> -> vector<64x64xf32>
    %c0_60 = arith.constant 0 : index
    %c0_61 = arith.constant 0 : index
    %118 = vector.load %arg8[%c0_60, %c0_61] : memref<64x1xf32, #tpu.memory_space<vmem>>, vector<64x1xf32>
    %c0_62 = arith.constant 0 : index
    %c0_63 = arith.constant 0 : index
    %119 = vector.load %arg9[%c0_62, %c0_63] : memref<64x1xf32, #tpu.memory_space<vmem>>, vector<64x1xf32>
    %cst_64 = arith.constant dense<0.000000e+00> : vector<64xf32>
    %120 = vector.multi_reduction <add>, %117, %cst_64 [1] : vector<64x64xf32> to vector<64xf32>
    %121 = vector.shape_cast %120 : vector<64xf32> to vector<64x1xf32>
    %122 = arith.mulf %117, %117 : vector<64x64xf32>
    %cst_65 = arith.constant dense<0.000000e+00> : vector<64xf32>
    %123 = vector.multi_reduction <add>, %122, %cst_65 [1] : vector<64x64xf32> to vector<64xf32>
    %124 = vector.shape_cast %123 : vector<64xf32> to vector<64x1xf32>
    %125 = vector.extract_strided_slice %121 {offsets = [0, 0], sizes = [32, 1], strides = [1, 1]} : vector<64x1xf32> to vector<32x1xf32>
    %126 = vector.shape_cast %125 : vector<32x1xf32> to vector<1x32x1xf32>
    %cst_66 = arith.constant dense<0.000000e+00> : vector<1xf32>
    %127 = vector.multi_reduction <add>, %126, %cst_66 [1, 2] : vector<1x32x1xf32> to vector<1xf32>
    %128 = vector.shape_cast %127 : vector<1xf32> to vector<1x1x1xf32>
    %129 = vector.extract %128[0, 0, 0] : f32 from vector<1x1x1xf32>
    %130 = vector.extract_strided_slice %124 {offsets = [0, 0], sizes = [32, 1], strides = [1, 1]} : vector<64x1xf32> to vector<32x1xf32>
    %131 = vector.shape_cast %130 : vector<32x1xf32> to vector<1x32x1xf32>
    %cst_67 = arith.constant dense<0.000000e+00> : vector<1xf32>
    %132 = vector.multi_reduction <add>, %131, %cst_67 [1, 2] : vector<1x32x1xf32> to vector<1xf32>
    %133 = vector.shape_cast %132 : vector<1xf32> to vector<1x1x1xf32>
    %134 = vector.extract %133[0, 0, 0] : f32 from vector<1x1x1xf32>
    %cst_68 = arith.constant 2.048000e+03 : f32
    %135 = arith.divf %129, %cst_68 : f32
    %cst_69 = arith.constant 2.048000e+03 : f32
    %136 = arith.divf %134, %cst_69 : f32
    %137 = arith.mulf %135, %135 : f32
    %138 = arith.subf %136, %137 : f32
    %cst_70 = arith.constant 0.000000e+00 : f32
    %139 = arith.maximumf %138, %cst_70 : f32
    %cst_71 = arith.constant 9.99999974E-6 : f32
    %140 = arith.addf %139, %cst_71 : f32
    %141 = math.rsqrt %140 : f32
    %142 = vector.extract_strided_slice %121 {offsets = [32, 0], sizes = [32, 1], strides = [1, 1]} : vector<64x1xf32> to vector<32x1xf32>
    %143 = vector.shape_cast %142 : vector<32x1xf32> to vector<1x32x1xf32>
    %cst_72 = arith.constant dense<0.000000e+00> : vector<1xf32>
    %144 = vector.multi_reduction <add>, %143, %cst_72 [1, 2] : vector<1x32x1xf32> to vector<1xf32>
    %145 = vector.shape_cast %144 : vector<1xf32> to vector<1x1x1xf32>
    %146 = vector.extract %145[0, 0, 0] : f32 from vector<1x1x1xf32>
    %147 = vector.extract_strided_slice %124 {offsets = [32, 0], sizes = [32, 1], strides = [1, 1]} : vector<64x1xf32> to vector<32x1xf32>
    %148 = vector.shape_cast %147 : vector<32x1xf32> to vector<1x32x1xf32>
    %cst_73 = arith.constant dense<0.000000e+00> : vector<1xf32>
    %149 = vector.multi_reduction <add>, %148, %cst_73 [1, 2] : vector<1x32x1xf32> to vector<1xf32>
    %150 = vector.shape_cast %149 : vector<1xf32> to vector<1x1x1xf32>
    %151 = vector.extract %150[0, 0, 0] : f32 from vector<1x1x1xf32>
    %cst_74 = arith.constant 2.048000e+03 : f32
    %152 = arith.divf %146, %cst_74 : f32
    %cst_75 = arith.constant 2.048000e+03 : f32
    %153 = arith.divf %151, %cst_75 : f32
    %154 = arith.mulf %152, %152 : f32
    %155 = arith.subf %153, %154 : f32
    %cst_76 = arith.constant 0.000000e+00 : f32
    %156 = arith.maximumf %155, %cst_76 : f32
    %cst_77 = arith.constant 9.99999974E-6 : f32
    %157 = arith.addf %156, %cst_77 : f32
    %158 = math.rsqrt %157 : f32
    %159 = tpu.iota {dimensions = array<i32: 0>} : vector<64x1xi32>
    %c32_i32 = arith.constant 32 : i32
    %160 = vector.broadcast %c32_i32 : i32 to vector<64x1xi32>
    %161 = arith.cmpi slt, %159, %160 : vector<64x1xi32>
    %162 = vector.broadcast %135 : f32 to vector<64x1xf32>
    %163 = vector.broadcast %152 : f32 to vector<64x1xf32>
    %164 = arith.select %161, %162, %163 : vector<64x1xi1>, vector<64x1xf32>
    %165 = vector.broadcast %141 : f32 to vector<64x1xf32>
    %166 = vector.broadcast %158 : f32 to vector<64x1xf32>
    %167 = arith.select %161, %165, %166 : vector<64x1xi1>, vector<64x1xf32>
    %168 = vector.broadcast %164 : vector<64x1xf32> to vector<64x64xf32>
    %169 = arith.subf %117, %168 : vector<64x64xf32>
    %170 = arith.mulf %167, %118 : vector<64x1xf32>
    %171 = vector.broadcast %170 : vector<64x1xf32> to vector<64x64xf32>
    %172 = arith.mulf %169, %171 : vector<64x64xf32>
    %173 = vector.broadcast %119 : vector<64x1xf32> to vector<64x64xf32>
    %174 = arith.addf %172, %173 : vector<64x64xf32>
    %cst_78 = arith.constant 0.000000e+00 : f32
    %175 = vector.broadcast %cst_78 : f32 to vector<64x64xf32>
    %176 = arith.maximumf %174, %175 : vector<64x64xf32>
    %c0_79 = arith.constant 0 : index
    %c0_80 = arith.constant 0 : index
    %177 = vector.load %arg10[%c0_79, %c0_80] : memref<32x64xbf16, #tpu.memory_space<vmem>>, vector<32x64xbf16>
    %178 = arith.truncf %176 : vector<64x64xf32> to vector<64x64xbf16>
    %cst_81 = arith.constant dense<0.000000e+00> : vector<32x64xf32>
    %179 = tpu.matmul %177, %178, %cst_81 {dimension_numbers = #tpu.dot_dimension_numbers<[1], [0], [0], [1], [0, 0, 1, 1], [], []>} : vector<32x64xbf16>, vector<64x64xbf16>, vector<32x64xf32> -> vector<32x64xf32>
    %c0_82 = arith.constant 0 : index
    %c0_83 = arith.constant 0 : index
    %180 = vector.load %arg11[%c0_82, %c0_83] : memref<32x1xf32, #tpu.memory_space<vmem>>, vector<32x1xf32>
    %c0_84 = arith.constant 0 : index
    %c0_85 = arith.constant 0 : index
    %181 = vector.load %arg12[%c0_84, %c0_85] : memref<32x1xf32, #tpu.memory_space<vmem>>, vector<32x1xf32>
    %cst_86 = arith.constant dense<0.000000e+00> : vector<32xf32>
    %182 = vector.multi_reduction <add>, %179, %cst_86 [1] : vector<32x64xf32> to vector<32xf32>
    %183 = vector.shape_cast %182 : vector<32xf32> to vector<32x1xf32>
    %184 = arith.mulf %179, %179 : vector<32x64xf32>
    %cst_87 = arith.constant dense<0.000000e+00> : vector<32xf32>
    %185 = vector.multi_reduction <add>, %184, %cst_87 [1] : vector<32x64xf32> to vector<32xf32>
    %186 = vector.shape_cast %185 : vector<32xf32> to vector<32x1xf32>
    %187 = vector.extract_strided_slice %183 {offsets = [0, 0], sizes = [16, 1], strides = [1, 1]} : vector<32x1xf32> to vector<16x1xf32>
    %188 = vector.shape_cast %187 : vector<16x1xf32> to vector<1x16x1xf32>
    %cst_88 = arith.constant dense<0.000000e+00> : vector<1xf32>
    %189 = vector.multi_reduction <add>, %188, %cst_88 [1, 2] : vector<1x16x1xf32> to vector<1xf32>
    %190 = vector.shape_cast %189 : vector<1xf32> to vector<1x1x1xf32>
    %191 = vector.extract %190[0, 0, 0] : f32 from vector<1x1x1xf32>
    %192 = vector.extract_strided_slice %186 {offsets = [0, 0], sizes = [16, 1], strides = [1, 1]} : vector<32x1xf32> to vector<16x1xf32>
    %193 = vector.shape_cast %192 : vector<16x1xf32> to vector<1x16x1xf32>
    %cst_89 = arith.constant dense<0.000000e+00> : vector<1xf32>
    %194 = vector.multi_reduction <add>, %193, %cst_89 [1, 2] : vector<1x16x1xf32> to vector<1xf32>
    %195 = vector.shape_cast %194 : vector<1xf32> to vector<1x1x1xf32>
    %196 = vector.extract %195[0, 0, 0] : f32 from vector<1x1x1xf32>
    %cst_90 = arith.constant 1.024000e+03 : f32
    %197 = arith.divf %191, %cst_90 : f32
    %cst_91 = arith.constant 1.024000e+03 : f32
    %198 = arith.divf %196, %cst_91 : f32
    %199 = arith.mulf %197, %197 : f32
    %200 = arith.subf %198, %199 : f32
    %cst_92 = arith.constant 0.000000e+00 : f32
    %201 = arith.maximumf %200, %cst_92 : f32
    %cst_93 = arith.constant 9.99999974E-6 : f32
    %202 = arith.addf %201, %cst_93 : f32
    %203 = math.rsqrt %202 : f32
    %204 = vector.extract_strided_slice %183 {offsets = [16, 0], sizes = [16, 1], strides = [1, 1]} : vector<32x1xf32> to vector<16x1xf32>
    %205 = vector.shape_cast %204 : vector<16x1xf32> to vector<1x16x1xf32>
    %cst_94 = arith.constant dense<0.000000e+00> : vector<1xf32>
    %206 = vector.multi_reduction <add>, %205, %cst_94 [1, 2] : vector<1x16x1xf32> to vector<1xf32>
    %207 = vector.shape_cast %206 : vector<1xf32> to vector<1x1x1xf32>
    %208 = vector.extract %207[0, 0, 0] : f32 from vector<1x1x1xf32>
    %209 = vector.extract_strided_slice %186 {offsets = [16, 0], sizes = [16, 1], strides = [1, 1]} : vector<32x1xf32> to vector<16x1xf32>
    %210 = vector.shape_cast %209 : vector<16x1xf32> to vector<1x16x1xf32>
    %cst_95 = arith.constant dense<0.000000e+00> : vector<1xf32>
    %211 = vector.multi_reduction <add>, %210, %cst_95 [1, 2] : vector<1x16x1xf32> to vector<1xf32>
    %212 = vector.shape_cast %211 : vector<1xf32> to vector<1x1x1xf32>
    %213 = vector.extract %212[0, 0, 0] : f32 from vector<1x1x1xf32>
    %cst_96 = arith.constant 1.024000e+03 : f32
    %214 = arith.divf %208, %cst_96 : f32
    %cst_97 = arith.constant 1.024000e+03 : f32
    %215 = arith.divf %213, %cst_97 : f32
    %216 = arith.mulf %214, %214 : f32
    %217 = arith.subf %215, %216 : f32
    %cst_98 = arith.constant 0.000000e+00 : f32
    %218 = arith.maximumf %217, %cst_98 : f32
    %cst_99 = arith.constant 9.99999974E-6 : f32
    %219 = arith.addf %218, %cst_99 : f32
    %220 = math.rsqrt %219 : f32
    %221 = tpu.iota {dimensions = array<i32: 0>} : vector<32x1xi32>
    %c16_i32_100 = arith.constant 16 : i32
    %222 = vector.broadcast %c16_i32_100 : i32 to vector<32x1xi32>
    %223 = arith.cmpi slt, %221, %222 : vector<32x1xi32>
    %224 = vector.broadcast %197 : f32 to vector<32x1xf32>
    %225 = vector.broadcast %214 : f32 to vector<32x1xf32>
    %226 = arith.select %223, %224, %225 : vector<32x1xi1>, vector<32x1xf32>
    %227 = vector.broadcast %203 : f32 to vector<32x1xf32>
    %228 = vector.broadcast %220 : f32 to vector<32x1xf32>
    %229 = arith.select %223, %227, %228 : vector<32x1xi1>, vector<32x1xf32>
    %230 = vector.broadcast %226 : vector<32x1xf32> to vector<32x64xf32>
    %231 = arith.subf %179, %230 : vector<32x64xf32>
    %232 = arith.mulf %229, %180 : vector<32x1xf32>
    %233 = vector.broadcast %232 : vector<32x1xf32> to vector<32x64xf32>
    %234 = arith.mulf %231, %233 : vector<32x64xf32>
    %235 = vector.broadcast %181 : vector<32x1xf32> to vector<32x64xf32>
    %236 = arith.addf %234, %235 : vector<32x64xf32>
    %cst_101 = arith.constant 0.000000e+00 : f32
    %237 = vector.broadcast %cst_101 : f32 to vector<32x64xf32>
    %238 = arith.maximumf %236, %237 : vector<32x64xf32>
    %239 = arith.truncf %238 : vector<32x64xf32> to vector<32x64xbf16>
    %c0_102 = arith.constant 0 : index
    %c0_103 = arith.constant 0 : index
    %240 = vector.load %arg14[%c0_102, %c0_103] : memref<64x144xbf16, #tpu.memory_space<vmem>>, vector<64x144xbf16>
    %cst_104 = arith.constant dense<0.000000e+00> : vector<32x144xf32>
    %241 = tpu.matmul %239, %240, %cst_104 {dimension_numbers = #tpu.dot_dimension_numbers<[1], [0], [0], [1], [0, 0, 1, 1], [], []>} : vector<32x64xbf16>, vector<64x144xbf16>, vector<32x144xf32> -> vector<32x144xf32>
    %242 = arith.truncf %241 : vector<32x144xf32> to vector<32x144xbf16>
    %c0_105 = arith.constant 0 : index
    %c0_106 = arith.constant 0 : index
    %c0_107 = arith.constant 0 : index
    %243 = vector.load %arg13[%c0_105, %c0_106, %c0_107] : memref<9x32x32xbf16, #tpu.memory_space<vmem>>, vector<1x32x32xbf16>
    %244 = vector.shape_cast %243 : vector<1x32x32xbf16> to vector<32x32xbf16>
    %245 = vector.extract_strided_slice %242 {offsets = [0, 0], sizes = [32, 16], strides = [1, 1]} : vector<32x144xbf16> to vector<32x16xbf16>
    %cst_108 = arith.constant dense<0.000000e+00> : vector<32x16xf32>
    %246 = tpu.matmul %244, %245, %cst_108 {dimension_numbers = #tpu.dot_dimension_numbers<[1], [0], [0], [1], [0, 0, 1, 1], [], []>} : vector<32x32xbf16>, vector<32x16xbf16>, vector<32x16xf32> -> vector<32x16xf32>
    %c1_109 = arith.constant 1 : index
    %c0_110 = arith.constant 0 : index
    %c0_111 = arith.constant 0 : index
    %247 = vector.load %arg13[%c1_109, %c0_110, %c0_111] : memref<9x32x32xbf16, #tpu.memory_space<vmem>>, vector<1x32x32xbf16>
    %248 = vector.shape_cast %247 : vector<1x32x32xbf16> to vector<32x32xbf16>
    %249 = vector.extract_strided_slice %242 {offsets = [0, 16], sizes = [32, 16], strides = [1, 1]} : vector<32x144xbf16> to vector<32x16xbf16>
    %cst_112 = arith.constant dense<0.000000e+00> : vector<32x16xf32>
    %250 = tpu.matmul %248, %249, %cst_112 {dimension_numbers = #tpu.dot_dimension_numbers<[1], [0], [0], [1], [0, 0, 1, 1], [], []>} : vector<32x32xbf16>, vector<32x16xbf16>, vector<32x16xf32> -> vector<32x16xf32>
    %251 = arith.addf %246, %250 : vector<32x16xf32>
    %c2_113 = arith.constant 2 : index
    %c0_114 = arith.constant 0 : index
    %c0_115 = arith.constant 0 : index
    %252 = vector.load %arg13[%c2_113, %c0_114, %c0_115] : memref<9x32x32xbf16, #tpu.memory_space<vmem>>, vector<1x32x32xbf16>
    %253 = vector.shape_cast %252 : vector<1x32x32xbf16> to vector<32x32xbf16>
    %254 = vector.extract_strided_slice %242 {offsets = [0, 32], sizes = [32, 16], strides = [1, 1]} : vector<32x144xbf16> to vector<32x16xbf16>
    %cst_116 = arith.constant dense<0.000000e+00> : vector<32x16xf32>
    %255 = tpu.matmul %253, %254, %cst_116 {dimension_numbers = #tpu.dot_dimension_numbers<[1], [0], [0], [1], [0, 0, 1, 1], [], []>} : vector<32x32xbf16>, vector<32x16xbf16>, vector<32x16xf32> -> vector<32x16xf32>
    %256 = arith.addf %251, %255 : vector<32x16xf32>
    %c3_117 = arith.constant 3 : index
    %c0_118 = arith.constant 0 : index
    %c0_119 = arith.constant 0 : index
    %257 = vector.load %arg13[%c3_117, %c0_118, %c0_119] : memref<9x32x32xbf16, #tpu.memory_space<vmem>>, vector<1x32x32xbf16>
    %258 = vector.shape_cast %257 : vector<1x32x32xbf16> to vector<32x32xbf16>
    %259 = vector.extract_strided_slice %242 {offsets = [0, 48], sizes = [32, 16], strides = [1, 1]} : vector<32x144xbf16> to vector<32x16xbf16>
    %cst_120 = arith.constant dense<0.000000e+00> : vector<32x16xf32>
    %260 = tpu.matmul %258, %259, %cst_120 {dimension_numbers = #tpu.dot_dimension_numbers<[1], [0], [0], [1], [0, 0, 1, 1], [], []>} : vector<32x32xbf16>, vector<32x16xbf16>, vector<32x16xf32> -> vector<32x16xf32>
    %261 = arith.addf %256, %260 : vector<32x16xf32>
    %c4_121 = arith.constant 4 : index
    %c0_122 = arith.constant 0 : index
    %c0_123 = arith.constant 0 : index
    %262 = vector.load %arg13[%c4_121, %c0_122, %c0_123] : memref<9x32x32xbf16, #tpu.memory_space<vmem>>, vector<1x32x32xbf16>
    %263 = vector.shape_cast %262 : vector<1x32x32xbf16> to vector<32x32xbf16>
    %264 = vector.extract_strided_slice %242 {offsets = [0, 64], sizes = [32, 16], strides = [1, 1]} : vector<32x144xbf16> to vector<32x16xbf16>
    %cst_124 = arith.constant dense<0.000000e+00> : vector<32x16xf32>
    %265 = tpu.matmul %263, %264, %cst_124 {dimension_numbers = #tpu.dot_dimension_numbers<[1], [0], [0], [1], [0, 0, 1, 1], [], []>} : vector<32x32xbf16>, vector<32x16xbf16>, vector<32x16xf32> -> vector<32x16xf32>
    %266 = arith.addf %261, %265 : vector<32x16xf32>
    %c5_125 = arith.constant 5 : index
    %c0_126 = arith.constant 0 : index
    %c0_127 = arith.constant 0 : index
    %267 = vector.load %arg13[%c5_125, %c0_126, %c0_127] : memref<9x32x32xbf16, #tpu.memory_space<vmem>>, vector<1x32x32xbf16>
    %268 = vector.shape_cast %267 : vector<1x32x32xbf16> to vector<32x32xbf16>
    %269 = vector.extract_strided_slice %242 {offsets = [0, 80], sizes = [32, 16], strides = [1, 1]} : vector<32x144xbf16> to vector<32x16xbf16>
    %cst_128 = arith.constant dense<0.000000e+00> : vector<32x16xf32>
    %270 = tpu.matmul %268, %269, %cst_128 {dimension_numbers = #tpu.dot_dimension_numbers<[1], [0], [0], [1], [0, 0, 1, 1], [], []>} : vector<32x32xbf16>, vector<32x16xbf16>, vector<32x16xf32> -> vector<32x16xf32>
    %271 = arith.addf %266, %270 : vector<32x16xf32>
    %c6_129 = arith.constant 6 : index
    %c0_130 = arith.constant 0 : index
    %c0_131 = arith.constant 0 : index
    %272 = vector.load %arg13[%c6_129, %c0_130, %c0_131] : memref<9x32x32xbf16, #tpu.memory_space<vmem>>, vector<1x32x32xbf16>
    %273 = vector.shape_cast %272 : vector<1x32x32xbf16> to vector<32x32xbf16>
    %274 = vector.extract_strided_slice %242 {offsets = [0, 96], sizes = [32, 16], strides = [1, 1]} : vector<32x144xbf16> to vector<32x16xbf16>
    %cst_132 = arith.constant dense<0.000000e+00> : vector<32x16xf32>
    %275 = tpu.matmul %273, %274, %cst_132 {dimension_numbers = #tpu.dot_dimension_numbers<[1], [0], [0], [1], [0, 0, 1, 1], [], []>} : vector<32x32xbf16>, vector<32x16xbf16>, vector<32x16xf32> -> vector<32x16xf32>
    %276 = arith.addf %271, %275 : vector<32x16xf32>
    %c7_133 = arith.constant 7 : index
    %c0_134 = arith.constant 0 : index
    %c0_135 = arith.constant 0 : index
    %277 = vector.load %arg13[%c7_133, %c0_134, %c0_135] : memref<9x32x32xbf16, #tpu.memory_space<vmem>>, vector<1x32x32xbf16>
    %278 = vector.shape_cast %277 : vector<1x32x32xbf16> to vector<32x32xbf16>
    %279 = vector.extract_strided_slice %242 {offsets = [0, 112], sizes = [32, 16], strides = [1, 1]} : vector<32x144xbf16> to vector<32x16xbf16>
    %cst_136 = arith.constant dense<0.000000e+00> : vector<32x16xf32>
    %280 = tpu.matmul %278, %279, %cst_136 {dimension_numbers = #tpu.dot_dimension_numbers<[1], [0], [0], [1], [0, 0, 1, 1], [], []>} : vector<32x32xbf16>, vector<32x16xbf16>, vector<32x16xf32> -> vector<32x16xf32>
    %281 = arith.addf %276, %280 : vector<32x16xf32>
    %c8_137 = arith.constant 8 : index
    %c0_138 = arith.constant 0 : index
    %c0_139 = arith.constant 0 : index
    %282 = vector.load %arg13[%c8_137, %c0_138, %c0_139] : memref<9x32x32xbf16, #tpu.memory_space<vmem>>, vector<1x32x32xbf16>
    %283 = vector.shape_cast %282 : vector<1x32x32xbf16> to vector<32x32xbf16>
    %284 = vector.extract_strided_slice %242 {offsets = [0, 128], sizes = [32, 16], strides = [1, 1]} : vector<32x144xbf16> to vector<32x16xbf16>
    %cst_140 = arith.constant dense<0.000000e+00> : vector<32x16xf32>
    %285 = tpu.matmul %283, %284, %cst_140 {dimension_numbers = #tpu.dot_dimension_numbers<[1], [0], [0], [1], [0, 0, 1, 1], [], []>} : vector<32x32xbf16>, vector<32x16xbf16>, vector<32x16xf32> -> vector<32x16xf32>
    %286 = arith.addf %281, %285 : vector<32x16xf32>
    %c0_141 = arith.constant 0 : index
    %c0_142 = arith.constant 0 : index
    %c0_143 = arith.constant 0 : index
    %287 = vector.load %arg23[%c0_141, %c0_142, %c0_143] : memref<1x32x16xf32, #tpu.memory_space<vmem>>, vector<1x32x16xf32>
    %288 = vector.shape_cast %287 : vector<1x32x16xf32> to vector<32x16xf32>
    %289 = vector.shape_cast %286 : vector<32x16xf32> to vector<1x32x16xf32>
    tpu.vector_store %arg23[%c0_141, %c0_142, %c0_143], %289 {strides = array<i32>} : memref<1x32x16xf32, #tpu.memory_space<vmem>>, vector<1x32x16xf32>,
    %c0_144 = arith.constant 0 : index
    %c0_145 = arith.constant 0 : index
    %290 = vector.load %arg15[%c0_144, %c0_145] : memref<32x32xbf16, #tpu.memory_space<vmem>>, vector<32x32xbf16>
    %291 = arith.truncf %286 : vector<32x16xf32> to vector<32x16xbf16>
    %cst_146 = arith.constant dense<0.000000e+00> : vector<32x16xf32>
    %292 = tpu.matmul %290, %291, %cst_146 {dimension_numbers = #tpu.dot_dimension_numbers<[1], [0], [0], [1], [0, 0, 1, 1], [], []>} : vector<32x32xbf16>, vector<32x16xbf16>, vector<32x16xf32> -> vector<32x16xf32>
    %c0_147 = arith.constant 0 : index
    %c0_148 = arith.constant 0 : index
    %293 = vector.load %arg16[%c0_147, %c0_148] : memref<32x1xf32, #tpu.memory_space<vmem>>, vector<32x1xf32>
    %c0_149 = arith.constant 0 : index
    %c0_150 = arith.constant 0 : index
    %294 = vector.load %arg17[%c0_149, %c0_150] : memref<32x1xf32, #tpu.memory_space<vmem>>, vector<32x1xf32>
    %cst_151 = arith.constant dense<0.000000e+00> : vector<32xf32>
    %295 = vector.multi_reduction <add>, %292, %cst_151 [1] : vector<32x16xf32> to vector<32xf32>
    %296 = vector.shape_cast %295 : vector<32xf32> to vector<32x1xf32>
    %297 = arith.mulf %292, %292 : vector<32x16xf32>
    %cst_152 = arith.constant dense<0.000000e+00> : vector<32xf32>
    %298 = vector.multi_reduction <add>, %297, %cst_152 [1] : vector<32x16xf32> to vector<32xf32>
    %299 = vector.shape_cast %298 : vector<32xf32> to vector<32x1xf32>
    %300 = vector.extract_strided_slice %296 {offsets = [0, 0], sizes = [16, 1], strides = [1, 1]} : vector<32x1xf32> to vector<16x1xf32>
    %301 = vector.shape_cast %300 : vector<16x1xf32> to vector<1x16x1xf32>
    %cst_153 = arith.constant dense<0.000000e+00> : vector<1xf32>
    %302 = vector.multi_reduction <add>, %301, %cst_153 [1, 2] : vector<1x16x1xf32> to vector<1xf32>
    %303 = vector.shape_cast %302 : vector<1xf32> to vector<1x1x1xf32>
    %304 = vector.extract %303[0, 0, 0] : f32 from vector<1x1x1xf32>
    %305 = vector.extract_strided_slice %299 {offsets = [0, 0], sizes = [16, 1], strides = [1, 1]} : vector<32x1xf32> to vector<16x1xf32>
    %306 = vector.shape_cast %305 : vector<16x1xf32> to vector<1x16x1xf32>
    %cst_154 = arith.constant dense<0.000000e+00> : vector<1xf32>
    %307 = vector.multi_reduction <add>, %306, %cst_154 [1, 2] : vector<1x16x1xf32> to vector<1xf32>
    %308 = vector.shape_cast %307 : vector<1xf32> to vector<1x1x1xf32>
    %309 = vector.extract %308[0, 0, 0] : f32 from vector<1x1x1xf32>
    %cst_155 = arith.constant 2.560000e+02 : f32
    %310 = arith.divf %304, %cst_155 : f32
    %cst_156 = arith.constant 2.560000e+02 : f32
    %311 = arith.divf %309, %cst_156 : f32
    %312 = arith.mulf %310, %310 : f32
    %313 = arith.subf %311, %312 : f32
    %cst_157 = arith.constant 0.000000e+00 : f32
    %314 = arith.maximumf %313, %cst_157 : f32
    %cst_158 = arith.constant 9.99999974E-6 : f32
    %315 = arith.addf %314, %cst_158 : f32
    %316 = math.rsqrt %315 : f32
    %317 = vector.extract_strided_slice %296 {offsets = [16, 0], sizes = [16, 1], strides = [1, 1]} : vector<32x1xf32> to vector<16x1xf32>
    %318 = vector.shape_cast %317 : vector<16x1xf32> to vector<1x16x1xf32>
    %cst_159 = arith.constant dense<0.000000e+00> : vector<1xf32>
    %319 = vector.multi_reduction <add>, %318, %cst_159 [1, 2] : vector<1x16x1xf32> to vector<1xf32>
    %320 = vector.shape_cast %319 : vector<1xf32> to vector<1x1x1xf32>
    %321 = vector.extract %320[0, 0, 0] : f32 from vector<1x1x1xf32>
    %322 = vector.extract_strided_slice %299 {offsets = [16, 0], sizes = [16, 1], strides = [1, 1]} : vector<32x1xf32> to vector<16x1xf32>
    %323 = vector.shape_cast %322 : vector<16x1xf32> to vector<1x16x1xf32>
    %cst_160 = arith.constant dense<0.000000e+00> : vector<1xf32>
    %324 = vector.multi_reduction <add>, %323, %cst_160 [1, 2] : vector<1x16x1xf32> to vector<1xf32>
    %325 = vector.shape_cast %324 : vector<1xf32> to vector<1x1x1xf32>
    %326 = vector.extract %325[0, 0, 0] : f32 from vector<1x1x1xf32>
    %cst_161 = arith.constant 2.560000e+02 : f32
    %327 = arith.divf %321, %cst_161 : f32
    %cst_162 = arith.constant 2.560000e+02 : f32
    %328 = arith.divf %326, %cst_162 : f32
    %329 = arith.mulf %327, %327 : f32
    %330 = arith.subf %328, %329 : f32
    %cst_163 = arith.constant 0.000000e+00 : f32
    %331 = arith.maximumf %330, %cst_163 : f32
    %cst_164 = arith.constant 9.99999974E-6 : f32
    %332 = arith.addf %331, %cst_164 : f32
    %333 = math.rsqrt %332 : f32
    %334 = tpu.iota {dimensions = array<i32: 0>} : vector<32x1xi32>
    %c16_i32_165 = arith.constant 16 : i32
    %335 = vector.broadcast %c16_i32_165 : i32 to vector<32x1xi32>
    %336 = arith.cmpi slt, %334, %335 : vector<32x1xi32>
    %337 = vector.broadcast %310 : f32 to vector<32x1xf32>
    %338 = vector.broadcast %327 : f32 to vector<32x1xf32>
    %339 = arith.select %336, %337, %338 : vector<32x1xi1>, vector<32x1xf32>
    %340 = vector.broadcast %316 : f32 to vector<32x1xf32>
    %341 = vector.broadcast %333 : f32 to vector<32x1xf32>
    %342 = arith.select %336, %340, %341 : vector<32x1xi1>, vector<32x1xf32>
    %343 = vector.broadcast %339 : vector<32x1xf32> to vector<32x16xf32>
    %344 = arith.subf %292, %343 : vector<32x16xf32>
    %345 = arith.mulf %342, %293 : vector<32x1xf32>
    %346 = vector.broadcast %345 : vector<32x1xf32> to vector<32x16xf32>
    %347 = arith.mulf %344, %346 : vector<32x16xf32>
    %348 = vector.broadcast %294 : vector<32x1xf32> to vector<32x16xf32>
    %349 = arith.addf %347, %348 : vector<32x16xf32>
    %cst_166 = arith.constant 0.000000e+00 : f32
    %350 = vector.broadcast %cst_166 : f32 to vector<32x16xf32>
    %351 = arith.maximumf %349, %350 : vector<32x16xf32>
    %352 = arith.truncf %351 : vector<32x16xf32> to vector<32x16xbf16>
    %c0_167 = arith.constant 0 : index
    %c0_168 = arith.constant 0 : index
    %353 = vector.load %arg19[%c0_167, %c0_168] : memref<16x36xbf16, #tpu.memory_space<vmem>>, vector<16x36xbf16>
    %cst_169 = arith.constant dense<0.000000e+00> : vector<32x36xf32>
    %354 = tpu.matmul %352, %353, %cst_169 {dimension_numbers = #tpu.dot_dimension_numbers<[1], [0], [0], [1], [0, 0, 1, 1], [], []>} : vector<32x16xbf16>, vector<16x36xbf16>, vector<32x36xf32> -> vector<32x36xf32>
    %355 = arith.truncf %354 : vector<32x36xf32> to vector<32x36xbf16>
    %c0_170 = arith.constant 0 : index
    %c0_171 = arith.constant 0 : index
    %c0_172 = arith.constant 0 : index
    %356 = vector.load %arg18[%c0_170, %c0_171, %c0_172] : memref<9x32x32xbf16, #tpu.memory_space<vmem>>, vector<1x32x32xbf16>
    %357 = vector.shape_cast %356 : vector<1x32x32xbf16> to vector<32x32xbf16>
    %358 = vector.extract_strided_slice %355 {offsets = [0, 0], sizes = [32, 4], strides = [1, 1]} : vector<32x36xbf16> to vector<32x4xbf16>
    %cst_173 = arith.constant dense<0.000000e+00> : vector<32x4xf32>
    %359 = tpu.matmul %357, %358, %cst_173 {dimension_numbers = #tpu.dot_dimension_numbers<[1], [0], [0], [1], [0, 0, 1, 1], [], []>} : vector<32x32xbf16>, vector<32x4xbf16>, vector<32x4xf32> -> vector<32x4xf32>
    %c1_174 = arith.constant 1 : index
    %c0_175 = arith.constant 0 : index
    %c0_176 = arith.constant 0 : index
    %360 = vector.load %arg18[%c1_174, %c0_175, %c0_176] : memref<9x32x32xbf16, #tpu.memory_space<vmem>>, vector<1x32x32xbf16>
    %361 = vector.shape_cast %360 : vector<1x32x32xbf16> to vector<32x32xbf16>
    %362 = vector.extract_strided_slice %355 {offsets = [0, 4], sizes = [32, 4], strides = [1, 1]} : vector<32x36xbf16> to vector<32x4xbf16>
    %cst_177 = arith.constant dense<0.000000e+00> : vector<32x4xf32>
    %363 = tpu.matmul %361, %362, %cst_177 {dimension_numbers = #tpu.dot_dimension_numbers<[1], [0], [0], [1], [0, 0, 1, 1], [], []>} : vector<32x32xbf16>, vector<32x4xbf16>, vector<32x4xf32> -> vector<32x4xf32>
    %364 = arith.addf %359, %363 : vector<32x4xf32>
    %c2_178 = arith.constant 2 : index
    %c0_179 = arith.constant 0 : index
    %c0_180 = arith.constant 0 : index
    %365 = vector.load %arg18[%c2_178, %c0_179, %c0_180] : memref<9x32x32xbf16, #tpu.memory_space<vmem>>, vector<1x32x32xbf16>
    %366 = vector.shape_cast %365 : vector<1x32x32xbf16> to vector<32x32xbf16>
    %367 = vector.extract_strided_slice %355 {offsets = [0, 8], sizes = [32, 4], strides = [1, 1]} : vector<32x36xbf16> to vector<32x4xbf16>
    %cst_181 = arith.constant dense<0.000000e+00> : vector<32x4xf32>
    %368 = tpu.matmul %366, %367, %cst_181 {dimension_numbers = #tpu.dot_dimension_numbers<[1], [0], [0], [1], [0, 0, 1, 1], [], []>} : vector<32x32xbf16>, vector<32x4xbf16>, vector<32x4xf32> -> vector<32x4xf32>
    %369 = arith.addf %364, %368 : vector<32x4xf32>
    %c3_182 = arith.constant 3 : index
    %c0_183 = arith.constant 0 : index
    %c0_184 = arith.constant 0 : index
    %370 = vector.load %arg18[%c3_182, %c0_183, %c0_184] : memref<9x32x32xbf16, #tpu.memory_space<vmem>>, vector<1x32x32xbf16>
    %371 = vector.shape_cast %370 : vector<1x32x32xbf16> to vector<32x32xbf16>
    %372 = vector.extract_strided_slice %355 {offsets = [0, 12], sizes = [32, 4], strides = [1, 1]} : vector<32x36xbf16> to vector<32x4xbf16>
    %cst_185 = arith.constant dense<0.000000e+00> : vector<32x4xf32>
    %373 = tpu.matmul %371, %372, %cst_185 {dimension_numbers = #tpu.dot_dimension_numbers<[1], [0], [0], [1], [0, 0, 1, 1], [], []>} : vector<32x32xbf16>, vector<32x4xbf16>, vector<32x4xf32> -> vector<32x4xf32>
    %374 = arith.addf %369, %373 : vector<32x4xf32>
    %c4_186 = arith.constant 4 : index
    %c0_187 = arith.constant 0 : index
    %c0_188 = arith.constant 0 : index
    %375 = vector.load %arg18[%c4_186, %c0_187, %c0_188] : memref<9x32x32xbf16, #tpu.memory_space<vmem>>, vector<1x32x32xbf16>
    %376 = vector.shape_cast %375 : vector<1x32x32xbf16> to vector<32x32xbf16>
    %377 = vector.extract_strided_slice %355 {offsets = [0, 16], sizes = [32, 4], strides = [1, 1]} : vector<32x36xbf16> to vector<32x4xbf16>
    %cst_189 = arith.constant dense<0.000000e+00> : vector<32x4xf32>
    %378 = tpu.matmul %376, %377, %cst_189 {dimension_numbers = #tpu.dot_dimension_numbers<[1], [0], [0], [1], [0, 0, 1, 1], [], []>} : vector<32x32xbf16>, vector<32x4xbf16>, vector<32x4xf32> -> vector<32x4xf32>
    %379 = arith.addf %374, %378 : vector<32x4xf32>
    %c5_190 = arith.constant 5 : index
    %c0_191 = arith.constant 0 : index
    %c0_192 = arith.constant 0 : index
    %380 = vector.load %arg18[%c5_190, %c0_191, %c0_192] : memref<9x32x32xbf16, #tpu.memory_space<vmem>>, vector<1x32x32xbf16>
    %381 = vector.shape_cast %380 : vector<1x32x32xbf16> to vector<32x32xbf16>
    %382 = vector.extract_strided_slice %355 {offsets = [0, 20], sizes = [32, 4], strides = [1, 1]} : vector<32x36xbf16> to vector<32x4xbf16>
    %cst_193 = arith.constant dense<0.000000e+00> : vector<32x4xf32>
    %383 = tpu.matmul %381, %382, %cst_193 {dimension_numbers = #tpu.dot_dimension_numbers<[1], [0], [0], [1], [0, 0, 1, 1], [], []>} : vector<32x32xbf16>, vector<32x4xbf16>, vector<32x4xf32> -> vector<32x4xf32>
    %384 = arith.addf %379, %383 : vector<32x4xf32>
    %c6_194 = arith.constant 6 : index
    %c0_195 = arith.constant 0 : index
    %c0_196 = arith.constant 0 : index
    %385 = vector.load %arg18[%c6_194, %c0_195, %c0_196] : memref<9x32x32xbf16, #tpu.memory_space<vmem>>, vector<1x32x32xbf16>
    %386 = vector.shape_cast %385 : vector<1x32x32xbf16> to vector<32x32xbf16>
    %387 = vector.extract_strided_slice %355 {offsets = [0, 24], sizes = [32, 4], strides = [1, 1]} : vector<32x36xbf16> to vector<32x4xbf16>
    %cst_197 = arith.constant dense<0.000000e+00> : vector<32x4xf32>
    %388 = tpu.matmul %386, %387, %cst_197 {dimension_numbers = #tpu.dot_dimension_numbers<[1], [0], [0], [1], [0, 0, 1, 1], [], []>} : vector<32x32xbf16>, vector<32x4xbf16>, vector<32x4xf32> -> vector<32x4xf32>
    %389 = arith.addf %384, %388 : vector<32x4xf32>
    %c7_198 = arith.constant 7 : index
    %c0_199 = arith.constant 0 : index
    %c0_200 = arith.constant 0 : index
    %390 = vector.load %arg18[%c7_198, %c0_199, %c0_200] : memref<9x32x32xbf16, #tpu.memory_space<vmem>>, vector<1x32x32xbf16>
    %391 = vector.shape_cast %390 : vector<1x32x32xbf16> to vector<32x32xbf16>
    %392 = vector.extract_strided_slice %355 {offsets = [0, 28], sizes = [32, 4], strides = [1, 1]} : vector<32x36xbf16> to vector<32x4xbf16>
    %cst_201 = arith.constant dense<0.000000e+00> : vector<32x4xf32>
    %393 = tpu.matmul %391, %392, %cst_201 {dimension_numbers = #tpu.dot_dimension_numbers<[1], [0], [0], [1], [0, 0, 1, 1], [], []>} : vector<32x32xbf16>, vector<32x4xbf16>, vector<32x4xf32> -> vector<32x4xf32>
    %394 = arith.addf %389, %393 : vector<32x4xf32>
    %c8_202 = arith.constant 8 : index
    %c0_203 = arith.constant 0 : index
    %c0_204 = arith.constant 0 : index
    %395 = vector.load %arg18[%c8_202, %c0_203, %c0_204] : memref<9x32x32xbf16, #tpu.memory_space<vmem>>, vector<1x32x32xbf16>
    %396 = vector.shape_cast %395 : vector<1x32x32xbf16> to vector<32x32xbf16>
    %397 = vector.extract_strided_slice %355 {offsets = [0, 32], sizes = [32, 4], strides = [1, 1]} : vector<32x36xbf16> to vector<32x4xbf16>
    %cst_205 = arith.constant dense<0.000000e+00> : vector<32x4xf32>
    %398 = tpu.matmul %396, %397, %cst_205 {dimension_numbers = #tpu.dot_dimension_numbers<[1], [0], [0], [1], [0, 0, 1, 1], [], []>} : vector<32x32xbf16>, vector<32x4xbf16>, vector<32x4xf32> -> vector<32x4xf32>
    %399 = arith.addf %394, %398 : vector<32x4xf32>
    %c0_206 = arith.constant 0 : index
    %c0_207 = arith.constant 0 : index
    %400 = vector.load %arg20[%c0_206, %c0_207] : memref<1x32xbf16, #tpu.memory_space<vmem>>, vector<1x32xbf16>
    %401 = arith.truncf %399 : vector<32x4xf32> to vector<32x4xbf16>
    %cst_208 = arith.constant dense<0.000000e+00> : vector<1x4xf32>
    %402 = tpu.matmul %400, %401, %cst_208 {dimension_numbers = #tpu.dot_dimension_numbers<[1], [0], [0], [1], [0, 0, 1, 1], [], []>} : vector<1x32xbf16>, vector<32x4xbf16>, vector<1x4xf32> -> vector<1x4xf32>
    %c0_209 = arith.constant 0 : index
    %c0_210 = arith.constant 0 : index
    %403 = vector.load %arg21[%c0_209, %c0_210] : memref<1x1xf32, #tpu.memory_space<vmem>>, vector<1x1xf32>
    %404 = vector.broadcast %403 : vector<1x1xf32> to vector<1x4xf32>
    %405 = arith.addf %402, %404 : vector<1x4xf32>
    %c0_211 = arith.constant 0 : index
    %c0_212 = arith.constant 0 : index
    %c0_213 = arith.constant 0 : index
    %406 = vector.load %arg24[%c0_211, %c0_212, %c0_213] : memref<1x1x4xf32, #tpu.memory_space<vmem>>, vector<1x1x4xf32>
    %407 = vector.shape_cast %406 : vector<1x1x4xf32> to vector<1x4xf32>
    %408 = vector.shape_cast %405 : vector<1x4xf32> to vector<1x1x4xf32>
    tpu.vector_store %arg24[%c0_211, %c0_212, %c0_213], %408 {strides = array<i32>} : memref<1x1x4xf32, #tpu.memory_space<vmem>>, vector<1x1x4xf32>,
    return
  }
  func.func @transform_0(%arg0: i32) -> (i32, i32, i32) {
    %c0_i32 = arith.constant 0 : i32
    %c0_i32_0 = arith.constant 0 : i32
    %c0_i32_1 = arith.constant 0 : i32
    return %arg0, %c0_i32, %c0_i32_0 : i32, i32, i32
  }
  func.func @transform_1(%arg0: i32) -> (i32, i32) {
    %c0_i32 = arith.constant 0 : i32
    %c0_i32_0 = arith.constant 0 : i32
    %c0_i32_1 = arith.constant 0 : i32
    return %c0_i32, %c0_i32_0 : i32, i32
  }
  func.func @transform_2(%arg0: i32) -> (i32, i32) {
    %c0_i32 = arith.constant 0 : i32
    %c0_i32_0 = arith.constant 0 : i32
    %c0_i32_1 = arith.constant 0 : i32
    return %c0_i32, %c0_i32_0 : i32, i32
  }
  func.func @transform_3(%arg0: i32) -> (i32, i32) {
    %c0_i32 = arith.constant 0 : i32
    %c0_i32_0 = arith.constant 0 : i32
    %c0_i32_1 = arith.constant 0 : i32
    return %c0_i32, %c0_i32_0 : i32, i32
  }
  func.func @transform_4(%arg0: i32) -> (i32, i32, i32) {
    %c0_i32 = arith.constant 0 : i32
    %c0_i32_0 = arith.constant 0 : i32
    %c0_i32_1 = arith.constant 0 : i32
    %c0_i32_2 = arith.constant 0 : i32
    return %c0_i32, %c0_i32_0, %c0_i32_1 : i32, i32, i32
  }
  func.func @transform_5(%arg0: i32) -> (i32, i32) {
    %c0_i32 = arith.constant 0 : i32
    %c0_i32_0 = arith.constant 0 : i32
    %c0_i32_1 = arith.constant 0 : i32
    return %c0_i32, %c0_i32_0 : i32, i32
  }
  func.func @transform_6(%arg0: i32) -> (i32, i32) {
    %c0_i32 = arith.constant 0 : i32
    %c0_i32_0 = arith.constant 0 : i32
    %c0_i32_1 = arith.constant 0 : i32
    return %c0_i32, %c0_i32_0 : i32, i32
  }
  func.func @transform_7(%arg0: i32) -> (i32, i32) {
    %c0_i32 = arith.constant 0 : i32
    %c0_i32_0 = arith.constant 0 : i32
    %c0_i32_1 = arith.constant 0 : i32
    return %c0_i32, %c0_i32_0 : i32, i32
  }
  func.func @transform_8(%arg0: i32) -> (i32, i32) {
    %c0_i32 = arith.constant 0 : i32
    %c0_i32_0 = arith.constant 0 : i32
    %c0_i32_1 = arith.constant 0 : i32
    return %c0_i32, %c0_i32_0 : i32, i32
  }
  func.func @transform_9(%arg0: i32) -> (i32, i32) {
    %c0_i32 = arith.constant 0 : i32
    %c0_i32_0 = arith.constant 0 : i32
    %c0_i32_1 = arith.constant 0 : i32
    return %c0_i32, %c0_i32_0 : i32, i32
  }
  func.func @transform_10(%arg0: i32) -> (i32, i32) {
    %c0_i32 = arith.constant 0 : i32
    %c0_i32_0 = arith.constant 0 : i32
    %c0_i32_1 = arith.constant 0 : i32
    return %c0_i32, %c0_i32_0 : i32, i32
  }
  func.func @transform_11(%arg0: i32) -> (i32, i32) {
    %c0_i32 = arith.constant 0 : i32
    %c0_i32_0 = arith.constant 0 : i32
    %c0_i32_1 = arith.constant 0 : i32
    return %c0_i32, %c0_i32_0 : i32, i32
  }
  func.func @transform_12(%arg0: i32) -> (i32, i32, i32) {
    %c0_i32 = arith.constant 0 : i32
    %c0_i32_0 = arith.constant 0 : i32
    %c0_i32_1 = arith.constant 0 : i32
    %c0_i32_2 = arith.constant 0 : i32
    return %c0_i32, %c0_i32_0, %c0_i32_1 : i32, i32, i32
  }
  func.func @transform_13(%arg0: i32) -> (i32, i32) {
    %c0_i32 = arith.constant 0 : i32
    %c0_i32_0 = arith.constant 0 : i32
    %c0_i32_1 = arith.constant 0 : i32
    return %c0_i32, %c0_i32_0 : i32, i32
  }
  func.func @transform_14(%arg0: i32) -> (i32, i32) {
    %c0_i32 = arith.constant 0 : i32
    %c0_i32_0 = arith.constant 0 : i32
    %c0_i32_1 = arith.constant 0 : i32
    return %c0_i32, %c0_i32_0 : i32, i32
  }
  func.func @transform_15(%arg0: i32) -> (i32, i32) {
    %c0_i32 = arith.constant 0 : i32
    %c0_i32_0 = arith.constant 0 : i32
    %c0_i32_1 = arith.constant 0 : i32
    return %c0_i32, %c0_i32_0 : i32, i32
  }
  func.func @transform_16(%arg0: i32) -> (i32, i32) {
    %c0_i32 = arith.constant 0 : i32
    %c0_i32_0 = arith.constant 0 : i32
    %c0_i32_1 = arith.constant 0 : i32
    return %c0_i32, %c0_i32_0 : i32, i32
  }
  func.func @transform_17(%arg0: i32) -> (i32, i32, i32) {
    %c0_i32 = arith.constant 0 : i32
    %c0_i32_0 = arith.constant 0 : i32
    %c0_i32_1 = arith.constant 0 : i32
    %c0_i32_2 = arith.constant 0 : i32
    return %c0_i32, %c0_i32_0, %c0_i32_1 : i32, i32, i32
  }
  func.func @transform_18(%arg0: i32) -> (i32, i32) {
    %c0_i32 = arith.constant 0 : i32
    %c0_i32_0 = arith.constant 0 : i32
    %c0_i32_1 = arith.constant 0 : i32
    return %c0_i32, %c0_i32_0 : i32, i32
  }
  func.func @transform_19(%arg0: i32) -> (i32, i32) {
    %c0_i32 = arith.constant 0 : i32
    %c0_i32_0 = arith.constant 0 : i32
    %c0_i32_1 = arith.constant 0 : i32
    return %c0_i32, %c0_i32_0 : i32, i32
  }
  func.func @transform_20(%arg0: i32) -> (i32, i32) {
    %c0_i32 = arith.constant 0 : i32
    %c0_i32_0 = arith.constant 0 : i32
    %c0_i32_1 = arith.constant 0 : i32
    return %c0_i32, %c0_i32_0 : i32, i32
  }
  func.func @transform_21(%arg0: i32) -> (i32, i32, i32) {
    %c0_i32 = arith.constant 0 : i32
    %c0_i32_0 = arith.constant 0 : i32
    %c0_i32_1 = arith.constant 0 : i32
    return %arg0, %c0_i32, %c0_i32_0 : i32, i32, i32
  }
  func.func @transform_22(%arg0: i32) -> (i32, i32, i32) {
    %c0_i32 = arith.constant 0 : i32
    %c0_i32_0 = arith.constant 0 : i32
    %c0_i32_1 = arith.constant 0 : i32
    return %arg0, %c0_i32, %c0_i32_0 : i32, i32, i32
  }
  func.func @transform_23(%arg0: i32) -> (i32, i32, i32) {
    %c0_i32 = arith.constant 0 : i32
    %c0_i32_0 = arith.constant 0 : i32
    %c0_i32_1 = arith.constant 0 : i32
    return %arg0, %c0_i32, %c0_i32_0 : i32, i32, i32
  }
}

</mosaic_0001>

<bundles_post_ra>
// kernel: model_forward.1
= control target key start
LH: loop header
LB: loop body
LE: loop exit
PB: predicated region body
PF: predicated region fallthrough
CT: control target
= control target key end

     0   :  { %s6291_s24 = smov 0   ;;  %s7304_s0 = inlined_call_operand.vmem [shape: f32[2,3,256], index: 0, kind: input, shape index: {}]   ;;  %s7305_s1 = inlined_call_operand.vmem [shape: bf16[32,3], index: 1, kind: input, shape index: {}]   ;;  %s7306_s2 = inlined_call_operand.vmem [shape: f32[32,1], index: 2, kind: input, shape index: {}]   ;;  %s7307_s3 = inlined_call_operand.vmem [shape: f32[32,1], index: 3, kind: input, shape index: {}]   ;;  %s7308_s4 = inlined_call_operand.vmem [shape: bf16[9,32,32], index: 4, kind: input, shape index: {}]   ;;  %s7309_s5 = inlined_call_operand.vmem [shape: bf16[256,576], index: 5, kind: input, shape index: {}]   ;;  %s7310_s6 = inlined_call_operand.vmem [shape: bf16[64,32], index: 6, kind: input, shape index: {}]   ;;  %s7311_s7 = inlined_call_operand.vmem [shape: f32[64,1], index: 7, kind: input, shape index: {}]   ;;  %s7312_s8 = inlined_call_operand.vmem [shape: f32[64,1], index: 8, kind: input, shape index: {}]   ;;  %s7313_s9 = inlined_call_operand.vmem [shape: bf16[32,64], index: 9, kind: input, shape index: {}]   ;;  %s7314_s10 = inlined_call_operand.vmem [shape: f32[32,1], index: 10, kind: input, shape index: {}]   ;;  %s7315_s11 = inlined_call_operand.vmem [shape: f32[32,1], index: 11, kind: input, shape index: {}]   ;;  %s7316_s12 = inlined_call_operand.vmem [shape: bf16[9,32,32], index: 12, kind: input, shape index: {}]   ;;  %s7317_s13 = inlined_call_operand.vmem [shape: bf16[64,144], index: 13, kind: input, shape index: {}]   ;;  %s7318_s14 = inlined_call_operand.vmem [shape: bf16[32,32], index: 14, kind: input, shape index: {}]   ;;  %s7319_s15 = inlined_call_operand.vmem [shape: f32[32,1], index: 15, kind: input, shape index: {}]   ;;  %s7320_s16 = inlined_call_operand.vmem [shape: f32[32,1], index: 16, kind: input, shape index: {}]   ;;  %s7321_s17 = inlined_call_operand.vmem [shape: bf16[9,32,32], index: 17, kind: input, shape index: {}]   ;;  %s7322_s18 = inlined_call_operand.vmem [shape: bf16[16,36], index: 18, kind: input, shape index: {}]   ;;  %s7323_s19 = inlined_call_operand.vmem [shape: bf16[1,32], index: 19, kind: input, shape index: {}]   ;;  %s7324_s20 = inlined_call_operand.<no memory space> [shape: f32[1,1], index: 20, kind: input, shape index: {}]   ;;  %s7325_s21 = inlined_call_operand.vmem [shape: f32[2,32,64], index: 21, kind: output, shape index: {0}]   ;;  %s7326_s22 = inlined_call_operand.vmem [shape: f32[2,32,16], index: 22, kind: output, shape index: {1}]   ;;  %s7327_s23 = inlined_call_operand.vmem [shape: f32[2,1,4], index: 23, kind: output, shape index: {2}]  }
   0x1   :  { %7347 = sst [smem:[#allocation4_spill]] %s7304_s0  ;;  %v29_v0 = vstv %s7324_s20 }
   0x2   :  { %7348 = sst [smem:[#allocation5_spill]] %s7305_s1  ;;  %30 = vst [vmem:[#allocation2] sm:$0x1] %v29_v0 }
   0x3   :  { %7349 = sst [smem:[#allocation6_spill]] %s7306_s2 }
   0x4   :  { %7350 = sst [smem:[#allocation7_spill]] %s7307_s3 }
   0x5   :  { %7351 = sst [smem:[#allocation8_spill]] %s7308_s4 }
   0x6   :  { %7352 = sst [smem:[#allocation9_spill]] %s7309_s5 }
   0x7   :  { %7353 = sst [smem:[#allocation10_spill]] %s7310_s6 }
   0x8   :  { %7354 = sst [smem:[#allocation11_spill]] %s7311_s7 }
   0x9 LB: > { %7355 = sst [smem:[#allocation3_spill]] %s6148_s24  ;;  %s5106_s25 = sadd.s32 4294967295, %s6148_s24   ;;  %s6148_s24 = sphi %s6291_s24, %s36_s24  }
   0xa   : > { %p5110_p0 = scmp.ge.s32.totalorder %s6148_s24, 1  ;;  %p644_p1 = scmp.lt.s32.totalorder %s6148_s24, 3 }
   0xc   : > { %p645_p2 = pnand %p5110_p0, %p644_p1 }
   0xd   : > { %p716_p3 = scmp.lt.s32.totalorder (!%p645_p2), %s5106_s25, 1  ;;  %s7356_s26 = sld [smem:[#allocation4_spill]] (!%p645_p2) }
   0xe   : > { %648 = sbr.rel (%p645_p2) target bundleno = 5548 (0x15ac), region = 104  ;;  %s7357_s7 = sld [smem:[#allocation5_spill]] (!%p645_p2) }
   0xf   : > { %s7358_s4 = sld [smem:[#allocation7_spill]] (!%p645_p2)  ;;  %s7336_s3 = smov (!%p645_p2), 0.0  }
  0x10   : > { %s7359_s1 = sld [smem:[#allocation9_spill]] (!%p645_p2) }
  0x13   : > { %vm762_vm0 = vcmask 1040384   ;;  %v6150_v1 = vmov 0   ;;  %s7369_s25 = smov (!%p716_p3, %s5106_s25), 1  ;;  %vm763_vm1 = vcmask 1041408   ;;  %v6151_v2 = vmov 65535  }
  0x14   : > { %804 = vmatprep.mubr.bf16.mxu0 %v6150_v1  ;;  %5935 = vset.pattern.permute.xlu1 %v6150_v1  ;;  %s5437_s20 = sshll.u32 %s7369_s25, 3  ;;  %v764_v3 = vsel %vm762_vm0, 4294967295, %v6151_v2  ;;  %v5937_v11 = vld [vmem:[%s7357_s7] sm:$0xff]   ;;  %vm755_vm2 = vcmask 23552   ;;  %v5938_v12 = vld [vmem:[%s7357_s7 + $0x8] sm:$0xff]   ;;  %vm865_vm3 = vcmask 7168  }
  0x15   : > { %5934 = vset.pattern.permute.xlu0 %v6150_v1  ;;  %s720_s2 = scalar_lea.vmem %s7356_s26, %s5437_s20  ;;  %v765_v6 = vsel %vm763_vm1, %v764_v3, 0  ;;  %vm1745_vm4 = vcmask 261120   ;;  %s7339_s7 = sshll.u32 %s7369_s25, 5  ;;  %vm2408_vm5 = vcmask 523264   ;;  %vm3903_vm6 = vcmask 130048  }
  0x16   : > { %v735_v4 = vld [vmem:[%s720_s2] sm:$0x77]  ;;  %vm6167_vm7 = vmmov 0   ;;  %vm4991_vm8 = vcmask 24576  }
  0x17   : > { %v737_v5 = vcombine.high %v735_v4, %v735_v4  ;;  %v739_v7 = vpack.c.bf16 %v735_v4, %v735_v4 }
  0x19   : > { %v740_v8 = vpack.c.bf16 %v737_v5, %v737_v5  ;;  %v767_v9 = vand.u32 %v765_v6, %v739_v7 }
  0x1b   : > { %v770_v10 = vand.u32 %v765_v6, %v740_v8  ;;  %v829_v8 = vld [vmem:[%s7358_s4] sm:$0xff] }
  0x1d   : > { %786 = vmatprep.subr.bf16.mxu0 %v770_v10  ;;  %v831_v10 = vld [vmem:[%s7358_s4 + $0x10] sm:$0xff] }
  0x1e   : > { %787 = vmatpush1.bf16.msra.mxu0 %v767_v9  ;;  %v830_v9 = vld [vmem:[%s7358_s4 + $0x8] sm:$0xff] }
  0x21   : > { %5119 = vmatmul.mubr.msk.bf16.vlgmr.msra.gmra.mxu0 %vm755_vm2, %v5937_v11 }
  0x22   : > { %814 = vmatprep.mubr.bf16.mxu0 %v6150_v1 }
  0x29   : > { %5120 = vmatmul.mubr.msk.bf16.gmra.mxu0 %vm755_vm2, %v5938_v12 }
  0xe1   : > { %v6315_v13 = vpop.f32.mrf.mxu0 }
  0xe2   : > { %v845_v16 = vmul.f32 %v6315_v13, %v6315_v13 }
  0xe3   : > { %v6317_v14 = vpop.f32.mrf.mxu0 }
  0xe4   : > { %v833_v15 = vadd.f32 %v6317_v14, %v6315_v13  ;;  %v846_v17 = vmul.f32 %v6317_v14, %v6317_v14 }
  0xe5   : > { %v6325_v18 = vpop.f32.mrf.mxu0 }
  0xe6   : > { %834 = vadd.xlane.f32.xlu0 %v833_v15  ;;  %v853_v19 = vadd.f32 %v846_v17, %v845_v16  ;;  %v847_v22 = vmul.f32 %v6325_v18, %v6325_v18 }
  0xe7   : > { %v6327_v20 = vpop.f32.mrf.mxu0 }
  0xe8   : > { %854 = vadd.xlane.f32.xlu1 %v853_v19  ;;  %v836_v21 = vadd.f32 %v6327_v20, %v6325_v18  ;;  %v848_v23 = vmul.f32 %v6327_v20, %v6327_v20 }
  0xe9   : > { %v6335_v24 = vpop.f32.mrf.mxu0 }
  0xea   : > { %837 = vadd.xlane.f32.xlu0 %v836_v21  ;;  %v856_v25 = vadd.f32 %v848_v23, %v847_v22  ;;  %v849_v38 = vmul.f32 %v6335_v24, %v6335_v24  ;;  %v5939_v22 = vld [vmem:[%s7359_s1 + $0x11c] ss:$20 sps:$4 sm:$0xff]   ;;  %v5943_v23 = vld [vmem:[%s7359_s1 + $0x124] ss:$20 sps:$4 sm:$0xff]  }
  0xeb   : > { %v6337_v26 = vpop.f32.mrf.mxu0  ;;  %1553 = vmatprep.subr.bf16.mxu1 %v5939_v22  ;;  %1606 = vmatprep.subr.bf16.mxu0 %v5943_v23  ;;  %v6021_v22 = vld [vmem:[%s7359_s1 + $0x19c] ss:$20 sps:$4 sm:$0xff]   ;;  %v6019_v23 = vld [vmem:[%s7359_s1 + $0x198] ss:$20 sps:$4 sm:$0xff]  }
  0xec   : > { %857 = vadd.xlane.f32.xlu1 %v856_v25  ;;  %v839_v27 = vadd.f32 %v6337_v26, %v6335_v24  ;;  %v850_v39 = vmul.f32 %v6337_v26, %v6337_v26  ;;  %v5941_v25 = vld [vmem:[%s7359_s1 + $0x120] ss:$20 sps:$4 sm:$0xff]  }
  0xed   : > { %v6341_v28 = vpop.f32.mrf.mxu0  ;;  %1607 = vmatpush1.bf16.msra.mxu0 %v5941_v25  ;;  %v6022_v25 = vld [vmem:[%s7359_s1 + $0x190] ss:$20 sps:$4 sm:$0xff]  }
  0xee   : > { %v851_v43 = vmul.f32 %v6341_v28, %v6341_v28  ;;  %v859_v45 = vadd.f32 %v850_v39, %v849_v38  ;;  %v5953_v38 = vld [vmem:[%s7359_s1 + $0xd0] ss:$20 sps:$4 sm:$0xff]   ;;  %v5956_v39 = vld [vmem:[%s7359_s1 + $0xc8] ss:$20 sps:$4 sm:$0xff]  }
  0xef   : > { %v6343_v29 = vpop.f32.mrf.mxu0 }
  0xf0   : > { %840 = vadd.xlane.f32.xlu1 %v839_v27  ;;  %v842_v30 = vadd.f32 %v6343_v29, %v6341_v28  ;;  %v852_v44 = vmul.f32 %v6343_v29, %v6343_v29  ;;  %v5944_v27 = vld [vmem:[%s7359_s1 + $0x118] ss:$20 sps:$4 sm:$0xff]  }
  0xf1   : > { %1554 = vmatpush1.bf16.msra.mxu1 %v5944_v27 }
  0xf2   : > { %843 = vadd.xlane.f32.xlu0 %v842_v30  ;;  %v862_v48 = vadd.f32 %v852_v44, %v851_v43  ;;  %v5962_v43 = vld [vmem:[%s7359_s1 + $0xa0] ss:$20 sps:$4 sm:$0xff]   ;;  %v5963_v44 = vld [vmem:[%s7359_s1 + $0x7c] ss:$20 sps:$4 sm:$0xff]  }
 0x16f   : > { %v835_v31 = vpop.xlane.xlu0 %834 }
 0x170   : > { %v866_v34 = vsel %vm865_vm3, %v835_v31, 0.0  ;;  %v5945_v31 = vld [vmem:[%s7359_s1 + $0xf4] ss:$20 sps:$4 sm:$0xff]  }
 0x171   : > { %v855_v32 = vpop.xlane.xlu1 %854  ;;  %1555 = vmatprep.subr.bf16.mxu1 %v5945_v31  ;;  %v6023_v31 = vld [vmem:[%s7359_s1 + $0x16c] ss:$20 sps:$4 sm:$0xff]  }
 0x172   : > { %v878_v40 = vsel %vm865_vm3, %v855_v32, 0.0  ;;  %v5949_v32 = vld [vmem:[%s7359_s1 + $0xfc] ss:$20 sps:$4 sm:$0xff]  }
 0x173   : > { %v838_v33 = vpop.xlane.xlu0 %837  ;;  %1608 = vmatprep.subr.bf16.mxu0 %v5949_v32  ;;  %v6027_v32 = vld [vmem:[%s7359_s1 + $0x174] ss:$20 sps:$4 sm:$0xff]  }
 0x174   : > { %v867_v35 = vsel %vm865_vm3, %v838_v33, 0.0  ;;  %v5947_v33 = vld [vmem:[%s7359_s1 + $0xf8] ss:$20 sps:$4 sm:$0xff]  }
 0x175   : > { %v858_v36 = vpop.xlane.xlu1 %857  ;;  %v868_v37 = vadd.f32 %v867_v35, %v866_v34  ;;  %v5950_v34 = vld [vmem:[%s7359_s1 + $0xf0] ss:$20 sps:$4 sm:$0xff]   ;;  %1609 = vmatpush1.bf16.msra.mxu0 %v5947_v33 }
 0x176   : > { %v879_v41 = vsel %vm865_vm3, %v858_v36, 0.0  ;;  %1556 = vmatpush1.bf16.msra.mxu1 %v5950_v34  ;;  %v5951_v36 = vld [vmem:[%s7359_s1 + $0xcc] ss:$20 sps:$4 sm:$0xff]   ;;  %v6025_v34 = vld [vmem:[%s7359_s1 + $0x170] ss:$20 sps:$4 sm:$0xff]  }
 0x177   : > { %869 = vadd.xlane.f32.xlu0 %v868_v37  ;;  %v880_v42 = vadd.f32 %v879_v41, %v878_v40  ;;  %v5955_v37 = vld [vmem:[%s7359_s1 + $0xd4] ss:$20 sps:$4 sm:$0xff]   ;;  %v5957_v40 = vld [vmem:[%s7359_s1 + $0xa4] ss:$20 sps:$4 sm:$0xff]   ;;  %1557 = vmatprep.subr.bf16.mxu1 %v5951_v36  ;;  %v5961_v41 = vld [vmem:[%s7359_s1 + $0xac] ss:$20 sps:$4 sm:$0xff]  }
 0x178   : > { %1610 = vmatprep.subr.bf16.mxu0 %v5955_v37 }
 0x179   : > { %881 = vadd.xlane.f32.xlu1 %v880_v42  ;;  %v841_v46 = vpop.xlane.xlu1 %840  ;;  %1611 = vmatpush1.bf16.msra.mxu0 %v5953_v38  ;;  %v5959_v42 = vld [vmem:[%s7359_s1 + $0xa8] ss:$20 sps:$4 sm:$0xff]   ;;  %v6029_v38 = vld [vmem:[%s7359_s1 + $0x144] ss:$20 sps:$4 sm:$0xff]  }
 0x17a   : > { %v903_v47 = vsel %vm865_vm3, %v841_v46, 0.0  ;;  %1558 = vmatpush1.bf16.msra.mxu1 %v5956_v39  ;;  %1612 = vmatprep.subr.bf16.mxu0 %v5961_v41  ;;  %v5965_v46 = vld [vmem:[%s7359_s1 + $0x80] ss:$20 sps:$4 sm:$0xff]   ;;  %v6031_v39 = vld [vmem:[%s7359_s1 + $0x148] ss:$20 sps:$4 sm:$0xff]  }
 0x17b   : > { %860 = vadd.xlane.f32.xlu0 %v859_v45  ;;  %v844_v49 = vpop.xlane.xlu0 %843  ;;  %1559 = vmatprep.subr.bf16.mxu1 %v5957_v40  ;;  %v5967_v45 = vld [vmem:[%s7359_s1 + $0x84] ss:$20 sps:$4 sm:$0xff]   ;;  %v6033_v40 = vld [vmem:[%s7359_s1 + $0x14c] ss:$20 sps:$4 sm:$0xff]  }
 0x17c   : > { %v904_v50 = vsel %vm865_vm3, %v844_v49, 0.0  ;;  %v5973_v49 = vld [vmem:[%s7359_s1 + $0x5c] ss:$20 sps:$4 sm:$0xff]   ;;  %v6034_v41 = vld [vmem:[%s7359_s1 + $0x140] ss:$20 sps:$4 sm:$0xff]  }
 0x17d   : > { %863 = vadd.xlane.f32.xlu1 %v862_v48  ;;  %v905_v51 = vadd.f32 %v904_v50, %v903_v47  ;;  %1613 = vmatpush1.bf16.msra.mxu0 %v5959_v42  ;;  %v5968_v47 = vld [vmem:[%s7359_s1 + $0x78] ss:$20 sps:$4 sm:$0xff]   ;;  %v5969_v48 = vld [vmem:[%s7359_s1 + $0x54] ss:$20 sps:$4 sm:$0xff]  }
 0x17e   : > { %1560 = vmatpush1.bf16.msra.mxu1 %v5962_v43  ;;  %1614 = vmatprep.subr.bf16.mxu0 %v5967_v45  ;;  %v5971_v50 = vld [vmem:[%s7359_s1 + $0x58] ss:$20 sps:$4 sm:$0xff]  }
 0x17f   : > { %906 = vadd.xlane.f32.xlu0 %v905_v51  ;;  %1561 = vmatprep.subr.bf16.mxu1 %v5963_v44  ;;  %v5974_v51 = vld [vmem:[%s7359_s1 + $0x50] ss:$20 sps:$4 sm:$0xff]  }
 0x181   : > { %1615 = vmatpush1.bf16.msra.mxu0 %v5965_v46 }
 0x182   : > { %1562 = vmatpush1.bf16.msra.mxu1 %v5968_v47  ;;  %1616 = vmatprep.subr.bf16.mxu0 %v5973_v49  ;;  %v6035_v49 = vld [vmem:[%s7359_s1 + $0x268] ss:$20 sps:$4 sm:$0xff]  }
 0x183   : > { %1563 = vmatprep.subr.bf16.mxu1 %v5969_v48 }
 0x185   : > { %1617 = vmatpush1.bf16.msra.mxu0 %v5971_v50 }
 0x186   : > { %1564 = vmatpush1.bf16.msra.mxu1 %v5974_v51 }
 0x200   : > { %v870_v52 = vpop.xlane.xlu0 %869 }
 0x201   : > { %v871_v53 = vrot.slane %v870_v52, 4 }
 0x202   : > { %v882_v54 = vpop.xlane.xlu1 %881 }
 0x203   : > { %v872_v55 = vadd.f32 %v871_v53, %v870_v52  ;;  %v883_v56 = vrot.slane %v882_v54, 4  ;;  %v5975_v52 = vld [vmem:[%s7359_s1 + $0x2c] ss:$20 sps:$4 sm:$0xff]   ;;  %v5977_v53 = vld [vmem:[%s7359_s1 + $0x30] ss:$20 sps:$4 sm:$0xff]  }
 0x204   : > { %v861_v57 = vpop.xlane.xlu0 %860  ;;  %1565 = vmatprep.subr.bf16.mxu1 %v5975_v52 }
 0x205   : > { %v884_v58 = vadd.f32 %v883_v56, %v882_v54  ;;  %v873_v59 = vrot.slane %v872_v55, 2  ;;  %v915_v61 = vsel %vm865_vm3, %v861_v57, 0.0  ;;  %v5979_v54 = vld [vmem:[%s7359_s1 + $0x34] ss:$20 sps:$4 sm:$0xff]   ;;  %v5981_v56 = vld [vmem:[%s7359_s1 + $0x4] ss:$20 sps:$4 sm:$0xff]  }
 0x206   : > { %v864_v60 = vpop.xlane.xlu1 %863  ;;  %1618 = vmatprep.subr.bf16.mxu0 %v5979_v54  ;;  %v5985_v57 = vld [vmem:[%s7359_s1 + $0xc] ss:$20 sps:$4 sm:$0xff]  }
 0x207   : > { %v916_v62 = vsel %vm865_vm3, %v864_v60, 0.0  ;;  %v874_v63 = vadd.f32 %v873_v59, %v872_v55  ;;  %v885_v0 = vrot.slane %v884_v58, 2  ;;  %v5980_v55 = vld [vmem:[%s7359_s1 + $0x28] ss:$20 sps:$4 sm:$0xff]   ;;  %1619 = vmatpush1.bf16.msra.mxu0 %v5977_v53  ;;  %v5986_v59 = vld [vmem:[%s7359_s1] ss:$20 sps:$4 sm:$0xff]  }
 0x208   : > { %v917_v2 = vadd.f32 %v916_v62, %v915_v61  ;;  %v907_v11 = vpop.xlane.xlu0 %906  ;;  %1566 = vmatpush1.bf16.msra.mxu1 %v5980_v55  ;;  %1620 = vmatprep.subr.bf16.mxu0 %v5985_v57  ;;  %v5987_v60 = vld [vmem:[%s7359_s1 + $0x25c] ss:$20 sps:$4 sm:$0xff]   ;;  %v5991_v61 = vld [vmem:[%s7359_s1 + $0x264] ss:$20 sps:$4 sm:$0xff]   ;;  %v5989_v62 = vld [vmem:[%s7359_s1 + $0x260] ss:$20 sps:$4 sm:$0xff]  }
 0x209   : > { %v875_v3 = vrot.slane %v874_v63, 1  ;;  %v886_v4 = vadd.f32 %v885_v0, %v884_v58  ;;  %v908_v12 = vrot.slane %v907_v11, 4  ;;  %v5983_v58 = vld [vmem:[%s7359_s1 + $0x8] ss:$20 sps:$4 sm:$0xff]   ;;  %1567 = vmatprep.subr.bf16.mxu1 %v5981_v56 }
 0x20a   : > { %918 = vadd.xlane.f32.xlu1 %v917_v2  ;;  %v5993_v0 = vld [vmem:[%s7359_s1 + $0x234] ss:$20 sps:$4 sm:$0xff]   ;;  %v5997_v2 = vld [vmem:[%s7359_s1 + $0x23c] ss:$20 sps:$4 sm:$0xff]  }
 0x20b   : > { %v876_v5 = vadd.f32 %v875_v3, %v874_v63  ;;  %v887_v6 = vrot.slane %v886_v4, 1  ;;  %v909_v15 = vadd.f32 %v908_v12, %v907_v11  ;;  %1621 = vmatpush1.bf16.msra.mxu0 %v5983_v58  ;;  %v5992_v63 = vld [vmem:[%s7359_s1 + $0x258] ss:$20 sps:$4 sm:$0xff]   ;;  %v6007_v11 = vld [vmem:[%s7359_s1 + $0x1e8] ss:$20 sps:$4 sm:$0xff]  }
 0x20c   : > { %1568 = vmatpush1.bf16.msra.mxu1 %v5986_v59  ;;  %1622 = vmatprep.subr.bf16.mxu0 %v5991_v61  ;;  %v5995_v3 = vld [vmem:[%s7359_s1 + $0x238] ss:$20 sps:$4 sm:$0xff]   ;;  %v6010_v12 = vld [vmem:[%s7359_s1 + $0x1e0] ss:$20 sps:$4 sm:$0xff]  }
 0x20d   : > { %5860 = vpush %v876_v5  ;;  %v888_v7 = vadd.f32 %v887_v6, %v886_v4  ;;  %v910_v17 = vrot.slane %v909_v15, 2  ;;  %1569 = vmatprep.subr.bf16.mxu1 %v5987_v60  ;;  %v5998_v4 = vld [vmem:[%s7359_s1 + $0x230] ss:$20 sps:$4 sm:$0xff]   ;;  %v5999_v5 = vld [vmem:[%s7359_s1 + $0x20c] ss:$20 sps:$4 sm:$0xff]  }
 0x20e   : > { %v6003_v6 = vld [vmem:[%s7359_s1 + $0x214] ss:$20 sps:$4 sm:$0xff]  }
 0x20f   : > { %5862 = vpush %v888_v7  ;;  %v911_v19 = vadd.f32 %v910_v17, %v909_v15  ;;  %1623 = vmatpush2.bf16.msra.mxu0 %v5989_v62  ;;  %v6001_v7 = vld [vmem:[%s7359_s1 + $0x210] ss:$20 sps:$4 sm:$0xff]   ;;  %v6013_v17 = vld [vmem:[%s7359_s1 + $0x1c0] ss:$20 sps:$4 sm:$0xff]  }
 0x210   : > { %1570 = vmatpush2.bf16.msra.mxu1 %v5992_v63  ;;  %1624 = vmatprep.subr.bf16.mxu0 %v5997_v2  ;;  %v6011_v15 = vld [vmem:[%s7359_s1 + $0x1bc] ss:$20 sps:$4 sm:$0xff]  }
 0x211   : > { %v912_v21 = vrot.slane %v911_v19, 1  ;;  %1571 = vmatprep.subr.bf16.mxu1 %v5993_v0 }
 0x213   : > { %v913_v30 = vadd.f32 %v912_v21, %v911_v19  ;;  %1625 = vmatpush2.bf16.msra.mxu0 %v5995_v3  ;;  %v6016_v19 = vld [vmem:[%s7359_s1 + $0x1b8] ss:$20 sps:$4 sm:$0xff]   ;;  %v6017_v21 = vld [vmem:[%s7359_s1 + $0x194] ss:$20 sps:$4 sm:$0xff]  }
 0x214   : > { %1572 = vmatpush2.bf16.msra.mxu1 %v5998_v4  ;;  %1626 = vmatprep.subr.bf16.mxu0 %v6003_v6 }
 0x215   : > { %1573 = vmatprep.subr.bf16.mxu1 %v5999_v5 }
 0x217   : > { %1627 = vmatpush2.bf16.msra.mxu0 %v6001_v7 }
 0x21b   : > { %1003 = vperm.xlu1 %5935, %v829_v8   ;;  %v6004_v8 = vld [vmem:[%s7359_s1 + $0x208] ss:$20 sps:$4 sm:$0xff]  }
 0x21c   : > { %1574 = vmatpush2.bf16.msra.mxu1 %v6004_v8 }
 0x21f   : > { %1008 = vperm.xlu1 %5935, %v830_v9   ;;  %v6005_v9 = vld [vmem:[%s7359_s1 + $0x1e4] ss:$20 sps:$4 sm:$0xff]  }
 0x220   : > { %1575 = vmatprep.subr.bf16.mxu1 %v6005_v9 }
 0x221   : > { %1576 = vmatpush2.bf16.msra.mxu1 %v6010_v12 }
 0x222   : > { %1577 = vmatprep.subr.bf16.mxu1 %v6011_v15  ;;  %v6039_v15 = vld [vmem:[%s7359_s1 + $0x218] ss:$20 sps:$4 sm:$0xff]  }
 0x223   : > { %1013 = vperm.xlu1 %5935, %v831_v10   ;;  %v6009_v10 = vld [vmem:[%s7359_s1 + $0x1ec] ss:$20 sps:$4 sm:$0xff]  }
 0x224   : > { %1628 = vmatprep.subr.bf16.mxu0 %v6009_v10 }
 0x225   : > { %1629 = vmatpush2.bf16.msra.mxu0 %v6007_v11  ;;  %1578 = vmatpush2.bf16.msra.mxu1 %v6016_v19  ;;  %v6038_v11 = vld [vmem:[%s7359_s1 + $0x100] ss:$20 sps:$4 sm:$0xff]  }
 0x226   : > { %1579 = vmatprep.subr.bf16.mxu1 %v6017_v21 }
 0x229   : > { %1580 = vmatpush2.bf16.msra.mxu1 %v6022_v25 }
 0x22a   : > { %1581 = vmatprep.subr.bf16.mxu1 %v6023_v31  ;;  %v6044_v31 = vld [vmem:[%s7359_s1 + $0x88] ss:$20 sps:$4 sm:$0xff]  }
 0x23e   : > { %s5861_s26 = spop %5860 }
 0x23f   : > { %s6372_s2 = smul.f32 0.00024414063, %s5861_s26 }
 0x240   : > { %s5863_s6 = spop %5862 }
 0x241   : > { %s896_s27 = smul.f32 %s6372_s2, %s6372_s2  ;;  %v949_v55 = vstv %s6372_s2 }
 0x242   : > { %s895_s28 = smul.f32 0.00024414063, %s5863_s6  ;;  %s7360_s6 = sld [smem:[#allocation6_spill]]  ;;  %v963_v56 = vsub.f32 %v6325_v18, %v949_v55  ;;  %v964_v57 = vsub.f32 %v6327_v20, %v949_v55  ;;  %v961_v58 = vsub.f32 %v6315_v13, %v949_v55  ;;  %v962_v59 = vsub.f32 %v6317_v14, %v949_v55  ;;  %v6036_v13 = vld [vmem:[%s7359_s1 + $0x128] ss:$20 sps:$4 sm:$0xff]   ;;  %v6037_v14 = vld [vmem:[%s7359_s1 + $0x240] ss:$20 sps:$4 sm:$0xff]  }
 0x244   : > { %s897_s29 = ssub.f32 %s895_s28, %s896_s27 }
 0x246   : > { %s898_s0 = smax.f32 %s7336_s3, %s897_s29 }
 0x247   : > { %s899_s30 = sadd.f32 1e-05, %s898_s0  ;;  %s7361_s0 = smov 0.0  }
 0x248   : > { %v825_v27 = vld [vmem:[%s7360_s6] sm:$0xff]  ;;  %v827_v12 = vld [vmem:[%s7360_s6 + $0x10] sm:$0xff]  ;;  %v828_v21 = vld [vmem:[%s7360_s6 + $0x18] sm:$0xff] }
 0x249   : > { %v900_v16 = vstv %s899_s30 }
 0x24a   : > { %6126 = vrsqrt.f32 %v900_v16  ;;  %v6015_v16 = vld [vmem:[%s7359_s1 + $0x1c4] ss:$20 sps:$4 sm:$0xff]  }
 0x24b   : > { %1630 = vmatprep.subr.bf16.mxu0 %v6015_v16  ;;  %v6040_v16 = vld [vmem:[%s7359_s1 + $0xd8] ss:$20 sps:$4 sm:$0xff]  }
 0x24c   : > { %1631 = vmatpush2.bf16.msra.mxu0 %v6013_v17 }
 0x24d   : > { %1632 = vmatprep.subr.bf16.mxu0 %v6021_v22  ;;  %v6041_v22 = vld [vmem:[%s7359_s1 + $0x1f0] ss:$20 sps:$4 sm:$0xff]  }
 0x250   : > { %1633 = vmatpush2.bf16.msra.mxu0 %v6019_v23  ;;  %v6042_v23 = vld [vmem:[%s7359_s1 + $0xb0] ss:$20 sps:$4 sm:$0xff]  }
 0x251   : > { %1634 = vmatprep.subr.bf16.mxu0 %v6027_v32  ;;  %v6045_v32 = vld [vmem:[%s7359_s1 + $0x1a0] ss:$20 sps:$4 sm:$0xff]  }
 0x254   : > { %1635 = vmatpush2.bf16.msra.mxu0 %v6025_v34  ;;  %v6047_v34 = vld [vmem:[%s7359_s1 + $0x178] ss:$20 sps:$4 sm:$0xff]  }
 0x255   : > { %1636 = vmatprep.subr.bf16.mxu0 %v6033_v40 }
 0x257   : > { %v6127_v35 = vpop.eup %6126 }
 0x258   : > { %5864 = vpush %v6127_v35  ;;  %v6028_v35 = vld [vmem:[%s7359_s1 + $0x168] ss:$20 sps:$4 sm:$0xff]   ;;  %1637 = vmatpush2.bf16.msra.mxu0 %v6031_v39 }
 0x259   : > { %5866 = vpush %v913_v30  ;;  %v826_v30 = vld [vmem:[%s7360_s6 + $0x8] sm:$0xff]  ;;  %1582 = vmatpush2.bf16.msra.mxu1 %v6028_v35 }
 0x25a   : > { %1583 = vmatprep.subr.bf16.mxu1 %v6029_v38  ;;  %v6048_v35 = vld [vmem:[%s7359_s1 + $0x38] ss:$20 sps:$4 sm:$0xff]  }
 0x25d   : > { %1584 = vmatpush2.bf16.msra.mxu1 %v6034_v41 }
 0x25e   : > { %5440 = vmatprep.subr.bf16.mxu1 %v6035_v49 }
 0x289   : > { %s5865_s28 = spop %5864 }
 0x28a   : > { %v955_v33 = vstv %s5865_s28  ;;  %s5867_s26 = spop %5866 }
 0x28b   : > { %v969_v36 = vmul.f32 %v955_v33, %v825_v27  ;;  %v970_v37 = vmul.f32 %v955_v33, %v826_v30  ;;  %s6578_s3 = smul.f32 0.00024414063, %s5867_s26  ;;  %v6043_v27 = vld [vmem:[%s7359_s1 + $0x1c8] ss:$20 sps:$4 sm:$0xff]   ;;  %v6046_v33 = vld [vmem:[%s7359_s1 + $0x60] ss:$20 sps:$4 sm:$0xff]  }
 0x28c   : > { %v832_v30 = vld [vmem:[%s7358_s4 + $0x18] sm:$0xff] }
 0x28d   : > { %975 = vperm.xlu0 %5934, %v969_v36   ;;  %980 = vperm.xlu1 %5935, %v970_v37   ;;  %s933_s27 = smul.f32 %s6578_s3, %s6578_s3  ;;  %v6049_v36 = vld [vmem:[%s7359_s1 + $0x150] ss:$20 sps:$4 sm:$0xff]   ;;  %v950_v38 = vstv %s6578_s3  ;;  %s7340_s3 = smov 64  }
 0x28e   : > { %v6050_v37 = vld [vmem:[%s7359_s1 + $0x10] ss:$20 sps:$4 sm:$0xff]   ;;  %v965_v40 = vsub.f32 %v6335_v24, %v950_v38  ;;  %v966_v41 = vsub.f32 %v6337_v26, %v950_v38 }
 0x293   : > { %v919_v42 = vpop.xlane.xlu1 %918 }
 0x294   : > { %v920_v43 = vrot.slane %v919_v42, 4 }
 0x296   : > { %v921_v44 = vadd.f32 %v920_v43, %v919_v42 }
 0x297   : > { %v1004_v52 = vpop.permute.xlu1 %1003 }
 0x298   : > { %v922_v45 = vrot.slane %v921_v44, 2 }
 0x29a   : > { %v923_v46 = vadd.f32 %v922_v45, %v921_v44  ;;  %v967_v45 = vsub.f32 %v6341_v28, %v950_v38 }
 0x29b   : > { %v1009_v53 = vpop.permute.xlu1 %1008 }
 0x29c   : > { %v924_v47 = vrot.slane %v923_v46, 1 }
 0x29e   : > { %v925_v48 = vadd.f32 %v924_v47, %v923_v46  ;;  %v968_v46 = vsub.f32 %v6343_v29, %v950_v38 }
 0x29f   : > { %v6583_v54 = vpop.permute.xlu1 %1013 }
 0x2a0   : > { %5868 = vpush %v925_v48 }
 0x2d1   : > { %s5869_s29 = spop %5868 }
 0x2d2   : > { %s932_s28 = smul.f32 0.00024414063, %s5869_s29 }
 0x2d4   : > { %s934_s24 = ssub.f32 %s932_s28, %s933_s27  ;;  %s725_s27 = scalar_lea.vmem %s7325_s21, %s7339_s7 }
 0x2d6   : > { %s935_s30 = smax.f32 %s7361_s0, %s934_s24 }
 0x2d7   : > { %s936_s20 = sadd.f32 1e-05, %s935_s30 }
 0x2d9   : > { %v937_v50 = vstv %s936_s20  ;;  %s7362_s20 = sld [smem:[#allocation8_spill]] }
 0x2da   : > { %6128 = vrsqrt.f32 %v937_v50 }
 0x2e7   : > { %v6129_v51 = vpop.eup %6128 }
 0x2e8   : > { %5870 = vpush %v6129_v51 }
 0x308   : > { %v981_v60 = vpop.permute.xlu1 %980  ;;  %v976_v61 = vpop.permute.xlu0 %975 }
 0x309   : > { %v995_v62 = vmul.f32 %v981_v60, %v963_v56  ;;  %v996_v63 = vmul.f32 %v981_v60, %v964_v57  ;;  %v993_v0 = vmul.f32 %v976_v61, %v961_v58  ;;  %v994_v2 = vmul.f32 %v976_v61, %v962_v59 }
 0x30b   : > { %v1023_v3 = vadd.f32 %v1009_v53, %v995_v62  ;;  %v1024_v4 = vadd.f32 %v1009_v53, %v996_v63  ;;  %v1021_v5 = vadd.f32 %v1004_v52, %v993_v0  ;;  %v1022_v6 = vadd.f32 %v1004_v52, %v994_v2 }
 0x30d   : > { %v1030_v7 = vmax.f32 %v1022_v6, 0.0  ;;  %v1032_v8 = vmax.f32 %v1024_v4, 0.0  ;;  %v1029_v9 = vmax.f32 %v1021_v5, 0.0  ;;  %v1031_v18 = vmax.f32 %v1023_v3, 0.0  ;;  %v6051_v5 = vld [vmem:[%s7362_s20 + $0x40] sm:$0xff]  }
 0x30f   : > { %v6590_v10 = vpack.c.bf16 %v1032_v8, %v1030_v7  ;;  %v6592_v20 = vpack.c.bf16 %v1031_v18, %v1029_v9  ;;  %v6055_v8 = vld [vmem:[%s7362_s20 + $0x10] sm:$0xff]  }
 0x311   : > { %1585 = vmatprep.mubr.bf16.mxu1 %v6590_v10  ;;  %1638 = vmatprep.mubr.bf16.mxu0 %v6590_v10 }
 0x312   : > { %1586 = vmatmul.mubr.bf16.vlgmr.msra.gmra.mxu1 %v6592_v20  ;;  %1639 = vmatmul.mubr.bf16.vlgmr.msra.gmra.mxu0 %v6592_v20 }
 0x313   : > { %5441 = vmatpush3.bf16.msra.mxu1 %v6036_v13 }
 0x314   : > { %5442 = vmatprep.subr.bf16.mxu1 %v6037_v14 }
 0x317   : > { %5443 = vmatpush3.bf16.msra.mxu1 %v6038_v11 }
 0x318   : > { %5444 = vmatprep.subr.bf16.mxu1 %v6039_v15 }
 0x319   : > { %s5871_s2 = spop %5870 }
 0x31a   : > { %v956_v17 = vstv %s5871_s2  ;;  %s7363_s2 = sld [smem:[#allocation10_spill]] }
 0x31b   : > { %v971_v19 = vmul.f32 %v956_v17, %v827_v12  ;;  %5445 = vmatpush3.bf16.msra.mxu1 %v6040_v16  ;;  %v972_v25 = vmul.f32 %v956_v17, %v828_v21  ;;  %v6052_v21 = vld [vmem:[%s7362_s20 + $0x48] sm:$0xff]  }
 0x31c   : > { %5446 = vmatprep.subr.bf16.mxu1 %v6041_v22 }
 0x31d   : > { %985 = vperm.xlu1 %5935, %v971_v19  }
 0x31f   : > { %5447 = vmatpush3.bf16.msra.mxu1 %v6042_v23  ;;  %v6053_v23 = vld [vmem:[%s7362_s20 + $0x60] sm:$0xff]  }
 0x320   : > { %5448 = vmatprep.subr.bf16.mxu1 %v6043_v27 }
 0x321   : > { %990 = vperm.xlu1 %5935, %v972_v25  }
 0x323   : > { %5449 = vmatpush3.bf16.msra.mxu1 %v6044_v31  ;;  %v6054_v31 = vld [vmem:[%s7362_s20 + $0x68] sm:$0xff]  }
 0x324   : > { %5450 = vmatprep.subr.bf16.mxu1 %v6045_v32 }
 0x325   : > { %1018 = vperm.xlu1 %5935, %v832_v30  }
 0x327   : > { %5451 = vmatpush3.bf16.msra.mxu1 %v6046_v33 }
 0x328   : > { %5452 = vmatprep.subr.bf16.mxu1 %v6047_v34 }
 0x32b   : > { %5453 = vmatpush3.bf16.msra.mxu1 %v6048_v35 }
 0x32c   : > { %5454 = vmatprep.subr.bf16.mxu1 %v6049_v36 }
 0x32f   : > { %5455 = vmatpush3.bf16.msra.mxu1 %v6050_v37 }
 0x398   : > { %v986_v39 = vpop.permute.xlu1 %985 }
 0x399   : > { %v997_v42 = vmul.f32 %v986_v39, %v965_v40  ;;  %v998_v43 = vmul.f32 %v986_v39, %v966_v41  ;;  %v6067_v40 = vld [vmem:[%s7362_s20 + $0x80] sm:$0xff]   ;;  %v6068_v41 = vld [vmem:[%s7362_s20 + $0x88] sm:$0xff]  }
 0x39b   : > { %v1025_v47 = vadd.f32 %v6583_v54, %v997_v42  ;;  %v1026_v48 = vadd.f32 %v6583_v54, %v998_v43 }
 0x39c   : > { %v991_v44 = vpop.permute.xlu1 %990 }
 0x39d   : > { %v999_v49 = vmul.f32 %v991_v44, %v967_v45  ;;  %v1000_v50 = vmul.f32 %v991_v44, %v968_v46  ;;  %v1034_v56 = vmax.f32 %v1026_v48, 0.0  ;;  %v1033_v26 = vmax.f32 %v1025_v47, 0.0  ;;  %v6056_v44 = vld [vmem:[%s7362_s20 + $0x18] sm:$0xff]   ;;  %v6057_v45 = vld [vmem:[%s7362_s20] sm:$0xff]   ;;  %v6058_v46 = vld [vmem:[%s7362_s20 + $0x8] sm:$0xff]  }
 0x39e   : > { %v6059_v47 = vld [vmem:[%s7362_s20 + $0x20] sm:$0xff]   ;;  %v6060_v48 = vld [vmem:[%s7362_s20 + $0x28] sm:$0xff]  }
 0x3a0   : > { %v1019_v51 = vpop.permute.xlu1 %1018 }
 0x3a1   : > { %v1027_v52 = vadd.f32 %v1019_v51, %v999_v49  ;;  %v1028_v53 = vadd.f32 %v1019_v51, %v1000_v50  ;;  %v6061_v50 = vld [vmem:[%s7362_s20 + $0x30] sm:$0xff]  }
 0x3a3   : > { %v1035_v55 = vmax.f32 %v1027_v52, 0.0  ;;  %v1036_v24 = vmax.f32 %v1028_v53, 0.0  ;;  %v6062_v52 = vld [vmem:[%s7362_s20 + $0x38] sm:$0xff]  }
 0x3a5   : > { %v1040_v57 = vpack.c.bf16 %v1036_v24, %v1034_v56  ;;  %v1039_v58 = vpack.c.bf16 %v1035_v55, %v1033_v26  ;;  %v6063_v55 = vld [vmem:[%s7362_s20 + $0x50] sm:$0xff]   ;;  %v6064_v56 = vld [vmem:[%s7362_s20 + $0x58] sm:$0xff]  }
 0x3a7   : > { %1595 = vmatprep.mubr.bf16.mxu1 %v1040_v57  ;;  %1648 = vmatprep.mubr.bf16.mxu0 %v1040_v57 }
 0x3a8   : > { %1596 = vmatmul.mubr.bf16.gmra.mxu1 %v1039_v58  ;;  %1649 = vmatmul.mubr.bf16.gmra.mxu0 %v1039_v58 }
 0x3a9   : > { %1691 = vmatprep.mubr.bf16.mxu1 %v6590_v10  ;;  %5602 = vmatprep.mubr.msk.bf16.mxu0 %vm1745_vm4, %v6055_v8 }
 0x3b0   : > { %1692 = vmatmul.mubr.bf16.vlgmr.msra.gmra.mxu1 %v6592_v20 }
 0x3b1   : > { %1699 = vmatprep.mubr.bf16.mxu1 %v1040_v57  ;;  %v6065_v57 = vld [vmem:[%s7362_s20 + $0x70] sm:$0xff]  }
 0x3b8   : > { %1700 = vmatmul.mubr.bf16.gmra.mxu1 %v1039_v58 }
 0x3b9   : > { %5634 = vmatprep.mubr.msk.bf16.mxu1 %vm1745_vm4, %v6051_v5 }
 0x3d2   : > { %v1587_v28 = vpop.f32.mrf.mxu1  ;;  %v1640_v29 = vpop.f32.mrf.mxu0 }
 0x3d4   : > { %v1589_v54 = vpop.f32.mrf.mxu1  ;;  %v1642_v61 = vpop.f32.mrf.mxu0 }
 0x3d6   : > { %v1591_v59 = vpop.f32.mrf.mxu1  ;;  %v1644_v0 = vpop.f32.mrf.mxu0 }
 0x3d7   : > { %v6661_v60 = vpack.c.bf16 %v1591_v59, %v1587_v28  ;;  %v1710_v2 = vpack.c.bf16 %v1644_v0, %v1640_v29  ;;  %v6066_v28 = vld [vmem:[%s7362_s20 + $0x78] sm:$0xff]   ;;  %v6069_v29 = vld [vmem:[%s7363_s2] sm:$0xff]  }
 0x3d8   : > { %v1593_v62 = vpop.f32.mrf.mxu1  ;;  %v1646_v3 = vpop.f32.mrf.mxu0 }
 0x3d9   : > { %1739 = vrot.lane.b32.xlu0 %v6661_v60, %s7340_s3  ;;  %v6665_v63 = vpack.c.bf16 %v1593_v62, %v1589_v54  ;;  %v1711_v4 = vpack.c.bf16 %v1646_v3, %v1642_v61 }
 0x3dd   : > { %1957 = vrot.lane.b32.xlu0 %v6665_v63, %s7340_s3 }
 0x3e1   : > { %2113 = vrot.lane.b32.xlu0 %v1710_v2, %s7340_s3 }
 0x3e5   : > { %2269 = vrot.lane.b32.xlu0 %v1711_v4, %s7340_s3 }
 0x44b   : > { %v1740_v43 = vpop.permute.xlu0 %1739 }
 0x44f   : > { %v1958_v51 = vpop.permute.xlu0 %1957 }
 0x453   : > { %v2114_v24 = vpop.permute.xlu0 %2113 }
 0x457   : > { %v2270_v58 = vpop.permute.xlu0 %2269 }
 0x468   : > { %v1597_v6 = vpop.f32.mrf.mxu1  ;;  %v1650_v7 = vpop.f32.mrf.mxu0 }
 0x46a   : > { %v1599_v9 = vpop.f32.mrf.mxu1  ;;  %v1652_v18 = vpop.f32.mrf.mxu0 }
 0x46c   : > { %v1601_v10 = vpop.f32.mrf.mxu1  ;;  %v1654_v20 = vpop.f32.mrf.mxu0 }
 0x46d   : > { %v1713_v13 = vpack.c.bf16 %v1601_v10, %v1597_v6  ;;  %v1715_v14 = vpack.c.bf16 %v1654_v20, %v1650_v7 }
 0x46e   : > { %v1603_v11 = vpop.f32.mrf.mxu1  ;;  %v1656_v12 = vpop.f32.mrf.mxu0 }
 0x46f   : > { %5630 = vmatprep.subr.bf16.mxu1 %v1715_v14  ;;  %1741 = vrot.lane.b32.xlu1 %v1713_v13, %s7340_s3  ;;  %v1714_v16 = vpack.c.bf16 %v1603_v11, %v1599_v9  ;;  %v1716_v19 = vpack.c.bf16 %v1656_v12, %v1652_v18 }
 0x470   : > { %v5456_v15 = vpop.f32.mrf.mxu1  ;;  %5631 = vmatpush3.bf16.msra.mxu1 %v1715_v14 }
 0x471   : > { %5632 = vmatprep.subr.bf16.mxu1 %v1710_v2 }
 0x472   : > { %v5457_v17 = vpop.f32.mrf.mxu1 }
 0x473   : > { %1959 = vrot.lane.b32.xlu1 %v1714_v16, %s7340_s3  ;;  %v5458_v37 = vadd.f32 %v5457_v17, %v5456_v15 }
 0x474   : > { %v5459_v22 = vpop.f32.mrf.mxu1  ;;  %5633 = vmatpush3.bf16.msra.mxu1 %v1710_v2 }
 0x475   : > { %5646 = vmatprep.subr.bf16.mxu1 %v1716_v19 }
 0x476   : > { %v5460_v25 = vpop.f32.mrf.mxu1 }
 0x477   : > { %2115 = vrot.lane.b32.xlu1 %v1715_v14, %s7340_s3  ;;  %5635 = vmatmul.mubr.msk.bf16.vlgmr.msra.gmra.mxu1 %vm1745_vm4, %v6052_v21  ;;  %v5461_v34 = vadd.f32 %v5460_v25, %v5459_v22 }
 0x478   : > { %v5462_v27 = vpop.f32.mrf.mxu1  ;;  %5647 = vmatpush3.bf16.msra.mxu1 %v1716_v19  ;;  %5650 = vmatprep.mubr.msk.bf16.mxu1 %vm1745_vm4, %v6053_v23 }
 0x479   : > { %5648 = vmatprep.subr.bf16.mxu1 %v1711_v4  ;;  %v1712_v39 = vpack.c.bf16 %v5461_v34, %v5458_v37 }
 0x47a   : > { %v5463_v30 = vpop.f32.mrf.mxu1 }
 0x47b   : > { %2271 = vrot.lane.b32.xlu1 %v1716_v19, %s7340_s3  ;;  %v5464_v35 = vadd.f32 %v5463_v30, %v5462_v27 }
 0x47c   : > { %v5465_v32 = vpop.f32.mrf.mxu1  ;;  %5649 = vmatpush3.bf16.msra.mxu1 %v1711_v4 }
 0x47e   : > { %v5466_v33 = vpop.f32.mrf.mxu1 }
 0x47f   : > { %v5467_v36 = vadd.f32 %v5466_v33, %v5465_v32  ;;  %5651 = vmatmul.mubr.msk.bf16.vlgmr.msra.gmra.mxu1 %vm1745_vm4, %v6054_v31 }
 0x480   : > { %5666 = vmatprep.mubr.msk.bf16.mxu1 %vm1745_vm4, %v6067_v40 }
 0x481   : > { %v1717_v38 = vpack.c.bf16 %v5467_v36, %v5464_v35 }
 0x483   : > { %5662 = vmatprep.subr.bf16.mxu1 %v1717_v38 }
 0x484   : > { %5663 = vmatpush3.bf16.msra.mxu1 %v1717_v38 }
 0x485   : > { %5664 = vmatprep.subr.bf16.mxu1 %v1712_v39 }
 0x488   : > { %5665 = vmatpush3.bf16.msra.mxu1 %v1712_v39 }
 0x48b   : > { %5667 = vmatmul.mubr.msk.bf16.vlgmr.msra.gmra.mxu1 %vm1745_vm4, %v6068_v41 }
 0x4e1   : > { %v1742_v42 = vpop.permute.xlu1 %1741 }
 0x4e2   : > { %5598 = vmatprep.subr.bf16.mxu0 %v1742_v42 }
 0x4e3   : > { %5599 = vmatpush3.bf16.msra.mxu0 %v1742_v42 }
 0x4e4   : > { %5600 = vmatprep.subr.bf16.mxu0 %v1740_v43 }
 0x4e5   : > { %v1960_v49 = vpop.permute.xlu1 %1959 }
 0x4e7   : > { %5601 = vmatpush3.bf16.msra.mxu0 %v1740_v43 }
 0x4e8   : > { %5606 = vmatprep.subr.bf16.mxu0 %v1713_v13 }
 0x4e9   : > { %v2116_v53 = vpop.permute.xlu1 %2115 }
 0x4ea   : > { %5603 = vmatmul.mubr.msk.bf16.vlgmr.msra.gmra.mxu0 %vm1745_vm4, %v6056_v44 }
 0x4eb   : > { %5607 = vmatpush3.bf16.msra.mxu0 %v1713_v13  ;;  %5610 = vmatprep.mubr.msk.bf16.mxu0 %vm1745_vm4, %v6057_v45 }
 0x4ec   : > { %5608 = vmatprep.subr.bf16.mxu0 %v6661_v60 }
 0x4ed   : > { %v2272_v26 = vpop.permute.xlu1 %2271 }
 0x4ef   : > { %5609 = vmatpush3.bf16.msra.mxu0 %v6661_v60 }
 0x4f0   : > { %5614 = vmatprep.subr.bf16.mxu0 %v1714_v16 }
 0x4f2   : > { %5611 = vmatmul.mubr.msk.bf16.vlgmr.msra.gmra.mxu0 %vm1745_vm4, %v6058_v46 }
 0x4f3   : > { %5615 = vmatpush3.bf16.msra.mxu0 %v1714_v16  ;;  %5618 = vmatprep.mubr.msk.bf16.mxu0 %vm1745_vm4, %v6059_v47 }
 0x4f4   : > { %5616 = vmatprep.subr.bf16.mxu0 %v6665_v63 }
 0x4f7   : > { %5617 = vmatpush3.bf16.msra.mxu0 %v6665_v63 }
 0x4f8   : > { %5622 = vmatprep.subr.bf16.mxu0 %v1960_v49 }
 0x4fa   : > { %5619 = vmatmul.mubr.msk.bf16.vlgmr.msra.gmra.mxu0 %vm1745_vm4, %v6060_v48 }
 0x4fb   : > { %5623 = vmatpush3.bf16.msra.mxu0 %v1960_v49  ;;  %5626 = vmatprep.mubr.msk.bf16.mxu0 %vm1745_vm4, %v6061_v50 }
 0x4fc   : > { %5624 = vmatprep.subr.bf16.mxu0 %v1958_v51 }
 0x4ff   : > { %5625 = vmatpush3.bf16.msra.mxu0 %v1958_v51 }
 0x500   : > { %5638 = vmatprep.subr.bf16.mxu0 %v2116_v53 }
 0x502   : > { %5627 = vmatmul.mubr.msk.bf16.vlgmr.msra.gmra.mxu0 %vm1745_vm4, %v6062_v52 }
 0x503   : > { %5639 = vmatpush3.bf16.msra.mxu0 %v2116_v53  ;;  %5642 = vmatprep.mubr.msk.bf16.mxu0 %vm1745_vm4, %v6063_v55 }
 0x504   : > { %5640 = vmatprep.subr.bf16.mxu0 %v2114_v24 }
 0x507   : > { %5641 = vmatpush3.bf16.msra.mxu0 %v2114_v24 }
 0x508   : > { %5654 = vmatprep.subr.bf16.mxu0 %v2272_v26 }
 0x50a   : > { %5643 = vmatmul.mubr.msk.bf16.vlgmr.msra.gmra.mxu0 %vm1745_vm4, %v6064_v56 }
 0x50b   : > { %5655 = vmatpush3.bf16.msra.mxu0 %v2272_v26  ;;  %5658 = vmatprep.mubr.msk.bf16.mxu0 %vm1745_vm4, %v6065_v57 }
 0x50c   : > { %5656 = vmatprep.subr.bf16.mxu0 %v2270_v58 }
 0x50f   : > { %5657 = vmatpush3.bf16.msra.mxu0 %v2270_v58 }
 0x512   : > { %5659 = vmatmul.mubr.msk.bf16.vlgmr.msra.gmra.mxu0 %vm1745_vm4, %v6066_v28 }
 0x513   : > { %5674 = vmatprep.mubr.msk.bf16.mxu0 %vm1745_vm4, %v6069_v29 }
 0x537   : > { %v5636_v61 = vpop.f32.mrf.mxu1 }
 0x539   : > { %v2077_v0 = vpop.f32.mrf.mxu1 }
 0x53b   : > { %v5637_v4 = vpop.f32.mrf.mxu1 }
 0x53d   : > { %v2080_v7 = vpop.f32.mrf.mxu1 }
 0x53f   : > { %v5652_v18 = vpop.f32.mrf.mxu1 }
 0x541   : > { %v2233_v13 = vpop.f32.mrf.mxu1 }
 0x543   : > { %v5653_v17 = vpop.f32.mrf.mxu1 }
 0x545   : > { %v2236_v32 = vpop.f32.mrf.mxu1 }
 0x54b   : > { %v5668_v41 = vpop.f32.mrf.mxu1 }
 0x54d   : > { %v2389_v49 = vpop.f32.mrf.mxu1 }
 0x54f   : > { %v5669_v57 = vpop.f32.mrf.mxu1 }
 0x5aa   : > { %v5604_v54 = vpop.f32.mrf.mxu0 }
 0x5ac   : > { %v1786_v59 = vpop.f32.mrf.mxu0 }
 0x5ae   : > { %v5605_v60 = vpop.f32.mrf.mxu0 }
 0x5b0   : > { %v1789_v62 = vpop.f32.mrf.mxu0 }
 0x5b2   : > { %v5612_v63 = vpop.f32.mrf.mxu0 }
 0x5b3   : > { %v1860_v14 = vadd.f32 %v5612_v63, %v5604_v54 }
 0x5b4   : > { %v1851_v2 = vpop.f32.mrf.mxu0 }
 0x5b5   : > { %v1852_v12 = vadd.f32 %v1851_v2, %v1786_v59  ;;  %v6070_v2 = vld [vmem:[%s7363_s2 + $0x8] sm:$0xff]  }
 0x5b6   : > { %v5613_v3 = vpop.f32.mrf.mxu0 }
 0x5b7   : > { %v1863_v19 = vadd.f32 %v5613_v3, %v5605_v60  ;;  %v6071_v3 = vld [vmem:[%s7363_s2 + $0x10] sm:$0xff]  }
 0x5b8   : > { %v1854_v5 = vpop.f32.mrf.mxu0 }
 0x5b9   : > { %v1855_v25 = vadd.f32 %v1854_v5, %v1789_v62 }
 0x5ba   : > { %v5620_v6 = vpop.f32.mrf.mxu0 }
 0x5bb   : > { %v1938_v15 = vadd.f32 %v5620_v6, %v1860_v14 }
 0x5bc   : > { %v1921_v8 = vpop.f32.mrf.mxu0 }
 0x5bd   : > { %v1936_v21 = vadd.f32 %v1921_v8, %v1852_v12 }
 0x5be   : > { %v5621_v9 = vpop.f32.mrf.mxu0 }
 0x5bf   : > { %v1939_v27 = vadd.f32 %v5621_v9, %v1863_v19 }
 0x5c0   : > { %v1924_v10 = vpop.f32.mrf.mxu0 }
 0x5c1   : > { %v1937_v33 = vadd.f32 %v1924_v10, %v1855_v25 }
 0x5c2   : > { %v5628_v20 = vpop.f32.mrf.mxu0 }
 0x5c3   : > { %v2020_v22 = vadd.f32 %v5628_v20, %v1938_v15 }
 0x5c4   : > { %v2003_v11 = vpop.f32.mrf.mxu0 }
 0x5c5   : > { %v2018_v30 = vadd.f32 %v2003_v11, %v1936_v21  ;;  %v2094_v34 = vadd.f32 %v5636_v61, %v2020_v22  ;;  %v2392_v61 = vpop.f32.mrf.mxu1 }
 0x5c6   : > { %v5629_v16 = vpop.f32.mrf.mxu0 }
 0x5c7   : > { %v2021_v35 = vadd.f32 %v5629_v16, %v1939_v27  ;;  %v2092_v37 = vadd.f32 %v2077_v0, %v2018_v30 }
 0x5c8   : > { %v2006_v23 = vpop.f32.mrf.mxu0 }
 0x5c9   : > { %v2019_v38 = vadd.f32 %v2006_v23, %v1937_v33  ;;  %v2095_v42 = vadd.f32 %v5637_v4, %v2021_v35  ;;  %v6072_v4 = vld [vmem:[%s7363_s2 + $0x18] sm:$0xff]  }
 0x5ca   : > { %v5644_v31 = vpop.f32.mrf.mxu0 }
 0x5cb   : > { %v2176_v39 = vadd.f32 %v5644_v31, %v2094_v34  ;;  %v2093_v45 = vadd.f32 %v2080_v7, %v2019_v38 }
 0x5cc   : > { %v2159_v36 = vpop.f32.mrf.mxu0 }
 0x5cd   : > { %v2174_v43 = vadd.f32 %v2159_v36, %v2092_v37  ;;  %v2250_v46 = vadd.f32 %v5652_v18, %v2176_v39 }
 0x5ce   : > { %v5645_v40 = vpop.f32.mrf.mxu0 }
 0x5cf   : > { %v2177_v47 = vadd.f32 %v5645_v40, %v2095_v42  ;;  %v2248_v50 = vadd.f32 %v2233_v13, %v2174_v43 }
 0x5d0   : > { %v2162_v44 = vpop.f32.mrf.mxu0 }
 0x5d1   : > { %v2175_v51 = vadd.f32 %v2162_v44, %v2093_v45  ;;  %v2251_v55 = vadd.f32 %v5653_v17, %v2177_v47 }
 0x5d2   : > { %v5660_v48 = vpop.f32.mrf.mxu0 }
 0x5d3   : > { %v2332_v52 = vadd.f32 %v5660_v48, %v2250_v46  ;;  %v2249_v58 = vadd.f32 %v2236_v32, %v2175_v51 }
 0x5d4   : > { %v2315_v53 = vpop.f32.mrf.mxu0 }
 0x5d5   : > { %v2330_v24 = vadd.f32 %v2315_v53, %v2248_v50  ;;  %v2406_v56 = vadd.f32 %v5668_v41, %v2332_v52 }
 0x5d6   : > { %v5661_v26 = vpop.f32.mrf.mxu0 }
 0x5d7   : > { %2411 = vst.msk [vmem:[%s725_s27 + $0x10] sm:$0xff] %vm2408_vm5, %v2406_v56  ;;  %v2333_v28 = vadd.f32 %v5661_v26, %v2251_v55  ;;  %v2404_v29 = vadd.f32 %v2389_v49, %v2330_v24 }
 0x5d8   : > { %v2318_v54 = vpop.f32.mrf.mxu0 }
 0x5d9   : > { %2409 = vst.msk [vmem:[%s725_s27] sm:$0xff] %vm2408_vm5, %v2404_v29  ;;  %v2331_v59 = vadd.f32 %v2318_v54, %v2249_v58  ;;  %v2407_v60 = vadd.f32 %v5669_v57, %v2333_v28 }
 0x5db   : > { %2412 = vst.msk [vmem:[%s725_s27 + $0x18] sm:$0xff] %vm2408_vm5, %v2407_v60  ;;  %v2422_v62 = vpack.c.bf16 %v2407_v60, %v2406_v56  ;;  %v2405_v63 = vadd.f32 %v2392_v61, %v2331_v59 }
 0x5dd   : > { %2410 = vst.msk [vmem:[%s725_s27 + $0x8] sm:$0xff] %vm2408_vm5, %v2405_v63  ;;  %v2421_v0 = vpack.c.bf16 %v2405_v63, %v2404_v29  ;;  %5670 = vmatprep.subr.bf16.mxu0 %v2422_v62 }
 0x5de   : > { %5671 = vmatpush3.bf16.msra.mxu0 %v2422_v62 }
 0x5df   : > { %5672 = vmatprep.subr.bf16.mxu0 %v2421_v0 }
 0x5e2   : > { %5673 = vmatpush3.bf16.msra.mxu0 %v2421_v0 }
 0x5e5   : > { %5675 = vmatmul.mubr.msk.bf16.vlgmr.msra.gmra.mxu0 %vm1745_vm4, %v6070_v2 }
 0x5e6   : > { %5678 = vmatprep.mubr.msk.bf16.mxu0 %vm1745_vm4, %v6071_v3 }
 0x5ed   : > { %5679 = vmatmul.mubr.msk.bf16.gmra.mxu0 %vm1745_vm4, %v6072_v4 }
 0x5ee   : > { %3177 = vmatprep.mubr.bf16.mxu0 %v6150_v1 }
 0x6a5   : > { %v6778_v5 = vpop.f32.mrf.mxu0 }
 0x6a6   : > { %v2542_v6 = vsel %vm2408_vm5, %v6778_v5, 0.0  ;;  %v2562_v17 = vmul.f32 %v6778_v5, %v6778_v5 }
 0x6a7   : > { %v6782_v7 = vpop.f32.mrf.mxu0  ;;  %2543 = vadd.xlane.f32.xlu0 %v2542_v6 }
 0x6a8   : > { %v2536_v8 = vsel %vm2408_vm5, %v6782_v7, 0.0  ;;  %v2560_v9 = vmul.f32 %v6782_v7, %v6782_v7  ;;  %v2574_v23 = vsel %vm2408_vm5, %v2562_v17, 0.0 }
 0x6a9   : > { %2537 = vadd.xlane.f32.xlu1 %v2536_v8  ;;  %v6788_v18 = vpop.f32.mrf.mxu0 }
 0x6aa   : > { %v2568_v20 = vsel %vm2408_vm5, %v2560_v9, 0.0  ;;  %v2545_v12 = vsel %vm2408_vm5, %v6788_v18, 0.0  ;;  %v2563_v16 = vmul.f32 %v6788_v18, %v6788_v18 }
 0x6ab   : > { %v6790_v10 = vpop.f32.mrf.mxu0 }
 0x6ac   : > { %v2539_v13 = vsel %vm2408_vm5, %v6790_v10, 0.0  ;;  %v2561_v14 = vmul.f32 %v6790_v10, %v6790_v10  ;;  %v2577_v22 = vsel %vm2408_vm5, %v2563_v16, 0.0 }
 0x6ad   : > { %2569 = vadd.xlane.f32.xlu1 %v2568_v20  ;;  %2540 = vadd.xlane.f32.xlu0 %v2539_v13  ;;  %v6797_v11 = vpop.f32.mrf.mxu0  ;;  %v2535_v13 = vld [vmem:[%s7312_s8 + $0x38] sm:$0xff] }
 0x6ae   : > { %v2571_v15 = vsel %vm2408_vm5, %v2561_v14, 0.0  ;;  %v2566_v19 = vmul.f32 %v6797_v11, %v6797_v11  ;;  %v2554_v27 = vsel %vm2408_vm5, %v6797_v11, 0.0  ;;  %v2533_v14 = vld [vmem:[%s7312_s8 + $0x28] sm:$0xff] }
 0x6af   : > { %v6808_v21 = vpop.f32.mrf.mxu0 }
 0x6b0   : > { %v2586_v25 = vsel %vm2408_vm5, %v2566_v19, 0.0  ;;  %v2564_v30 = vmul.f32 %v6808_v21, %v6808_v21  ;;  %v2548_v33 = vsel %vm2408_vm5, %v6808_v21, 0.0 }
 0x6b1   : > { %2546 = vadd.xlane.f32.xlu1 %v2545_v12  ;;  %2572 = vadd.xlane.f32.xlu0 %v2571_v15  ;;  %v6817_v31 = vpop.f32.mrf.mxu0 }
 0x6b2   : > { %v2580_v32 = vsel %vm2408_vm5, %v2564_v30, 0.0  ;;  %v2557_v36 = vsel %vm2408_vm5, %v6817_v31, 0.0  ;;  %v2567_v55 = vmul.f32 %v6817_v31, %v6817_v31 }
 0x6b3   : > { %v6822_v34 = vpop.f32.mrf.mxu0 }
 0x6b4   : > { %v2551_v35 = vsel %vm2408_vm5, %v6822_v34, 0.0  ;;  %v2565_v37 = vmul.f32 %v6822_v34, %v6822_v34  ;;  %v2589_v29 = vsel %vm2408_vm5, %v2567_v55, 0.0 }
 0x6b5   : > { %2578 = vadd.xlane.f32.xlu1 %v2577_v22  ;;  %2575 = vadd.xlane.f32.xlu0 %v2574_v23 }
 0x6b6   : > { %v2583_v38 = vsel %vm2408_vm5, %v2565_v37, 0.0 }
 0x6b9   : > { %2587 = vadd.xlane.f32.xlu1 %v2586_v25  ;;  %2555 = vadd.xlane.f32.xlu0 %v2554_v27 }
 0x6bd   : > { %2581 = vadd.xlane.f32.xlu1 %v2580_v32  ;;  %2549 = vadd.xlane.f32.xlu0 %v2548_v33 }
 0x6c1   : > { %2552 = vadd.xlane.f32.xlu1 %v2551_v35  ;;  %2558 = vadd.xlane.f32.xlu0 %v2557_v36 }
 0x6c5   : > { %2584 = vadd.xlane.f32.xlu0 %v2583_v38 }
 0x730   : > { %v2544_v39 = vpop.xlane.xlu0 %2543 }
 0x731   : > { %v2595_v46 = vsel %vm865_vm3, %v2544_v39, 0.0 }
 0x732   : > { %v2538_v40 = vpop.xlane.xlu1 %2537 }
 0x733   : > { %v2592_v43 = vsel %vm865_vm3, %v2538_v40, 0.0 }
 0x736   : > { %v2570_v41 = vpop.xlane.xlu1 %2569  ;;  %v2541_v42 = vpop.xlane.xlu0 %2540 }
 0x737   : > { %v2593_v44 = vsel %vm865_vm3, %v2541_v42, 0.0  ;;  %v2608_v53 = vsel %vm865_vm3, %v2570_v41, 0.0 }
 0x738   : > { %v2594_v45 = vadd.f32 %v2593_v44, %v2592_v43 }
 0x73a   : > { %v2547_v47 = vpop.xlane.xlu1 %2546  ;;  %v2573_v48 = vpop.xlane.xlu0 %2572  ;;  %v2596_v49 = vadd.f32 %v2595_v46, %v2594_v45  ;;  %v2534_v46 = vld [vmem:[%s7312_s8 + $0x30] sm:$0xff] }
 0x73b   : > { %v2597_v50 = vsel %vm865_vm3, %v2547_v47, 0.0  ;;  %v2609_v51 = vsel %vm865_vm3, %v2573_v48, 0.0  ;;  %v2532_v47 = vld [vmem:[%s7312_s8 + $0x20] sm:$0xff] }
 0x73c   : > { %v2598_v52 = vadd.f32 %v2597_v50, %v2596_v49  ;;  %v2610_v24 = vadd.f32 %v2609_v51, %v2608_v53 }
 0x73e   : > { %v2579_v56 = vpop.xlane.xlu1 %2578  ;;  %v2576_v26 = vpop.xlane.xlu0 %2575  ;;  %2599 = vadd.xlane.f32.xlu1 %v2598_v52 }
 0x73f   : > { %v2611_v57 = vsel %vm865_vm3, %v2576_v26, 0.0  ;;  %v2613_v28 = vsel %vm865_vm3, %v2579_v56, 0.0 }
 0x740   : > { %v2612_v58 = vadd.f32 %v2611_v57, %v2610_v24 }
 0x742   : > { %v2588_v54 = vpop.xlane.xlu1 %2587  ;;  %2590 = vadd.xlane.f32.xlu1 %v2589_v29  ;;  %v2614_v59 = vadd.f32 %v2613_v28, %v2612_v58  ;;  %v2556_v60 = vpop.xlane.xlu0 %2555 }
 0x743   : > { %v2640_v3 = vsel %vm865_vm3, %v2556_v60, 0.0  ;;  %v2656_v22 = vsel %vm865_vm3, %v2588_v54, 0.0 }
 0x744   : > { %2615 = vadd.xlane.f32.xlu0 %v2614_v59 }
 0x746   : > { %v2582_v61 = vpop.xlane.xlu1 %2581  ;;  %v2550_v62 = vpop.xlane.xlu0 %2549 }
 0x747   : > { %v2637_v63 = vsel %vm865_vm3, %v2550_v62, 0.0  ;;  %v2653_v15 = vsel %vm865_vm3, %v2582_v61, 0.0 }
 0x74a   : > { %v2553_v0 = vpop.xlane.xlu1 %2552  ;;  %v2559_v2 = vpop.xlane.xlu0 %2558 }
 0x74b   : > { %v2638_v4 = vsel %vm865_vm3, %v2553_v0, 0.0  ;;  %v2642_v8 = vsel %vm865_vm3, %v2559_v2, 0.0 }
 0x74c   : > { %v2639_v6 = vadd.f32 %v2638_v4, %v2637_v63 }
 0x74e   : > { %v2641_v9 = vadd.f32 %v2640_v3, %v2639_v6  ;;  %v2585_v12 = vpop.xlane.xlu0 %2584 }
 0x74f   : > { %v2654_v16 = vsel %vm865_vm3, %v2585_v12, 0.0 }
 0x750   : > { %v2643_v20 = vadd.f32 %v2642_v8, %v2641_v9  ;;  %v2655_v17 = vadd.f32 %v2654_v16, %v2653_v15  ;;  %v2531_v16 = vld [vmem:[%s7312_s8 + $0x18] sm:$0xff] }
 0x752   : > { %2644 = vadd.xlane.f32.xlu0 %v2643_v20  ;;  %v2657_v30 = vadd.f32 %v2656_v22, %v2655_v17  ;;  %v2530_v17 = vld [vmem:[%s7312_s8 + $0x10] sm:$0xff] }
 0x768   : > { %2815 = vperm.xlu0 %5934, %v2535_v13  }
 0x76c   : > { %2805 = vperm.xlu0 %5934, %v2533_v14  }
 0x7c7   : > { %v2600_v19 = vpop.xlane.xlu1 %2599 }
 0x7c8   : > { %v2601_v23 = vrot.slane %v2600_v19, 4 }
 0x7ca   : > { %v2602_v25 = vadd.f32 %v2601_v23, %v2600_v19 }
 0x7cb   : > { %v2591_v27 = vpop.xlane.xlu1 %2590 }
 0x7cc   : > { %v2603_v32 = vrot.slane %v2602_v25, 2  ;;  %v2658_v33 = vsel %vm865_vm3, %v2591_v27, 0.0  ;;  %v2529_v27 = vld [vmem:[%s7312_s8 + $0x8] sm:$0xff] }
 0x7cd   : > { %v2616_v35 = vpop.xlane.xlu0 %2615  ;;  %v2659_v36 = vadd.f32 %v2658_v33, %v2657_v30  ;;  %v2528_v30 = vld [vmem:[%s7312_s8] sm:$0xff] }
 0x7ce   : > { %v2617_v37 = vrot.slane %v2616_v35, 4  ;;  %v2604_v38 = vadd.f32 %v2603_v32, %v2602_v25  ;;  %v6073_v32 = vld [vmem:[%s7313_s9] sm:$0xff]  }
 0x7cf   : > { %2660 = vadd.xlane.f32.xlu1 %v2659_v36  ;;  %5690 = vmatprep.mubr.msk.bf16.mxu1 %vm2408_vm5, %v6073_v32 }
 0x7d0   : > { %v2618_v39 = vadd.f32 %v2617_v37, %v2616_v35  ;;  %v2605_v40 = vrot.slane %v2604_v38, 1 }
 0x7d2   : > { %v2619_v41 = vrot.slane %v2618_v39, 2  ;;  %v2606_v42 = vadd.f32 %v2605_v40, %v2604_v38 }
 0x7d4   : > { %5872 = vpush %v2606_v42  ;;  %v2620_v43 = vadd.f32 %v2619_v41, %v2618_v39 }
 0x7d6   : > { %v2621_v44 = vrot.slane %v2620_v43, 1 }
 0x7d8   : > { %v2622_v45 = vadd.f32 %v2621_v44, %v2620_v43 }
 0x7da   : > { %5874 = vpush %v2622_v45 }
 0x7db   : > { %v2645_v48 = vpop.xlane.xlu0 %2644 }
 0x7dc   : > { %v2646_v49 = vrot.slane %v2645_v48, 4 }
 0x7de   : > { %v2647_v50 = vadd.f32 %v2646_v49, %v2645_v48 }
 0x7e0   : > { %2810 = vperm.xlu1 %5935, %v2534_v46   ;;  %v2648_v51 = vrot.slane %v2647_v50, 2 }
 0x7e2   : > { %v2649_v53 = vadd.f32 %v2648_v51, %v2647_v50 }
 0x7e3   : > { %v2816_v33 = vpop.permute.xlu0 %2815 }
 0x7e4   : > { %2800 = vperm.xlu1 %5935, %v2532_v47   ;;  %v2650_v55 = vrot.slane %v2649_v53, 1 }
 0x7e6   : > { %v2651_v24 = vadd.f32 %v2650_v55, %v2649_v53 }
 0x7e7   : > { %v2806_v36 = vpop.permute.xlu0 %2805 }
 0x805   : > { %s5873_s29 = spop %5872 }
 0x806   : > { %s6862_s28 = smul.f32 0.00048828125, %s5873_s29  ;;  %s7364_s29 = sld [smem:[#allocation11_spill]] }
 0x808   : > { %s2630_s24 = smul.f32 %s6862_s28, %s6862_s28  ;;  %v2694_v45 = vstv %s6862_s28 }
 0x809   : > { %v2716_v53 = vsub.f32 %v6778_v5, %v2694_v45 }
 0x80b   : > { %s5875_s7 = spop %5874 }
 0x80c   : > { %s2629_s3 = smul.f32 0.00048828125, %s5875_s7  ;;  %v2523_v26 = vld [vmem:[%s7364_s29 + $0x18] sm:$0xff]  ;;  %v2522_v57 = vld [vmem:[%s7364_s29 + $0x10] sm:$0xff]  ;;  %v2525_v13 = vld [vmem:[%s7364_s29 + $0x28] sm:$0xff] }
 0x80d   : > { %v2527_v4 = vld [vmem:[%s7364_s29 + $0x38] sm:$0xff]  ;;  %v2526_v6 = vld [vmem:[%s7364_s29 + $0x30] sm:$0xff]  ;;  %v2524_v14 = vld [vmem:[%s7364_s29 + $0x20] sm:$0xff] }
 0x80e   : > { %s2631_s1 = ssub.f32 %s2629_s3, %s2630_s24  ;;  %v2521_v19 = vld [vmem:[%s7364_s29 + $0x8] sm:$0xff]  ;;  %v2520_v22 = vld [vmem:[%s7364_s29] sm:$0xff] }
 0x810   : > { %s2632_s30 = smax.f32 %s7361_s0, %s2631_s1 }
 0x811   : > { %s2633_s5 = sadd.f32 1e-05, %s2632_s30 }
 0x813   : > { %v2634_v52 = vstv %s2633_s5 }
 0x814   : > { %6130 = vrsqrt.f32 %v2634_v52  ;;  %v2717_v52 = vsub.f32 %v6788_v18, %v2694_v45 }
 0x821   : > { %v6131_v56 = vpop.eup %6130 }
 0x822   : > { %5876 = vpush %v6131_v56 }
 0x823   : > { %5878 = vpush %v2651_v24 }
 0x853   : > { %s5877_s3 = spop %5876 }
 0x854   : > { %v2704_v58 = vstv %s5877_s3  ;;  %s5879_s1 = spop %5878 }
 0x855   : > { %v2725_v28 = vmul.f32 %v2704_v58, %v2523_v26  ;;  %v2724_v29 = vmul.f32 %v2704_v58, %v2522_v57  ;;  %s6873_s24 = smul.f32 0.00048828125, %s5879_s1  ;;  %v2723_v23 = vmul.f32 %v2704_v58, %v2521_v19  ;;  %v2722_v25 = vmul.f32 %v2704_v58, %v2520_v22 }
 0x857   : > { %2747 = vperm.xlu0 %5934, %v2725_v28   ;;  %2742 = vperm.xlu1 %5935, %v2724_v29   ;;  %s2675_s2 = smul.f32 %s6873_s24, %s6873_s24  ;;  %v2695_v38 = vstv %s6873_s24 }
 0x858   : > { %v2661_v54 = vpop.xlane.xlu1 %2660  ;;  %v2720_v41 = vsub.f32 %v6797_v11, %v2695_v38  ;;  %v2721_v42 = vsub.f32 %v6817_v31, %v2695_v38  ;;  %v2719_v50 = vsub.f32 %v6822_v34, %v2695_v38  ;;  %v2718_v51 = vsub.f32 %v6808_v21, %v2695_v38 }
 0x859   : > { %v2662_v59 = vrot.slane %v2661_v54, 4 }
 0x85b   : > { %v2663_v60 = vadd.f32 %v2662_v59, %v2661_v54 }
 0x85c   : > { %v2811_v35 = vpop.permute.xlu1 %2810 }
 0x85d   : > { %v2664_v61 = vrot.slane %v2663_v60, 2 }
 0x85f   : > { %v2665_v62 = vadd.f32 %v2664_v61, %v2663_v60 }
 0x860   : > { %v2801_v37 = vpop.permute.xlu1 %2800 }
 0x861   : > { %v2666_v63 = vrot.slane %v2665_v62, 1 }
 0x863   : > { %v2667_v0 = vadd.f32 %v2666_v63, %v2665_v62 }
 0x865   : > { %5880 = vpush %v2667_v0 }
 0x896   : > { %s5881_s30 = spop %5880 }
 0x897   : > { %s2674_s5 = smul.f32 0.00048828125, %s5881_s30 }
 0x899   : > { %s2676_s26 = ssub.f32 %s2674_s5, %s2675_s2 }
 0x89b   : > { %s2677_s27 = smax.f32 %s7361_s0, %s2676_s26 }
 0x89c   : > { %s2678_s7 = sadd.f32 1e-05, %s2677_s27 }
 0x89e   : > { %v2679_v2 = vstv %s2678_s7 }
 0x89f   : > { %6132 = vrsqrt.f32 %v2679_v2 }
 0x8ac   : > { %v6133_v3 = vpop.eup %6132 }
 0x8ad   : > { %5882 = vpush %v6133_v3 }
 0x8d2   : > { %v2748_v39 = vpop.permute.xlu0 %2747  ;;  %v2743_v40 = vpop.permute.xlu1 %2742 }
 0x8d3   : > { %v2773_v57 = vmul.f32 %v2748_v39, %v2717_v52  ;;  %v2772_v58 = vmul.f32 %v2743_v40, %v2716_v53 }
 0x8de   : > { %s5883_s20 = spop %5882 }
 0x8df   : > { %v2705_v8 = vstv %s5883_s20 }
 0x8e0   : > { %v2729_v9 = vmul.f32 %v2705_v8, %v2527_v4  ;;  %v2728_v20 = vmul.f32 %v2705_v8, %v2526_v6  ;;  %v2727_v12 = vmul.f32 %v2705_v8, %v2525_v13  ;;  %v2726_v15 = vmul.f32 %v2705_v8, %v2524_v14 }
 0x8e1   : > { %v2715_v4 = vsub.f32 %v6790_v10, %v2694_v45  ;;  %v2714_v6 = vsub.f32 %v6782_v7, %v2694_v45  ;;  %v6074_v10 = vld [vmem:[%s7313_s9 + $0x8] sm:$0xff]  }
 0x8e2   : > { %2767 = vperm.xlu1 %5935, %v2729_v9   ;;  %2762 = vperm.xlu0 %5934, %v2728_v20  }
 0x8e6   : > { %2757 = vperm.xlu0 %5934, %v2727_v12   ;;  %2752 = vperm.xlu1 %5935, %v2726_v15  }
 0x8ea   : > { %2795 = vperm.xlu0 %5934, %v2531_v16   ;;  %2790 = vperm.xlu1 %5935, %v2530_v17  }
 0x8ee   : > { %2737 = vperm.xlu0 %5934, %v2723_v23   ;;  %2732 = vperm.xlu1 %5935, %v2722_v25  }
 0x8f2   : > { %2785 = vperm.xlu0 %5934, %v2529_v27   ;;  %2780 = vperm.xlu1 %5935, %v2528_v30  }
 0x95d   : > { %v2763_v43 = vpop.permute.xlu0 %2762  ;;  %v2768_v44 = vpop.permute.xlu1 %2767 }
 0x95e   : > { %v2776_v46 = vmul.f32 %v2763_v43, %v2720_v41  ;;  %v2777_v47 = vmul.f32 %v2768_v44, %v2721_v42 }
 0x960   : > { %v2824_v48 = vadd.f32 %v2811_v35, %v2776_v46  ;;  %v2825_v49 = vadd.f32 %v2816_v33, %v2777_v47 }
 0x961   : > { %v2758_v55 = vpop.permute.xlu0 %2757  ;;  %v2753_v24 = vpop.permute.xlu1 %2752 }
 0x962   : > { %v2832_v11 = vmax.f32 %v2824_v48, 0.0  ;;  %v2833_v56 = vmax.f32 %v2825_v49, 0.0  ;;  %v2775_v31 = vmul.f32 %v2758_v55, %v2719_v50  ;;  %v2774_v26 = vmul.f32 %v2753_v24, %v2718_v51 }
 0x964   : > { %v2823_v28 = vadd.f32 %v2806_v36, %v2775_v31  ;;  %v2822_v29 = vadd.f32 %v2801_v37, %v2774_v26  ;;  %v2841_v54 = vpack.c.bf16 %v2833_v56, %v2832_v11 }
 0x965   : > { %v2796_v59 = vpop.permute.xlu0 %2795  ;;  %v2791_v60 = vpop.permute.xlu1 %2790 }
 0x966   : > { %v2831_v34 = vmax.f32 %v2823_v28, 0.0  ;;  %v2830_v61 = vmax.f32 %v2822_v29, 0.0  ;;  %v2821_v21 = vadd.f32 %v2796_v59, %v2773_v57  ;;  %v2820_v62 = vadd.f32 %v2791_v60, %v2772_v58  ;;  %5682 = vmatprep.subr.bf16.mxu1 %v2841_v54 }
 0x967   : > { %5683 = vmatpush3.bf16.msra.mxu1 %v2841_v54 }
 0x968   : > { %v2829_v5 = vmax.f32 %v2821_v21, 0.0  ;;  %v2828_v18 = vmax.f32 %v2820_v62, 0.0  ;;  %v2840_v63 = vpack.c.bf16 %v2831_v34, %v2830_v61 }
 0x969   : > { %v2738_v0 = vpop.permute.xlu0 %2737  ;;  %v2733_v2 = vpop.permute.xlu1 %2732 }
 0x96a   : > { %v2839_v3 = vpack.c.bf16 %v2829_v5, %v2828_v18  ;;  %5684 = vmatprep.subr.bf16.mxu1 %v2840_v63  ;;  %v2771_v8 = vmul.f32 %v2738_v0, %v2715_v4  ;;  %v2770_v9 = vmul.f32 %v2733_v2, %v2714_v6 }
 0x96b   : > { %5685 = vmatpush3.bf16.msra.mxu1 %v2840_v63 }
 0x96c   : > { %5686 = vmatprep.subr.bf16.mxu1 %v2839_v3 }
 0x96d   : > { %v2786_v20 = vpop.permute.xlu0 %2785  ;;  %v2781_v13 = vpop.permute.xlu1 %2780 }
 0x96e   : > { %v2819_v14 = vadd.f32 %v2786_v20, %v2771_v8  ;;  %v2818_v12 = vadd.f32 %v2781_v13, %v2770_v9 }
 0x96f   : > { %5687 = vmatpush3.bf16.msra.mxu1 %v2839_v3 }
 0x970   : > { %v2827_v15 = vmax.f32 %v2819_v14, 0.0  ;;  %v2826_v16 = vmax.f32 %v2818_v12, 0.0 }
 0x972   : > { %v2838_v17 = vpack.c.bf16 %v2827_v15, %v2826_v16  ;;  %v6075_v15 = vld [vmem:[%s7317_s13 + $0x30] ss:$8 sps:$4 sm:$0xff]   ;;  %v6077_v16 = vld [vmem:[%s7317_s13 + $0x34] ss:$8 sps:$4 sm:$0xff]  }
 0x973   : > { %3153 = vmatprep.subr.bf16.mxu0 %v6077_v16  ;;  %v6087_v16 = vld [vmem:[%s7316_s12 + $0x10] sm:$0xff]  }
 0x974   : > { %5688 = vmatprep.subr.bf16.mxu1 %v2838_v17  ;;  %3154 = vmatpush1.bf16.msra.mxu0 %v6075_v15 }
 0x975   : > { %5689 = vmatpush3.bf16.msra.mxu1 %v2838_v17  ;;  %v6080_v17 = vld [vmem:[%s7317_s13 + $0x24] ss:$8 sps:$4 sm:$0xff]  }
 0x976   : > { %3155 = vmatprep.subr.bf16.mxu0 %v6080_v17 }
 0x978   : > { %5691 = vmatmul.mubr.msk.bf16.vlgmr.msra.gmra.mxu1 %vm2408_vm5, %v6074_v10  ;;  %v6078_v10 = vld [vmem:[%s7317_s13 + $0x20] ss:$8 sps:$4 sm:$0xff]  }
 0x979   : > { %3156 = vmatpush1.bf16.msra.mxu0 %v6078_v10  ;;  %5698 = vmatprep.mubr.msk.bf16.mxu1 %vm1745_vm4, %v6087_v16 }
 0xa38   : > { %v6926_v7 = vpop.f32.mrf.mxu1 }
 0xa39   : > { %v2921_v36 = vsel %vm2408_vm5, %v6926_v7, 0.0  ;;  %v2929_v44 = vmul.f32 %v6926_v7, %v6926_v7 }
 0xa3a   : > { %v6928_v19 = vpop.f32.mrf.mxu1 }
 0xa3b   : > { %v2915_v22 = vsel %vm2408_vm5, %v6928_v19, 0.0  ;;  %v2927_v32 = vmul.f32 %v6928_v19, %v6928_v19  ;;  %v2937_v50 = vsel %vm2408_vm5, %v2929_v44, 0.0 }
 0xa3c   : > { %v6932_v23 = vpop.f32.mrf.mxu1  ;;  %2916 = vadd.xlane.f32.xlu1 %v2915_v22  ;;  %v2907_v22 = vld [vmem:[%s7314_s10] sm:$0xff] }
 0xa3d   : > { %v2931_v35 = vsel %vm2408_vm5, %v2927_v32, 0.0  ;;  %v2924_v37 = vsel %vm2408_vm5, %v6932_v23, 0.0  ;;  %v2930_v51 = vmul.f32 %v6932_v23, %v6932_v23  ;;  %v6083_v32 = vld [vmem:[%s7317_s13 + $0x14] ss:$8 sps:$4 sm:$0xff]  }
 0xa3e   : > { %v6934_v25 = vpop.f32.mrf.mxu1  ;;  %3157 = vmatprep.subr.bf16.mxu0 %v6083_v32 }
 0xa3f   : > { %v2918_v27 = vsel %vm2408_vm5, %v6934_v25, 0.0  ;;  %v2928_v30 = vmul.f32 %v6934_v25, %v6934_v25  ;;  %v2940_v11 = vsel %vm2408_vm5, %v2930_v51, 0.0 }
 0xa40   : > { %2919 = vadd.xlane.f32.xlu0 %v2918_v27  ;;  %v2908_v27 = vld [vmem:[%s7314_s10 + $0x8] sm:$0xff] }
 0xa41   : > { %v2934_v33 = vsel %vm2408_vm5, %v2928_v30, 0.0  ;;  %v6081_v30 = vld [vmem:[%s7317_s13 + $0x10] ss:$8 sps:$4 sm:$0xff]  }
 0xa42   : > { %2935 = vadd.xlane.f32.xlu1 %v2934_v33  ;;  %3158 = vmatpush1.bf16.msra.mxu0 %v6081_v30 }
 0xa44   : > { %2932 = vadd.xlane.f32.xlu0 %v2931_v35 }
 0xa46   : > { %2922 = vadd.xlane.f32.xlu1 %v2921_v36 }
 0xa48   : > { %2925 = vadd.xlane.f32.xlu0 %v2924_v37  ;;  %v2912_v37 = vld [vmem:[%s7315_s11 + $0x8] sm:$0xff] }
 0xac5   : > { %v2917_v38 = vpop.xlane.xlu1 %2916 }
 0xac6   : > { %v2943_v40 = vsel %vm865_vm3, %v2917_v38, 0.0  ;;  %v2911_v38 = vld [vmem:[%s7315_s11] sm:$0xff] }
 0xac9   : > { %v2920_v39 = vpop.xlane.xlu0 %2919 }
 0xaca   : > { %v2944_v41 = vsel %vm865_vm3, %v2920_v39, 0.0  ;;  %v6086_v39 = vld [vmem:[%s7317_s13 + $0x4] ss:$8 sps:$4 sm:$0xff]  }
 0xacb   : > { %v2936_v42 = vpop.xlane.xlu1 %2935  ;;  %v2945_v43 = vadd.f32 %v2944_v41, %v2943_v40  ;;  %v6084_v40 = vld [vmem:[%s7317_s13] ss:$8 sps:$4 sm:$0xff]   ;;  %3159 = vmatprep.subr.bf16.mxu0 %v6086_v39 }
 0xacc   : > { %v2956_v46 = vsel %vm865_vm3, %v2936_v42, 0.0  ;;  %3160 = vmatpush1.bf16.msra.mxu0 %v6084_v40  ;;  %v6091_v39 = vld [vmem:[%s7316_s12] sm:$0xff]   ;;  %v6090_v40 = vld [vmem:[%s7316_s12 + $0x28] sm:$0xff]  }
 0xacd   : > { %2946 = vadd.xlane.f32.xlu0 %v2945_v43  ;;  %v2933_v45 = vpop.xlane.xlu0 %2932 }
 0xace   : > { %v2955_v47 = vsel %vm865_vm3, %v2933_v45, 0.0 }
 0xacf   : > { %v2923_v48 = vpop.xlane.xlu1 %2922  ;;  %v2957_v49 = vadd.f32 %v2956_v46, %v2955_v47 }
 0xad0   : > { %v2980_v53 = vsel %vm865_vm3, %v2923_v48, 0.0 }
 0xad1   : > { %2938 = vadd.xlane.f32.xlu0 %v2937_v50  ;;  %2958 = vadd.xlane.f32.xlu1 %v2957_v49  ;;  %v2926_v52 = vpop.xlane.xlu0 %2925 }
 0xad2   : > { %v2981_v55 = vsel %vm865_vm3, %v2926_v52, 0.0 }
 0xad3   : > { %v2982_v24 = vadd.f32 %v2981_v55, %v2980_v53 }
 0xad5   : > { %2941 = vadd.xlane.f32.xlu1 %v2940_v11  ;;  %2983 = vadd.xlane.f32.xlu0 %v2982_v24 }
 0xb56   : > { %v2947_v56 = vpop.xlane.xlu0 %2946 }
 0xb57   : > { %v2948_v31 = vrot.slane %v2947_v56, 4 }
 0xb59   : > { %v2949_v26 = vadd.f32 %v2948_v31, %v2947_v56 }
 0xb5a   : > { %v2959_v57 = vpop.xlane.xlu1 %2958  ;;  %v2939_v29 = vpop.xlane.xlu0 %2938 }
 0xb5b   : > { %v2950_v58 = vrot.slane %v2949_v26, 2  ;;  %v2960_v28 = vrot.slane %v2959_v57, 4  ;;  %v2992_v61 = vsel %vm865_vm3, %v2939_v29, 0.0 }
 0xb5d   : > { %v2961_v54 = vadd.f32 %v2960_v28, %v2959_v57  ;;  %v2951_v59 = vadd.f32 %v2950_v58, %v2949_v26 }
 0xb5e   : > { %v2942_v60 = vpop.xlane.xlu1 %2941  ;;  %v2984_v3 = vpop.xlane.xlu0 %2983 }
 0xb5f   : > { %v2962_v34 = vrot.slane %v2961_v54, 2  ;;  %v2993_v21 = vsel %vm865_vm3, %v2942_v60, 0.0  ;;  %v2952_v62 = vrot.slane %v2951_v59, 1  ;;  %v2985_v4 = vrot.slane %v2984_v3, 4 }
 0xb60   : > { %v2994_v5 = vadd.f32 %v2993_v21, %v2992_v61 }
 0xb61   : > { %v2953_v18 = vadd.f32 %v2952_v62, %v2951_v59  ;;  %v2963_v63 = vadd.f32 %v2962_v34, %v2961_v54  ;;  %v2986_v6 = vadd.f32 %v2985_v4, %v2984_v3  ;;  %v2914_v34 = vld [vmem:[%s7315_s11 + $0x18] sm:$0xff] }
 0xb62   : > { %2995 = vadd.xlane.f32.xlu1 %v2994_v5 }
 0xb63   : > { %5884 = vpush %v2953_v18  ;;  %v2964_v0 = vrot.slane %v2963_v63, 1  ;;  %v2987_v9 = vrot.slane %v2986_v6, 2 }
 0xb65   : > { %v2965_v2 = vadd.f32 %v2964_v0, %v2963_v63  ;;  %v2988_v20 = vadd.f32 %v2987_v9, %v2986_v6 }
 0xb67   : > { %5886 = vpush %v2965_v2  ;;  %v2989_v13 = vrot.slane %v2988_v20, 1 }
 0xb69   : > { %v2990_v12 = vadd.f32 %v2989_v13, %v2988_v20 }
 0xb94   : > { %s5885_s27 = spop %5884 }
 0xb95   : > { %s6962_s7 = smul.f32 0.0009765625, %s5885_s27 }
 0xb97   : > { %s2973_s3 = smul.f32 %s6962_s7, %s6962_s7  ;;  %v3017_v50 = vstv %s6962_s7 }
 0xb98   : > { %s5887_s1 = spop %5886  ;;  %v3030_v53 = vsub.f32 %v6934_v25, %v3017_v50  ;;  %v3029_v55 = vsub.f32 %v6928_v19, %v3017_v50  ;;  %v2909_v25 = vld [vmem:[%s7314_s10 + $0x10] sm:$0xff]  ;;  %v2910_v19 = vld [vmem:[%s7314_s10 + $0x18] sm:$0xff] }
 0xb99   : > { %s2972_s2 = smul.f32 0.0009765625, %s5887_s1  ;;  %v6096_v50 = vld [vmem:[%s7316_s12 + $0x38] sm:$0xff]  }
 0xb9b   : > { %s2974_s30 = ssub.f32 %s2972_s2, %s2973_s3 }
 0xb9d   : > { %s2975_s5 = smax.f32 %s7361_s0, %s2974_s30 }
 0xb9e   : > { %s2976_s26 = sadd.f32 1e-05, %s2975_s5  ;;  %s7365_s5 = smov 64  }
 0xba0   : > { %v2977_v8 = vstv %s2976_s26  ;;  %s6156_s26 = smov 32  }
 0xba1   : > { %6134 = vrsqrt.f32 %v2977_v8 }
 0xbae   : > { %v6135_v14 = vpop.eup %6134 }
 0xbaf   : > { %5888 = vpush %v6135_v14 }
 0xbb0   : > { %5890 = vpush %v2990_v12 }
 0xbe0   : > { %s5889_s4 = spop %5888 }
 0xbe1   : > { %v3023_v33 = vstv %s5889_s4  ;;  %s5891_s6 = spop %5890 }
 0xbe2   : > { %v3033_v35 = vmul.f32 %v3023_v33, %v2907_v22  ;;  %v3034_v36 = vmul.f32 %v3023_v33, %v2908_v27  ;;  %s7003_s20 = smul.f32 0.0009765625, %s5891_s6  ;;  %v6089_v27 = vld [vmem:[%s7316_s12 + $0x20] sm:$0xff]   ;;  %s6158_s6 = smov 16  }
 0xbe4   : > { %3039 = vperm.xlu0 %5934, %v3033_v35   ;;  %3044 = vperm.xlu1 %5935, %v3034_v36   ;;  %s3010_s28 = smul.f32 %s7003_s20, %s7003_s20  ;;  %v3018_v61 = vstv %s7003_s20  ;;  %s6154_s20 = smov 112  }
 0xbe5   : > { %v3031_v5 = vsub.f32 %v6926_v7, %v3018_v61  ;;  %v3032_v18 = vsub.f32 %v6932_v23, %v3018_v61 }
 0xbe8   : > { %3068 = vperm.xlu0 %5934, %v2912_v37   ;;  %3063 = vperm.xlu1 %5935, %v2911_v38   ;;  %v6088_v37 = vld [vmem:[%s7316_s12 + $0x18] sm:$0xff]  }
 0xbeb   : > { %v2996_v41 = vpop.xlane.xlu1 %2995 }
 0xbec   : > { %v2997_v42 = vrot.slane %v2996_v41, 4 }
 0xbee   : > { %v2998_v43 = vadd.f32 %v2997_v42, %v2996_v41 }
 0xbf0   : > { %v2999_v44 = vrot.slane %v2998_v43, 2 }
 0xbf2   : > { %v3000_v45 = vadd.f32 %v2999_v44, %v2998_v43  ;;  %v6093_v43 = vld [vmem:[%s7316_s12 + $0x40] sm:$0xff]   ;;  %v6092_v44 = vld [vmem:[%s7316_s12 + $0x8] sm:$0xff]  }
 0xbf4   : > { %v3001_v46 = vrot.slane %v3000_v45, 1 }
 0xbf6   : > { %v3002_v47 = vadd.f32 %v3001_v46, %v3000_v45  ;;  %v6095_v46 = vld [vmem:[%s7316_s12 + $0x30] sm:$0xff]  }
 0xbf8   : > { %5892 = vpush %v3002_v47  ;;  %v6094_v47 = vld [vmem:[%s7316_s12 + $0x48] sm:$0xff]  }
 0xc29   : > { %s5893_s24 = spop %5892 }
 0xc2a   : > { %s3009_s27 = smul.f32 0.0009765625, %s5893_s24 }
 0xc2c   : > { %s3011_s3 = ssub.f32 %s3009_s27, %s3010_s28  ;;  %s6159_s28 = smov 48  }
 0xc2d   : > { %s7366_s27 = sshll.u32 %s7369_s25, 5 }
 0xc2e   : > { %s3012_s1 = smax.f32 %s7361_s0, %s3011_s3  ;;  %s6155_s3 = smov 96  }
 0xc2f   : > { %s3013_s2 = sadd.f32 1e-05, %s3012_s1  ;;  %s730_s7 = scalar_lea.vmem %s7326_s22, %s7366_s27 }
 0xc31   : > { %v3014_v48 = vstv %s3013_s2 }
 0xc32   : > { %6136 = vrsqrt.f32 %v3014_v48 }
 0xc3f   : > { %v6137_v49 = vpop.eup %6136 }
 0xc40   : > { %5894 = vpush %v6137_v49  ;;  %v6097_v49 = vld [vmem:[%s7316_s12 + $0x60] sm:$0xff]  }
 0xc5f   : > { %v3045_v51 = vpop.permute.xlu1 %3044  ;;  %v3040_v52 = vpop.permute.xlu0 %3039 }
 0xc60   : > { %v3058_v24 = vmul.f32 %v3045_v51, %v3030_v53  ;;  %v3057_v11 = vmul.f32 %v3040_v52, %v3029_v55  ;;  %v6099_v55 = vld [vmem:[%s7316_s12 + $0x50] sm:$0xff]  }
 0xc63   : > { %v3064_v56 = vpop.permute.xlu1 %3063  ;;  %v3069_v31 = vpop.permute.xlu0 %3068 }
 0xc64   : > { %v3081_v26 = vadd.f32 %v3064_v56, %v3057_v11  ;;  %v3082_v57 = vadd.f32 %v3069_v31, %v3058_v24  ;;  %v6098_v11 = vld [vmem:[%s7316_s12 + $0x68] sm:$0xff]   ;;  %v6103_v56 = vld [vmem:[%s7316_s12 + $0x80] sm:$0xff]  }
 0xc66   : > { %v3085_v58 = vmax.f32 %v3081_v26, 0.0  ;;  %v3086_v28 = vmax.f32 %v3082_v57, 0.0  ;;  %v6100_v26 = vld [vmem:[%s7316_s12 + $0x58] sm:$0xff]  }
 0xc68   : > { %v3089_v29 = vpack.c.bf16 %v3086_v28, %v3085_v58  ;;  %v6101_v58 = vld [vmem:[%s7316_s12 + $0x70] sm:$0xff]   ;;  %v6104_v28 = vld [vmem:[%s7316_s12 + $0x88] sm:$0xff]  }
 0xc6a   : > { %5289 = vmatmul.mubr.msk.bf16.vlgmr.msra.gmra.mxu0 %vm2408_vm5, %v3089_v29 }
 0xc6b   : > { %3187 = vmatprep.mubr.bf16.mxu0 %v6150_v1  ;;  %v2913_v1 = vld [vmem:[%s7315_s11 + $0x10] sm:$0xff] }
 0xc71   : > { %s5895_s4 = spop %5894 }
 0xc72   : > { %v3024_v54 = vstv %s5895_s4  ;;  %s6157_s4 = smov 80  }
 0xc73   : > { %v3035_v59 = vmul.f32 %v3024_v54, %v2909_v25  ;;  %v3036_v60 = vmul.f32 %v3024_v54, %v2910_v19  ;;  %v6102_v25 = vld [vmem:[%s7316_s12 + $0x78] sm:$0xff]   ;;  %v6105_v19 = vld [vmem:[%s7318_s14] sm:$0xff]  }
 0xc75   : > { %3054 = vperm.xlu0 %5934, %v3036_v60   ;;  %3049 = vperm.xlu1 %5935, %v3035_v59  }
 0xc79   : > { %3078 = vperm.xlu0 %5934, %v2914_v34   ;;  %3073 = vperm.xlu1 %5935, %v2913_v1  }
 0xcf0   : > { %v3050_v21 = vpop.permute.xlu1 %3049  ;;  %v3055_v62 = vpop.permute.xlu0 %3054 }
 0xcf1   : > { %v3059_v63 = vmul.f32 %v3050_v21, %v3031_v5  ;;  %v3060_v0 = vmul.f32 %v3055_v62, %v3032_v18 }
 0xcf4   : > { %v3074_v2 = vpop.permute.xlu1 %3073  ;;  %v3079_v3 = vpop.permute.xlu0 %3078 }
 0xcf5   : > { %v3083_v4 = vadd.f32 %v3074_v2, %v3059_v63  ;;  %v3084_v6 = vadd.f32 %v3079_v3, %v3060_v0 }
 0xcf7   : > { %v3087_v8 = vmax.f32 %v3083_v4, 0.0  ;;  %v3088_v9 = vmax.f32 %v3084_v6, 0.0 }
 0xcf9   : > { %v3090_v20 = vpack.c.bf16 %v3088_v9, %v3087_v8 }
 0xcfb   : > { %5290 = vmatmul.mubr.msk.bf16.gmra.mxu0 %vm2408_vm5, %v3090_v20 }
 0xcfc   : > { %5714 = vmatprep.mubr.msk.bf16.mxu0 %vm1745_vm4, %v6089_v27 }
 0xd2a   : > { %v3179_v13 = vpop.f32.mrf.mxu0 }
 0xd2c   : > { %v7029_v14 = vpop.f32.mrf.mxu0 }
 0xd2e   : > { %v3183_v12 = vpop.f32.mrf.mxu0 }
 0xd2f   : > { %v3198_v15 = vpack.c.bf16 %v3183_v12, %v3179_v13 }
 0xd30   : > { %v7033_v7 = vpop.f32.mrf.mxu0 }
 0xd31   : > { %3223 = vrot.lane.b32.xlu0 %v3198_v15, %s6154_s20  ;;  %v3199_v31 = vpack.c.bf16 %v7033_v7, %v7029_v14 }
 0xd35   : > { %3364 = vrot.lane.b32.xlu0 %v3198_v15, %s6155_s3 }
 0xda3   : > { %v3224_v30 = vpop.permute.xlu0 %3223 }
 0xda7   : > { %v3365_v32 = vpop.permute.xlu0 %3364 }
 0xdbb   : > { %v3189_v23 = vpop.f32.mrf.mxu0 }
 0xdbd   : > { %v7038_v17 = vpop.f32.mrf.mxu0 }
 0xdbf   : > { %v3193_v10 = vpop.f32.mrf.mxu0 }
 0xdc0   : > { %v3200_v22 = vpack.c.bf16 %v3193_v10, %v3189_v23 }
 0xdc1   : > { %v3195_v51 = vpop.f32.mrf.mxu0 }
 0xdc2   : > { %3526 = vrot.lane.b32.xlu0 %v3200_v22, %s7365_s5  ;;  %3225 = vrot.lane.b32.xlu1 %v3200_v22, %s6154_s20  ;;  %v3201_v24 = vpack.c.bf16 %v3195_v51, %v7038_v17 }
 0xdc6   : > { %3524 = vrot.lane.b32.xlu0 %v3198_v15, %s7365_s5  ;;  %3366 = vrot.lane.b32.xlu1 %v3200_v22, %s6155_s3 }
 0xdca   : > { %3686 = vrot.lane.b32.xlu0 %v3200_v22, %s6156_s26  ;;  %3446 = vrot.lane.b32.xlu1 %v3200_v22, %s6157_s4 }
 0xdce   : > { %3684 = vrot.lane.b32.xlu0 %v3198_v15, %s6156_s26  ;;  %3444 = vrot.lane.b32.xlu1 %v3198_v15, %s6157_s4 }
 0xdd2   : > { %3764 = vrot.lane.b32.xlu0 %v3198_v15, %s6158_s6  ;;  %3606 = vrot.lane.b32.xlu1 %v3200_v22, %s6159_s28 }
 0xdd6   : > { %3604 = vrot.lane.b32.xlu1 %v3198_v15, %s6159_s28 }
 0xdda   : > { %3766 = vrot.lane.b32.xlu1 %v3200_v22, %s6158_s6 }
 0xe34   : > { %v3226_v33 = vpop.permute.xlu1 %3225  ;;  %v3527_v35 = vpop.permute.xlu0 %3526 }
 0xe35   : > { %5694 = vmatprep.subr.bf16.mxu1 %v3226_v33 }
 0xe36   : > { %5695 = vmatpush3.bf16.msra.mxu1 %v3226_v33 }
 0xe37   : > { %5696 = vmatprep.subr.bf16.mxu1 %v3224_v30 }
 0xe38   : > { %v3367_v36 = vpop.permute.xlu1 %3366  ;;  %v3525_v41 = vpop.permute.xlu0 %3524 }
 0xe39   : > { %5710 = vmatprep.subr.bf16.mxu0 %v3367_v36 }
 0xe3a   : > { %5697 = vmatpush3.bf16.msra.mxu1 %v3224_v30  ;;  %5711 = vmatpush3.bf16.msra.mxu0 %v3367_v36 }
 0xe3b   : > { %5702 = vmatprep.subr.bf16.mxu1 %v3200_v22  ;;  %5712 = vmatprep.subr.bf16.mxu0 %v3365_v32 }
 0xe3c   : > { %v3447_v38 = vpop.permute.xlu1 %3446  ;;  %v3687_v45 = vpop.permute.xlu0 %3686 }
 0xe3d   : > { %5699 = vmatmul.mubr.msk.bf16.vlgmr.msra.gmra.mxu1 %vm1745_vm4, %v6088_v37 }
 0xe3e   : > { %5703 = vmatpush3.bf16.msra.mxu1 %v3200_v22  ;;  %5713 = vmatpush3.bf16.msra.mxu0 %v3365_v32 }
 0xe3f   : > { %5704 = vmatprep.subr.bf16.mxu1 %v3198_v15  ;;  %5726 = vmatprep.subr.bf16.mxu0 %v3527_v35 }
 0xe40   : > { %v3445_v42 = vpop.permute.xlu1 %3444  ;;  %5706 = vmatprep.mubr.msk.bf16.mxu1 %vm1745_vm4, %v6091_v39  ;;  %v3685_v52 = vpop.permute.xlu0 %3684 }
 0xe41   : > { %5715 = vmatmul.mubr.msk.bf16.vlgmr.msra.gmra.mxu0 %vm1745_vm4, %v6090_v40 }
 0xe42   : > { %5705 = vmatpush3.bf16.msra.mxu1 %v3198_v15  ;;  %5727 = vmatpush3.bf16.msra.mxu0 %v3527_v35 }
 0xe43   : > { %5718 = vmatprep.subr.bf16.mxu1 %v3447_v38  ;;  %5728 = vmatprep.subr.bf16.mxu0 %v3525_v41 }
 0xe44   : > { %5730 = vmatprep.mubr.msk.bf16.mxu0 %vm1745_vm4, %v6093_v43  ;;  %v3607_v48 = vpop.permute.xlu1 %3606  ;;  %v3765_v29 = vpop.permute.xlu0 %3764 }
 0xe45   : > { %5707 = vmatmul.mubr.msk.bf16.vlgmr.msra.gmra.mxu1 %vm1745_vm4, %v6092_v44 }
 0xe46   : > { %5719 = vmatpush3.bf16.msra.mxu1 %v3447_v38  ;;  %5729 = vmatpush3.bf16.msra.mxu0 %v3525_v41 }
 0xe47   : > { %5720 = vmatprep.subr.bf16.mxu1 %v3445_v42  ;;  %5742 = vmatprep.subr.bf16.mxu0 %v3687_v45 }
 0xe48   : > { %5722 = vmatprep.mubr.msk.bf16.mxu1 %vm1745_vm4, %v6095_v46  ;;  %v3605_v53 = vpop.permute.xlu1 %3604 }
 0xe49   : > { %5731 = vmatmul.mubr.msk.bf16.vlgmr.msra.gmra.mxu0 %vm1745_vm4, %v6094_v47 }
 0xe4a   : > { %5721 = vmatpush3.bf16.msra.mxu1 %v3445_v42  ;;  %5743 = vmatpush3.bf16.msra.mxu0 %v3687_v45 }
 0xe4b   : > { %5734 = vmatprep.subr.bf16.mxu1 %v3607_v48  ;;  %5744 = vmatprep.subr.bf16.mxu0 %v3685_v52 }
 0xe4c   : > { %5746 = vmatprep.mubr.msk.bf16.mxu0 %vm1745_vm4, %v6097_v49  ;;  %v3767_v57 = vpop.permute.xlu1 %3766 }
 0xe4d   : > { %5723 = vmatmul.mubr.msk.bf16.vlgmr.msra.gmra.mxu1 %vm1745_vm4, %v6096_v50 }
 0xe4e   : > { %5735 = vmatpush3.bf16.msra.mxu1 %v3607_v48  ;;  %5745 = vmatpush3.bf16.msra.mxu0 %v3685_v52 }
 0xe4f   : > { %5736 = vmatprep.subr.bf16.mxu1 %v3605_v53  ;;  %5758 = vmatprep.subr.bf16.mxu0 %v3201_v24 }
 0xe50   : > { %5738 = vmatprep.mubr.msk.bf16.mxu1 %vm1745_vm4, %v6099_v55 }
 0xe51   : > { %5747 = vmatmul.mubr.msk.bf16.vlgmr.msra.gmra.mxu0 %vm1745_vm4, %v6098_v11 }
 0xe52   : > { %5737 = vmatpush3.bf16.msra.mxu1 %v3605_v53  ;;  %5759 = vmatpush3.bf16.msra.mxu0 %v3201_v24 }
 0xe53   : > { %5750 = vmatprep.subr.bf16.mxu1 %v3767_v57  ;;  %5760 = vmatprep.subr.bf16.mxu0 %v3199_v31 }
 0xe54   : > { %5762 = vmatprep.mubr.msk.bf16.mxu0 %vm1745_vm4, %v6103_v56 }
 0xe55   : > { %5739 = vmatmul.mubr.msk.bf16.vlgmr.msra.gmra.mxu1 %vm1745_vm4, %v6100_v26 }
 0xe56   : > { %5751 = vmatpush3.bf16.msra.mxu1 %v3767_v57  ;;  %5761 = vmatpush3.bf16.msra.mxu0 %v3199_v31 }
 0xe57   : > { %5752 = vmatprep.subr.bf16.mxu1 %v3765_v29  ;;  %5754 = vmatprep.mubr.msk.bf16.mxu1 %vm1745_vm4, %v6101_v58 }
 0xe59   : > { %5763 = vmatmul.mubr.msk.bf16.vlgmr.msra.gmra.mxu0 %vm1745_vm4, %v6104_v28 }
 0xe5a   : > { %5753 = vmatpush3.bf16.msra.mxu1 %v3765_v29 }
 0xe5d   : > { %5755 = vmatmul.mubr.msk.bf16.vlgmr.msra.gmra.mxu1 %vm1745_vm4, %v6102_v25 }
 0xe5e   : > { %5770 = vmatprep.mubr.msk.bf16.mxu1 %vm1745_vm4, %v6105_v19 }
 0xefd   : > { %v5700_v54 = vpop.f32.mrf.mxu1 }
 0xeff   : > { %v3269_v59 = vpop.f32.mrf.mxu1 }
 0xf01   : > { %v5701_v60 = vpop.f32.mrf.mxu1  ;;  %v5716_v34 = vpop.f32.mrf.mxu0 }
 0xf03   : > { %v3272_v1 = vpop.f32.mrf.mxu1  ;;  %v3410_v61 = vpop.f32.mrf.mxu0 }
 0xf05   : > { %v5708_v21 = vpop.f32.mrf.mxu1  ;;  %v5717_v62 = vpop.f32.mrf.mxu0 }
 0xf06   : > { %v3343_v4 = vadd.f32 %v5708_v21, %v5700_v54  ;;  %v6106_v21 = vld [vmem:[%s7318_s14 + $0x8] sm:$0xff]  }
 0xf07   : > { %v3334_v5 = vpop.f32.mrf.mxu1  ;;  %v3413_v18 = vpop.f32.mrf.mxu0 }
 0xf08   : > { %v3335_v9 = vadd.f32 %v3334_v5, %v3269_v59  ;;  %v3427_v14 = vadd.f32 %v5716_v34, %v3343_v4 }
 0xf09   : > { %v5709_v63 = vpop.f32.mrf.mxu1  ;;  %v5732_v0 = vpop.f32.mrf.mxu0 }
 0xf0a   : > { %v3346_v12 = vadd.f32 %v5709_v63, %v5701_v60  ;;  %v3425_v23 = vadd.f32 %v3410_v61, %v3335_v9 }
 0xf0b   : > { %v3337_v2 = vpop.f32.mrf.mxu1  ;;  %v3570_v3 = vpop.f32.mrf.mxu0 }
 0xf0c   : > { %v3338_v16 = vadd.f32 %v3337_v2, %v3272_v1  ;;  %v3428_v27 = vadd.f32 %v5717_v62, %v3346_v12 }
 0xf0d   : > { %v5724_v6 = vpop.f32.mrf.mxu1  ;;  %v5733_v8 = vpop.f32.mrf.mxu0 }
 0xf0e   : > { %v3507_v17 = vadd.f32 %v5724_v6, %v3427_v14  ;;  %v3426_v35 = vadd.f32 %v3413_v18, %v3338_v16 }
 0xf0f   : > { %v3490_v20 = vpop.f32.mrf.mxu1  ;;  %v3573_v13 = vpop.f32.mrf.mxu0 }
 0xf10   : > { %v3505_v30 = vadd.f32 %v3490_v20, %v3425_v23  ;;  %v3587_v36 = vadd.f32 %v5732_v0, %v3507_v17 }
 0xf11   : > { %v5725_v15 = vpop.f32.mrf.mxu1  ;;  %v5748_v7 = vpop.f32.mrf.mxu0 }
 0xf12   : > { %v3508_v37 = vadd.f32 %v5725_v15, %v3428_v27  ;;  %v3585_v40 = vadd.f32 %v3570_v3, %v3505_v30 }
 0xf13   : > { %v3493_v10 = vpop.f32.mrf.mxu1  ;;  %v3730_v22 = vpop.f32.mrf.mxu0 }
 0xf14   : > { %v3506_v41 = vadd.f32 %v3493_v10, %v3426_v35  ;;  %v3588_v45 = vadd.f32 %v5733_v8, %v3508_v37 }
 0xf15   : > { %v5740_v32 = vpop.f32.mrf.mxu1  ;;  %v5749_v33 = vpop.f32.mrf.mxu0 }
 0xf16   : > { %v3667_v42 = vadd.f32 %v5740_v32, %v3587_v36  ;;  %v3586_v48 = vadd.f32 %v3573_v13, %v3506_v41 }
 0xf17   : > { %v3650_v38 = vpop.f32.mrf.mxu1  ;;  %v3733_v39 = vpop.f32.mrf.mxu0 }
 0xf18   : > { %v3665_v46 = vadd.f32 %v3650_v38, %v3585_v40  ;;  %v3747_v49 = vadd.f32 %v5748_v7, %v3667_v42  ;;  %v3984_v40 = vld [vmem:[%s7320_s16 + $0x8] sm:$0xff] }
 0xf19   : > { %v5741_v43 = vpop.f32.mrf.mxu1  ;;  %v5764_v44 = vpop.f32.mrf.mxu0 }
 0xf1a   : > { %v3668_v50 = vadd.f32 %v5741_v43, %v3588_v45  ;;  %v3745_v53 = vadd.f32 %v3730_v22, %v3665_v46 }
 0xf1b   : > { %v3653_v47 = vpop.f32.mrf.mxu1  ;;  %v3884_v52 = vpop.f32.mrf.mxu0 }
 0xf1c   : > { %v3666_v55 = vadd.f32 %v3653_v47, %v3586_v48  ;;  %v3748_v56 = vadd.f32 %v5749_v33, %v3668_v50 }
 0xf1d   : > { %v5756_v51 = vpop.f32.mrf.mxu1  ;;  %v5765_v58 = vpop.f32.mrf.mxu0 }
 0xf1e   : > { %v3827_v24 = vadd.f32 %v5756_v51, %v3747_v49  ;;  %v3746_v28 = vadd.f32 %v3733_v39, %v3666_v55 }
 0xf1f   : > { %v3810_v11 = vpop.f32.mrf.mxu1  ;;  %v3887_v60 = vpop.f32.mrf.mxu0 }
 0xf20   : > { %v3825_v31 = vadd.f32 %v3810_v11, %v3745_v53  ;;  %v3901_v26 = vadd.f32 %v5764_v44, %v3827_v24 }
 0xf21   : > { %v5757_v57 = vpop.f32.mrf.mxu1 }
 0xf22   : > { %3906 = vst.msk [vmem:[%s730_s7 + $0x10] sm:$0xff] %vm3903_vm6, %v3901_v26  ;;  %v3828_v29 = vadd.f32 %v5757_v57, %v3748_v56  ;;  %v3899_v25 = vadd.f32 %v3884_v52, %v3825_v31  ;;  %v3983_v57 = vld [vmem:[%s7320_s16] sm:$0xff] }
 0xf23   : > { %v3813_v19 = vpop.f32.mrf.mxu1 }
 0xf24   : > { %3904 = vst.msk [vmem:[%s730_s7] sm:$0xff] %vm3903_vm6, %v3899_v25  ;;  %v3826_v54 = vadd.f32 %v3813_v19, %v3746_v28  ;;  %v3902_v59 = vadd.f32 %v5765_v58, %v3828_v29 }
 0xf26   : > { %3907 = vst.msk [vmem:[%s730_s7 + $0x18] sm:$0xff] %vm3903_vm6, %v3902_v59  ;;  %v3913_v34 = vpack.c.bf16 %v3902_v59, %v3901_v26  ;;  %v3900_v1 = vadd.f32 %v3887_v60, %v3826_v54 }
 0xf28   : > { %3905 = vst.msk [vmem:[%s730_s7 + $0x8] sm:$0xff] %vm3903_vm6, %v3900_v1  ;;  %v3912_v61 = vpack.c.bf16 %v3900_v1, %v3899_v25  ;;  %5766 = vmatprep.subr.bf16.mxu1 %v3913_v34  ;;  %v3979_v1 = vld [vmem:[%s7319_s15] sm:$0xff] }
 0xf29   : > { %5767 = vmatpush3.bf16.msra.mxu1 %v3913_v34 }
 0xf2a   : > { %5768 = vmatprep.subr.bf16.mxu1 %v3912_v61 }
 0xf2d   : > { %5769 = vmatpush3.bf16.msra.mxu1 %v3912_v61  ;;  %v3980_v61 = vld [vmem:[%s7319_s15 + $0x8] sm:$0xff] }
 0xf30   : > { %5771 = vmatmul.mubr.msk.bf16.vlgmr.msra.gmra.mxu1 %vm1745_vm4, %v6106_v21 }
 0xff0   : > { %v7133_v62 = vpop.f32.mrf.mxu1 }
 0xff1   : > { %v3993_v9 = vsel %vm3903_vm6, %v7133_v62, 0.0  ;;  %v4001_v16 = vmul.f32 %v7133_v62, %v7133_v62 }
 0xff2   : > { %v7135_v5 = vpop.f32.mrf.mxu1 }
 0xff3   : > { %v3987_v18 = vsel %vm3903_vm6, %v7135_v5, 0.0  ;;  %v3999_v4 = vmul.f32 %v7135_v5, %v7135_v5  ;;  %v4009_v33 = vsel %vm3903_vm6, %v4001_v16, 0.0 }
 0xff4   : > { %v7139_v63 = vpop.f32.mrf.mxu1  ;;  %3988 = vadd.xlane.f32.xlu1 %v3987_v18 }
 0xff5   : > { %v4003_v8 = vsel %vm3903_vm6, %v3999_v4, 0.0  ;;  %v3996_v20 = vsel %vm3903_vm6, %v7139_v63, 0.0  ;;  %v4002_v32 = vmul.f32 %v7139_v63, %v7139_v63 }
 0xff6   : > { %v7141_v0 = vpop.f32.mrf.mxu1 }
 0xff7   : > { %v4000_v2 = vmul.f32 %v7141_v0, %v7141_v0  ;;  %v3990_v3 = vsel %vm3903_vm6, %v7141_v0, 0.0  ;;  %v4012_v39 = vsel %vm3903_vm6, %v4002_v32, 0.0 }
 0xff8   : > { %3991 = vadd.xlane.f32.xlu0 %v3990_v3 }
 0xff9   : > { %v4006_v6 = vsel %vm3903_vm6, %v4000_v2, 0.0 }
 0xffa   : > { %4007 = vadd.xlane.f32.xlu1 %v4006_v6 }
 0xffc   : > { %4004 = vadd.xlane.f32.xlu0 %v4003_v8 }
 0xffe   : > { %3994 = vadd.xlane.f32.xlu1 %v3993_v9 }
0x1000   : > { %3997 = vadd.xlane.f32.xlu0 %v3996_v20 }
0x107d   : > { %v3989_v13 = vpop.xlane.xlu1 %3988 }
0x107e   : > { %v4015_v12 = vsel %vm865_vm3, %v3989_v13, 0.0 }
0x1081   : > { %v3992_v14 = vpop.xlane.xlu0 %3991 }
0x1082   : > { %v4016_v15 = vsel %vm865_vm3, %v3992_v14, 0.0 }
0x1083   : > { %v4017_v7 = vadd.f32 %v4016_v15, %v4015_v12  ;;  %v4008_v23 = vpop.xlane.xlu1 %4007 }
0x1084   : > { %v4028_v10 = vsel %vm865_vm3, %v4008_v23, 0.0 }
0x1085   : > { %4018 = vadd.xlane.f32.xlu0 %v4017_v7  ;;  %v4005_v17 = vpop.xlane.xlu0 %4004 }
0x1086   : > { %v4027_v22 = vsel %vm865_vm3, %v4005_v17, 0.0 }
0x1087   : > { %v4029_v27 = vadd.f32 %v4028_v10, %v4027_v22  ;;  %v3995_v30 = vpop.xlane.xlu1 %3994 }
0x1088   : > { %v4052_v36 = vsel %vm865_vm3, %v3995_v30, 0.0 }
0x1089   : > { %4010 = vadd.xlane.f32.xlu0 %v4009_v33  ;;  %4030 = vadd.xlane.f32.xlu1 %v4029_v27  ;;  %v3998_v35 = vpop.xlane.xlu0 %3997 }
0x108a   : > { %v4053_v37 = vsel %vm865_vm3, %v3998_v35, 0.0 }
0x108b   : > { %v4054_v38 = vadd.f32 %v4053_v37, %v4052_v36 }
0x108d   : > { %4013 = vadd.xlane.f32.xlu1 %v4012_v39  ;;  %4055 = vadd.xlane.f32.xlu0 %v4054_v38  ;;  %v3981_v38 = vld [vmem:[%s7319_s15 + $0x10] sm:$0xff] }
0x10a3   : > { %4140 = vperm.xlu0 %5934, %v3984_v40  }
0x110e   : > { %v4019_v41 = vpop.xlane.xlu0 %4018 }
0x110f   : > { %v4020_v42 = vrot.slane %v4019_v41, 4 }
0x1111   : > { %v4021_v43 = vadd.f32 %v4020_v42, %v4019_v41  ;;  %v3986_v41 = vld [vmem:[%s7320_s16 + $0x18] sm:$0xff]  ;;  %v3985_v42 = vld [vmem:[%s7320_s16 + $0x10] sm:$0xff] }
0x1112   : > { %v4031_v44 = vpop.xlane.xlu1 %4030  ;;  %v4011_v47 = vpop.xlane.xlu0 %4010 }
0x1113   : > { %v4022_v45 = vrot.slane %v4021_v43, 2  ;;  %v4032_v46 = vrot.slane %v4031_v44, 4  ;;  %v4064_v52 = vsel %vm865_vm3, %v4011_v47, 0.0 }
0x1115   : > { %v4033_v48 = vadd.f32 %v4032_v46, %v4031_v44  ;;  %v4023_v49 = vadd.f32 %v4022_v45, %v4021_v43  ;;  %v6107_v43 = vld [vmem:[%s7322_s18] sm:$0xff]  }
0x1116   : > { %v4014_v50 = vpop.xlane.xlu1 %4013  ;;  %v4056_v58 = vpop.xlane.xlu0 %4055  ;;  %5774 = vmatprep.subr.bf16.mxu0 %v6107_v43 }
0x1117   : > { %v4034_v51 = vrot.slane %v4033_v48, 2  ;;  %v4065_v53 = vsel %vm865_vm3, %v4014_v50, 0.0  ;;  %v4024_v55 = vrot.slane %v4023_v49, 1  ;;  %v4057_v28 = vrot.slane %v4056_v58, 4  ;;  %5775 = vmatpush3.bf16.msra.mxu0 %v6107_v43 }
0x1118   : > { %v4066_v24 = vadd.f32 %v4065_v53, %v4064_v52 }
0x1119   : > { %v4025_v11 = vadd.f32 %v4024_v55, %v4023_v49  ;;  %v4035_v56 = vadd.f32 %v4034_v51, %v4033_v48  ;;  %v4058_v29 = vadd.f32 %v4057_v28, %v4056_v58 }
0x111a   : > { %4067 = vadd.xlane.f32.xlu1 %v4066_v24 }
0x111b   : > { %5896 = vpush %v4025_v11  ;;  %v4036_v31 = vrot.slane %v4035_v56, 1  ;;  %v4059_v19 = vrot.slane %v4058_v29, 2 }
0x111d   : > { %v4037_v26 = vadd.f32 %v4036_v31, %v4035_v56  ;;  %v4060_v54 = vadd.f32 %v4059_v19, %v4058_v29  ;;  %v6114_v19 = vld [vmem:[%s7321_s17 + $0x30] sm:$0xff]  }
0x111e   : > { %v4141_v15 = vpop.permute.xlu0 %4140 }
0x111f   : > { %5898 = vpush %v4037_v26  ;;  %v4061_v59 = vrot.slane %v4060_v54, 1  ;;  %v6108_v26 = vld [vmem:[%s7321_s17 + $0x10] sm:$0xff]  }
0x1120   : > { %5784 = vmatprep.mubr.msk.bf16.mxu1 %vm1745_vm4, %v6108_v26 }
0x1121   : > { %v4062_v34 = vadd.f32 %v4061_v59, %v4060_v54  ;;  %v4938_v54 = vld [vmem:[#allocation2] sm:$0x1] }
0x112b   : > { %4135 = vperm.xlu1 %5935, %v3983_v57  }
0x114c   : > { %s5897_s24 = spop %5896 }
0x114d   : > { %s7175_s27 = smul.f32 0.00390625, %s5897_s24 }
0x114f   : > { %s4045_s1 = smul.f32 %s7175_s27, %s7175_s27  ;;  %v4089_v7 = vstv %s7175_s27 }
0x1150   : > { %s5899_s2 = spop %5898  ;;  %v4102_v16 = vsub.f32 %v7141_v0, %v4089_v7  ;;  %v4101_v17 = vsub.f32 %v7135_v5, %v4089_v7  ;;  %v3982_v5 = vld [vmem:[%s7319_s15 + $0x18] sm:$0xff] }
0x1151   : > { %s4044_s7 = smul.f32 0.00390625, %s5899_s2 }
0x1153   : > { %s4046_s30 = ssub.f32 %s4044_s7, %s4045_s1 }
0x1155   : > { %s4047_s5 = smax.f32 %s7361_s0, %s4046_s30 }
0x1156   : > { %s4048_s26 = sadd.f32 1e-05, %s4047_s5 }
0x1158   : > { %v4049_v25 = vstv %s4048_s26 }
0x1159   : > { %6138 = vrsqrt.f32 %v4049_v25  ;;  %v6111_v25 = vld [vmem:[%s7321_s17 + $0x8] sm:$0xff]  }
0x1166   : > { %v6139_v60 = vpop.eup %6138 }
0x1167   : > { %5900 = vpush %v6139_v60 }
0x1168   : > { %5902 = vpush %v4062_v34 }
0x1198   : > { %s5901_s1 = spop %5900 }
0x1199   : > { %v4095_v21 = vstv %s5901_s1  ;;  %s5903_s2 = spop %5902  ;;  %s6160_s1 = smov 124  }
0x119a   : > { %v4105_v18 = vmul.f32 %v4095_v21, %v3979_v1  ;;  %v4106_v2 = vmul.f32 %v4095_v21, %v3980_v61  ;;  %s7186_s7 = smul.f32 0.00390625, %s5903_s2  ;;  %v6109_v1 = vld [vmem:[%s7321_s17 + $0x18] sm:$0xff]   ;;  %v6112_v21 = vld [vmem:[%s7321_s17 + $0x20] sm:$0xff]  }
0x119c   : > { %4111 = vperm.xlu0 %5934, %v4105_v18   ;;  %4116 = vperm.xlu1 %5935, %v4106_v2   ;;  %s4082_s30 = smul.f32 %s7186_s7, %s7186_s7  ;;  %v4090_v44 = vstv %s7186_s7  ;;  %s6165_s7 = smov 100  }
0x119d   : > { %v4103_v47 = vsub.f32 %v7133_v62, %v4090_v44  ;;  %v4104_v48 = vsub.f32 %v7139_v63, %v4090_v44  ;;  %v6110_v62 = vld [vmem:[%s7321_s17] sm:$0xff]  }
0x11a3   : > { %v4068_v3 = vpop.xlane.xlu1 %4067 }
0x11a4   : > { %v4069_v4 = vrot.slane %v4068_v3, 4 }
0x11a6   : > { %v4070_v6 = vadd.f32 %v4069_v4, %v4068_v3  ;;  %v6113_v4 = vld [vmem:[%s7321_s17 + $0x28] sm:$0xff]  }
0x11a7   : > { %v4136_v23 = vpop.permute.xlu1 %4135 }
0x11a8   : > { %v4071_v8 = vrot.slane %v4070_v6, 2 }
0x11aa   : > { %v4072_v9 = vadd.f32 %v4071_v8, %v4070_v6  ;;  %v6115_v8 = vld [vmem:[%s7321_s17 + $0x38] sm:$0xff]  }
0x11ac   : > { %v4073_v20 = vrot.slane %v4072_v9, 1 }
0x11ae   : > { %v4074_v13 = vadd.f32 %v4073_v20, %v4072_v9  ;;  %v6116_v20 = vld [vmem:[%s7321_s17 + $0x40] sm:$0xff]  }
0x11b0   : > { %5904 = vpush %v4074_v13  ;;  %v6118_v13 = vld [vmem:[%s7321_s17 + $0x50] sm:$0xff]  }
0x11e1   : > { %s5905_s5 = spop %5904 }
0x11e2   : > { %s4081_s26 = smul.f32 0.00390625, %s5905_s5 }
0x11e4   : > { %s4083_s4 = ssub.f32 %s4081_s26, %s4082_s30 }
0x11e6   : > { %s4084_s6 = smax.f32 %s7361_s0, %s4083_s4  ;;  %s6164_s0 = smov 104  }
0x11e7   : > { %s4085_s28 = sadd.f32 1e-05, %s4084_s6  ;;  %s6162_s6 = smov 116  }
0x11e9   : > { %v4086_v14 = vstv %s4085_s28  ;;  %s6163_s28 = smov 108  }
0x11ea   : > { %6140 = vrsqrt.f32 %v4086_v14 }
0x11f7   : > { %v6141_v12 = vpop.eup %6140 }
0x11f8   : > { %5906 = vpush %v6141_v12 }
0x1217   : > { %v4117_v10 = vpop.permute.xlu1 %4116  ;;  %v4112_v22 = vpop.permute.xlu0 %4111 }
0x1218   : > { %v4130_v27 = vmul.f32 %v4117_v10, %v4102_v16  ;;  %v4129_v30 = vmul.f32 %v4112_v22, %v4101_v17  ;;  %v6120_v17 = vld [vmem:[%s7321_s17 + $0x60] sm:$0xff]   ;;  %v6122_v10 = vld [vmem:[%s7321_s17 + $0x70] sm:$0xff]  }
0x121a   : > { %v4154_v32 = vadd.f32 %v4141_v15, %v4130_v27  ;;  %v4153_v33 = vadd.f32 %v4136_v23, %v4129_v30  ;;  %v6117_v15 = vld [vmem:[%s7321_s17 + $0x48] sm:$0xff]   ;;  %v6119_v23 = vld [vmem:[%s7321_s17 + $0x58] sm:$0xff]  }
0x121b   : > { %v6121_v30 = vld [vmem:[%s7321_s17 + $0x68] sm:$0xff]  }
0x121c   : > { %v4158_v35 = vmax.f32 %v4154_v32, 0.0  ;;  %v4157_v36 = vmax.f32 %v4153_v33, 0.0  ;;  %v6123_v32 = vld [vmem:[%s7321_s17 + $0x78] sm:$0xff]   ;;  %v6124_v33 = vld [vmem:[%s7321_s17 + $0x80] sm:$0xff]  }
0x121e   : > { %v4161_v37 = vpack.c.bf16 %v4158_v35, %v4157_v36  ;;  %v6125_v36 = vld [vmem:[%s7321_s17 + $0x88] sm:$0xff]  }
0x1220   : > { %5776 = vmatprep.mubr.msk.bf16.mxu0 %vm3903_vm6, %v4161_v37  ;;  %v6166_v37 = vmov 0.0  }
0x1229   : > { %s5907_s2 = spop %5906 }
0x122a   : > { %v4096_v0 = vstv %s5907_s2  ;;  %s6161_s2 = smov 120  }
0x122b   : > { %v4107_v39 = vmul.f32 %v4096_v0, %v3981_v38  ;;  %v4108_v40 = vmul.f32 %v4096_v0, %v3982_v5 }
0x122d   : > { %4126 = vperm.xlu0 %5934, %v4108_v40   ;;  %4121 = vperm.xlu1 %5935, %v4107_v39  }
0x1231   : > { %4150 = vperm.xlu0 %5934, %v3986_v41   ;;  %4145 = vperm.xlu1 %5935, %v3985_v42  }
0x12a8   : > { %v4122_v45 = vpop.permute.xlu1 %4121  ;;  %v4127_v46 = vpop.permute.xlu0 %4126 }
0x12a9   : > { %v4131_v49 = vmul.f32 %v4122_v45, %v4103_v47  ;;  %v4132_v50 = vmul.f32 %v4127_v46, %v4104_v48 }
0x12ac   : > { %v4146_v51 = vpop.permute.xlu1 %4145  ;;  %v4151_v52 = vpop.permute.xlu0 %4150 }
0x12ad   : > { %v4155_v53 = vadd.f32 %v4146_v51, %v4131_v49  ;;  %v4156_v55 = vadd.f32 %v4151_v52, %v4132_v50 }
0x12af   : > { %v4159_v24 = vmax.f32 %v4155_v53, 0.0  ;;  %v4160_v11 = vmax.f32 %v4156_v55, 0.0 }
0x12b1   : > { %v4162_v56 = vpack.c.bf16 %v4160_v11, %v4159_v24 }
0x12b3   : > { %5777 = vmatmul.mubr.msk.bf16.vlgmr.msra.gmra.mxu0 %vm3903_vm6, %v4162_v56 }
0x12b4   : > { %5792 = vmatprep.mubr.msk.bf16.mxu0 %vm1745_vm4, %v6110_v62 }
0x1373   : > { %v5778_v31 = vpop.f32.mrf.mxu0 }
0x1375   : > { %v4211_v57 = vpop.f32.mrf.mxu0 }
0x1377   : > { %v5779_v63 = vpop.f32.mrf.mxu0 }
0x1378   : > { %v4227_v58 = vpack.c.bf16 %v5779_v63, %v5778_v31 }
0x1379   : > { %v4214_v28 = vpop.f32.mrf.mxu0 }
0x137a   : > { %v4226_v29 = vpack.c.bf16 %v4214_v28, %v4211_v57  ;;  %4251 = vrot.lane.b32.xlu1 %v4227_v58, %s6160_s1  ;;  %5788 = vmatprep.subr.bf16.mxu0 %v4227_v58 }
0x137b   : > { %5789 = vmatpush3.bf16.msra.mxu0 %v4227_v58 }
0x137c   : > { %4249 = vrot.lane.b32.xlu0 %v4226_v29, %s6160_s1  ;;  %5790 = vmatprep.subr.bf16.mxu0 %v4226_v29 }
0x137e   : > { %4392 = vrot.lane.b32.xlu1 %v4227_v58, %s6161_s2 }
0x137f   : > { %5791 = vmatpush3.bf16.msra.mxu0 %v4226_v29 }
0x1380   : > { %4390 = vrot.lane.b32.xlu0 %v4226_v29, %s6161_s2 }
0x1382   : > { %4472 = vrot.lane.b32.xlu1 %v4227_v58, %s6162_s6  ;;  %5793 = vmatmul.mubr.msk.bf16.vlgmr.msra.gmra.mxu0 %vm1745_vm4, %v6111_v25 }
0x1383   : > { %5808 = vmatprep.mubr.msk.bf16.mxu0 %vm1745_vm4, %v6114_v19 }
0x1384   : > { %4552 = vrot.lane.b32.xlu0 %v4227_v58, %s6154_s20 }
0x1386   : > { %4470 = vrot.lane.b32.xlu1 %v4226_v29, %s6162_s6 }
0x1388   : > { %4550 = vrot.lane.b32.xlu0 %v4226_v29, %s6154_s20 }
0x138a   : > { %4632 = vrot.lane.b32.xlu1 %v4227_v58, %s6163_s28 }
0x138c   : > { %4712 = vrot.lane.b32.xlu0 %v4227_v58, %s6164_s0 }
0x138e   : > { %4630 = vrot.lane.b32.xlu1 %v4226_v29, %s6163_s28 }
0x1390   : > { %4710 = vrot.lane.b32.xlu0 %v4226_v29, %s6164_s0 }
0x1392   : > { %4792 = vrot.lane.b32.xlu1 %v4227_v58, %s6165_s7 }
0x1394   : > { %4872 = vrot.lane.b32.xlu0 %v4227_v58, %s6155_s3 }
0x1396   : > { %4790 = vrot.lane.b32.xlu1 %v4226_v29, %s6165_s7 }
0x1398   : > { %4870 = vrot.lane.b32.xlu0 %v4226_v29, %s6155_s3  ;;  %s733_s3 = scalar_lea.vmem %s7327_s23, %s7369_s25 }
0x139a   : > { %4941 = vperm.xlu1 %5935, %v4938_v54  }
0x13ec   : > { %v4252_v59 = vpop.permute.xlu1 %4251 }
0x13ed   : > { %5780 = vmatprep.subr.bf16.mxu1 %v4252_v59 }
0x13ee   : > { %5781 = vmatpush3.bf16.msra.mxu1 %v4252_v59  ;;  %v4250_v60 = vpop.permute.xlu0 %4249 }
0x13ef   : > { %5782 = vmatprep.subr.bf16.mxu1 %v4250_v60 }
0x13f0   : > { %v4393_v34 = vpop.permute.xlu1 %4392 }
0x13f2   : > { %5783 = vmatpush3.bf16.msra.mxu1 %v4250_v60  ;;  %v4391_v61 = vpop.permute.xlu0 %4390 }
0x13f3   : > { %5796 = vmatprep.subr.bf16.mxu1 %v4393_v34 }
0x13f4   : > { %v4473_v18 = vpop.permute.xlu1 %4472 }
0x13f5   : > { %5785 = vmatmul.mubr.msk.bf16.vlgmr.msra.gmra.mxu1 %vm1745_vm4, %v6109_v1  ;;  %5804 = vmatprep.subr.bf16.mxu0 %v4473_v18 }
0x13f6   : > { %5797 = vmatpush3.bf16.msra.mxu1 %v4393_v34  ;;  %v4553_v2 = vpop.permute.xlu0 %4552  ;;  %5805 = vmatpush3.bf16.msra.mxu0 %v4473_v18 }
0x13f7   : > { %5798 = vmatprep.subr.bf16.mxu1 %v4391_v61  ;;  %5800 = vmatprep.mubr.msk.bf16.mxu1 %vm1745_vm4, %v6112_v21 }
0x13f8   : > { %v4471_v3 = vpop.permute.xlu1 %4470 }
0x13f9   : > { %5806 = vmatprep.subr.bf16.mxu0 %v4471_v3 }
0x13fa   : > { %5799 = vmatpush3.bf16.msra.mxu1 %v4391_v61  ;;  %v4551_v6 = vpop.permute.xlu0 %4550  ;;  %5807 = vmatpush3.bf16.msra.mxu0 %v4471_v3 }
0x13fb   : > { %5812 = vmatprep.subr.bf16.mxu1 %v4553_v2 }
0x13fc   : > { %v4633_v9 = vpop.permute.xlu1 %4632 }
0x13fd   : > { %5801 = vmatmul.mubr.msk.bf16.vlgmr.msra.gmra.mxu1 %vm1745_vm4, %v6113_v4  ;;  %5820 = vmatprep.subr.bf16.mxu0 %v4633_v9 }
0x13fe   : > { %5813 = vmatpush3.bf16.msra.mxu1 %v4553_v2  ;;  %v4713_v14 = vpop.permute.xlu0 %4712  ;;  %5809 = vmatmul.mubr.msk.bf16.vlgmr.msra.gmra.mxu0 %vm1745_vm4, %v6115_v8 }
0x13ff   : > { %5821 = vmatpush3.bf16.msra.mxu0 %v4633_v9  ;;  %5814 = vmatprep.subr.bf16.mxu1 %v4551_v6 }
0x1400   : > { %v4631_v12 = vpop.permute.xlu1 %4630  ;;  %5816 = vmatprep.mubr.msk.bf16.mxu1 %vm1745_vm4, %v6116_v20  ;;  %5824 = vmatprep.mubr.msk.bf16.mxu0 %vm1745_vm4, %v6118_v13 }
0x1401   : > { %5822 = vmatprep.subr.bf16.mxu0 %v4631_v12 }
0x1402   : > { %5815 = vmatpush3.bf16.msra.mxu1 %v4551_v6  ;;  %v4711_v7 = vpop.permute.xlu0 %4710 }
0x1403   : > { %5823 = vmatpush3.bf16.msra.mxu0 %v4631_v12  ;;  %5828 = vmatprep.subr.bf16.mxu1 %v4713_v14 }
0x1404   : > { %v4793_v16 = vpop.permute.xlu1 %4792 }
0x1405   : > { %5817 = vmatmul.mubr.msk.bf16.vlgmr.msra.gmra.mxu1 %vm1745_vm4, %v6117_v15  ;;  %5836 = vmatprep.subr.bf16.mxu0 %v4793_v16 }
0x1406   : > { %5829 = vmatpush3.bf16.msra.mxu1 %v4713_v14  ;;  %5825 = vmatmul.mubr.msk.bf16.vlgmr.msra.gmra.mxu0 %vm1745_vm4, %v6119_v23  ;;  %v4873_v22 = vpop.permute.xlu0 %4872 }
0x1407   : > { %5837 = vmatpush3.bf16.msra.mxu0 %v4793_v16  ;;  %5830 = vmatprep.subr.bf16.mxu1 %v4711_v7 }
0x1408   : > { %v4791_v27 = vpop.permute.xlu1 %4790  ;;  %5832 = vmatprep.mubr.msk.bf16.mxu1 %vm1745_vm4, %v6120_v17  ;;  %5840 = vmatprep.mubr.msk.bf16.mxu0 %vm1745_vm4, %v6122_v10 }
0x1409   : > { %5838 = vmatprep.subr.bf16.mxu0 %v4791_v27 }
0x140a   : > { %5831 = vmatpush3.bf16.msra.mxu1 %v4711_v7  ;;  %v4871_v35 = vpop.permute.xlu0 %4870 }
0x140b   : > { %5839 = vmatpush3.bf16.msra.mxu0 %v4791_v27  ;;  %5844 = vmatprep.subr.bf16.mxu1 %v4873_v22 }
0x140c   : > { %5852 = vmatprep.subr.bf16.mxu0 %v6166_v37 }
0x140d   : > { %5833 = vmatmul.mubr.msk.bf16.vlgmr.msra.gmra.mxu1 %vm1745_vm4, %v6121_v30 }
0x140e   : > { %5845 = vmatpush3.bf16.msra.mxu1 %v4873_v22  ;;  %5841 = vmatmul.mubr.msk.bf16.vlgmr.msra.gmra.mxu0 %vm1745_vm4, %v6123_v32 }
0x140f   : > { %5846 = vmatprep.subr.bf16.mxu1 %v4871_v35  ;;  %5848 = vmatprep.mubr.msk.bf16.mxu1 %vm1745_vm4, %v6124_v33 }
0x1410   : > { %5856 = vmatprep.mubr.msk.bf16.mxu0 %vm6167_vm7, %v6166_v37 }
0x1412   : > { %5847 = vmatpush3.bf16.msra.mxu1 %v4871_v35 }
0x1415   : > { %5849 = vmatmul.mubr.msk.bf16.vlgmr.msra.gmra.mxu1 %vm1745_vm4, %v6125_v36 }
0x1442   : > { %v5794_v38 = vpop.f32.mrf.mxu0 }
0x1444   : > { %v4360_v5 = vpop.f32.mrf.mxu0 }
0x1446   : > { %v5795_v39 = vpop.f32.mrf.mxu0 }
0x1448   : > { %v4363_v42 = vpop.f32.mrf.mxu0 }
0x14b5   : > { %v5786_v0 = vpop.f32.mrf.mxu1 }
0x14b6   : > { %v4369_v53 = vadd.f32 %v5794_v38, %v5786_v0 }
0x14b7   : > { %v4295_v40 = vpop.f32.mrf.mxu1 }
0x14b8   : > { %v4361_v63 = vadd.f32 %v4360_v5, %v4295_v40 }
0x14b9   : > { %v5787_v41 = vpop.f32.mrf.mxu1 }
0x14ba   : > { %v4372_v55 = vadd.f32 %v5795_v39, %v5787_v41 }
0x14bb   : > { %v4298_v43 = vpop.f32.mrf.mxu1 }
0x14bc   : > { %v4364_v56 = vadd.f32 %v4363_v42, %v4298_v43  ;;  %v4935_v43 = vld [vmem:[%s7323_s19] sm:$0x1] }
0x14bd   : > { %v5802_v44 = vpop.f32.mrf.mxu1 }
0x14be   : > { %v5810_v45 = vpop.f32.mrf.mxu0  ;;  %v4453_v31 = vadd.f32 %v5802_v44, %v4369_v53  ;;  %v4944_v44 = vlaneseq }
0x14bf   : > { %v4436_v46 = vpop.f32.mrf.mxu1 }
0x14c0   : > { %v4516_v47 = vpop.f32.mrf.mxu0  ;;  %v4451_v25 = vadd.f32 %v4436_v46, %v4361_v63  ;;  %v4533_v19 = vadd.f32 %v5810_v45, %v4453_v31  ;;  %v4945_v45 = vshrl.u32 %v4944_v44, 7 }
0x14c1   : > { %v5803_v48 = vpop.f32.mrf.mxu1 }
0x14c2   : > { %v5811_v49 = vpop.f32.mrf.mxu0  ;;  %v4454_v26 = vadd.f32 %v5803_v48, %v4372_v55  ;;  %v4531_v2 = vadd.f32 %v4516_v47, %v4451_v25  ;;  %v4946_v46 = vsub.s32 0, %v4945_v45  ;;  %v4942_v47 = vpop.permute.xlu1 %4941 }
0x14c3   : > { %v4439_v50 = vpop.f32.mrf.mxu1 }
0x14c4   : > { %v4519_v51 = vpop.f32.mrf.mxu0  ;;  %v4452_v58 = vadd.f32 %v4439_v50, %v4364_v56  ;;  %v4534_v54 = vadd.f32 %v5811_v49, %v4454_v26  ;;  %v4947_v48 = vrot.slane %v4942_v47, %v4946_v46 }
0x14c5   : > { %v5818_v52 = vpop.f32.mrf.mxu1 }
0x14c6   : > { %v5826_v24 = vpop.f32.mrf.mxu0  ;;  %v4532_v34 = vadd.f32 %v4519_v51, %v4452_v58  ;;  %v4613_v1 = vadd.f32 %v5818_v52, %v4533_v19 }
0x14c7   : > { %v4596_v11 = vpop.f32.mrf.mxu1 }
0x14c8   : > { %v4676_v57 = vpop.f32.mrf.mxu0  ;;  %v4611_v8 = vadd.f32 %v4596_v11, %v4531_v2  ;;  %v4693_v9 = vadd.f32 %v5826_v24, %v4613_v1 }
0x14c9   : > { %v5819_v62 = vpop.f32.mrf.mxu1 }
0x14ca   : > { %v5827_v28 = vpop.f32.mrf.mxu0  ;;  %v4614_v61 = vadd.f32 %v5819_v62, %v4534_v54  ;;  %v4691_v16 = vadd.f32 %v4676_v57, %v4611_v8 }
0x14cb   : > { %v4599_v29 = vpop.f32.mrf.mxu1 }
0x14cc   : > { %v4679_v59 = vpop.f32.mrf.mxu0  ;;  %v4612_v3 = vadd.f32 %v4599_v29, %v4532_v34  ;;  %v4694_v20 = vadd.f32 %v5827_v28, %v4614_v61 }
0x14cd   : > { %v5834_v60 = vpop.f32.mrf.mxu1 }
0x14ce   : > { %v5842_v21 = vpop.f32.mrf.mxu0  ;;  %v4692_v14 = vadd.f32 %v4679_v59, %v4612_v3  ;;  %v4773_v12 = vadd.f32 %v5834_v60, %v4693_v9 }
0x14cf   : > { %v4756_v18 = vpop.f32.mrf.mxu1 }
0x14d0   : > { %v4836_v6 = vpop.f32.mrf.mxu0  ;;  %v4771_v22 = vadd.f32 %v4756_v18, %v4691_v16  ;;  %v4853_v27 = vadd.f32 %v5842_v21, %v4773_v12 }
0x14d1   : > { %v5835_v4 = vpop.f32.mrf.mxu1 }
0x14d2   : > { %v4774_v15 = vadd.f32 %v5835_v4, %v4694_v20  ;;  %v5843_v7 = vpop.f32.mrf.mxu0  ;;  %v4851_v0 = vadd.f32 %v4836_v6, %v4771_v22 }
0x14d3   : > { %v4759_v13 = vpop.f32.mrf.mxu1 }
0x14d4   : > { %v4772_v17 = vadd.f32 %v4759_v13, %v4692_v14  ;;  %v4854_v30 = vadd.f32 %v5843_v7, %v4774_v15  ;;  %v4839_v32 = vpop.f32.mrf.mxu0 }
0x14d5   : > { %v5850_v23 = vpop.f32.mrf.mxu1 }
0x14d6   : > { %v4852_v35 = vadd.f32 %v4839_v32, %v4772_v17  ;;  %v4933_v36 = vadd.f32 %v5850_v23, %v4853_v27 }
0x14d7   : > { %v4916_v10 = vpop.f32.mrf.mxu1 }
0x14d8   : > { %v4931_v41 = vadd.f32 %v4916_v10, %v4851_v0 }
0x14d9   : > { %v5851_v33 = vpop.f32.mrf.mxu1 }
0x14da   : > { %v4934_v38 = vadd.f32 %v5851_v33, %v4854_v30 }
0x14db   : > { %v4919_v5 = vpop.f32.mrf.mxu1 }
0x14dc   : > { %v4937_v39 = vpack.c.bf16 %v4934_v38, %v4933_v36  ;;  %v4932_v40 = vadd.f32 %v4919_v5, %v4852_v35 }
0x14de   : > { %5853 = vmatpush3.bf16.msra.mxu0 %v4937_v39  ;;  %v4936_v42 = vpack.c.bf16 %v4932_v40, %v4931_v41 }
0x14df   : > { %5854 = vmatprep.subr.bf16.mxu0 %v6166_v37 }
0x14e2   : > { %5855 = vmatpush3.bf16.msra.mxu0 %v4936_v42 }
0x14e5   : > { %5857 = vmatmul.mubr.msk.bf16.vlgmr.msra.gmra.mxu0 %vm1745_vm4, %v4935_v43 }
0x15a5   : > { %v4985_v49 = vpop.f32.mrf.mxu0 }
0x15a6   : > { %v4986_v37 = vadd.f32 %v4985_v49, %v4947_v48 }
0x15a7   : > { %v5858_v50 = vpop.f32.mrf.mxu0 }
0x15a8   : > { %4992 = vst.msk [vmem:[%s733_s3] sm:$0x1] %vm4991_vm8, %v4986_v37 }
0x15a9   : > { %v4988_v51 = vpop.f32.mrf.mxu0 }
0x15ab   : > { %v5859_v52 = vpop.f32.mrf.mxu0 }
0x15ac PF: > { %s7367_s2 = sld [smem:[#allocation3_spill]] }
0x15b2   : > { %s36_s24 = sadd.s32 1, %s7367_s2  }
0x15b3   : > { %p33_p4 = scmp.ge.s32.totalorder %s36_s24, 4  }
0x15b5   :  { %35 = sbr.rel (!%p33_p4) target bundleno = 9 (0x9), region = 182 }

</bundles_post_ra>
